<compile_context>
chip_gen: v6e
topology: v6e:2x2x1
jax: 0.10.0
libtpu: 0.0.40
codegen_flags: <defaults>
</compile_context>

<pallas_src>
import jax
import jax.numpy as jnp
from jax import lax
from jax.experimental import pallas as pl
from jax.experimental.pallas import tpu as pltpu


def _round_up(n, m):
    return ((n + m - 1) // m) * m


def _sigmoid(z):
    # sigmoid(z) = 0.5 * (1 + tanh(z/2)): one EUP tanh instead of exp + a full
    # f32 divide (multi-op Newton sequence) on the serial critical path.
    return 0.5 * (jnp.tanh(0.5 * z) + 1.0)


# PyTorch packs LSTM gates as [i | f | g | o].  The padded kernel layout is
# [i | f | o | g] so the three sigmoid gates form one contiguous 3*hp slab.
_GATE_ORDER = (0, 1, 3, 2)


def _pad_gate_matrix(w_t, h, hp, din, din_p):
    """w_t: (din, 4*h) in PyTorch gate order -> (din_p, 4*hp) laid out [i|f|o|g].

    Each gate block sits at a 128-aligned column offset so in-kernel gate slices
    are lane-aligned.  Padded rows/cols are EXACTLY zero: this is required for
    the padded-lane invariant (z_pad = 0 -> i=f=o=0.5, g=0; with c0 = 0 the
    padded lanes of c and h stay exactly 0 for all timesteps)."""
    blocks = []
    for k in _GATE_ORDER:
        blk = w_t[:, k * h:(k + 1) * h]                      # (din, h)
        blk = jnp.pad(blk, ((0, din_p - din), (0, hp - h)))  # (din_p, hp)
        blocks.append(blk)
    return jnp.concatenate(blocks, axis=1)                   # (din_p, 4*hp)


def _pad_gate_bias(b, h, hp):
    # Padded bias entries MUST stay exactly 0 (see _pad_gate_matrix docstring).
    blocks = [jnp.pad(b[k * h:(k + 1) * h], (0, hp - h)) for k in _GATE_ORDER]
    return jnp.concatenate(blocks).reshape(1, 4 * hp)


def _pick_batch_tile(batch):
    if batch % 8 != 0:
        return batch
    for cand in (64, 32, 16, 8):
        if batch % cand == 0:
            return cand
    return batch


def _make_stacked_lstm_kernel(num_layers, seq_len, precision):
    """One kernel that runs all stacked LSTM layers, layer-major, over all timesteps."""

    def kernel(*refs):
        x_ref = refs[0]                                    # (T, bt, F)  time-major
        layer_refs = [(refs[1 + 3 * l], refs[2 + 3 * l], refs[3 + 3 * l])
                      for l in range(num_layers)]
        out_ref = refs[1 + 3 * num_layers]                 # (bt, hp_last)
        scratch = refs[2 + 3 * num_layers:]
        zin_refs = scratch[:num_layers]                    # (T*bt, 4*hp_l)
        hseq_refs = scratch[num_layers:]                   # (T*bt, hp_l), l < L-1

        T, bt, feat = x_ref.shape
        # Whole input sequence flattened time-major: rows (t, b) -> t*bt + b.
        x2d = x_ref[...].reshape(T * bt, feat)

        h_last = None
        for l in range(num_layers):
            w_ih_ref, w_hh_ref, b_ref = layer_refs[l]
            hp = w_hh_ref.shape[0]
            zin_ref = zin_refs[l]

            # Hoisted input projection (+ fused bias): one throughput matmul
            # with M = T*bt instead of T latency-bound M = bt matmuls.
            src = x2d if l == 0 else hseq_refs[l - 1][...]
            zin_ref[...] = (
                jnp.dot(src, w_ih_ref[...],
                        preferred_element_type=jnp.float32, precision=precision)
                + b_ref[...])

            hseq_ref = hseq_refs[l] if l < num_layers - 1 else None

            def step(t, carry, *, _hp=hp, _zin=zin_ref, _whh=w_hh_ref,
                     _hseq=hseq_ref):
                h_prev, c_prev = carry
                row = pl.multiple_of(t * bt, bt)
                # Only the recurrent dot remains on the serial critical path;
                # W_hh is streamed straight from its VMEM ref.
                z = _zin[pl.ds(row, bt), :] + jnp.dot(
                    h_prev, _whh[...],
                    preferred_element_type=jnp.float32, precision=precision)
                # Gate layout [i|f|o|g]: one sigmoid over 3 contiguous gates.
                s = _sigmoid(z[:, 0:3 * _hp])
                i_g = s[:, 0 * _hp:1 * _hp]
                f_g = s[:, 1 * _hp:2 * _hp]
                o_g = s[:, 2 * _hp:3 * _hp]
                g_g = jnp.tanh(z[:, 3 * _hp:4 * _hp])
                c = f_g * c_prev + i_g * g_g
                h = o_g * jnp.tanh(c)
                if _hseq is not None:
                    _hseq[pl.ds(row, bt), :] = h   # feeds next layer's projection
                return (h, c)

            init = (jnp.zeros((bt, hp), jnp.float32),
                    jnp.zeros((bt, hp), jnp.float32))
            h_last, _ = lax.fori_loop(0, seq_len, step, init,
                                      unroll=min(seq_len, 8))

        # Final hidden state of the last layer (lane-padded; wrapper slices).
        out_ref[...] = h_last.astype(out_ref.dtype)

    return kernel


def recurrent_encoder_forward(x, padded_params, embedding_dim, precision):
    """x: (batch, seq_len, n_features) float32, batch_first (PyTorch convention)."""
    B, T, F = x.shape
    hp_last = padded_params[-1][1].shape[0]   # padded hidden width of last layer
    num_layers = len(padded_params)

    bt = _pick_batch_tile(B)
    grid = (B // bt,)

    # Single cheap host-side transpose to time-major (no feature padding).
    x_tm = jnp.transpose(x, (1, 0, 2))        # (T, B, F)

    flat_params = [p for layer in padded_params for p in layer]
    kernel = _make_stacked_lstm_kernel(num_layers, T, precision)

    in_specs = [pl.BlockSpec((T, bt, F), lambda i: (0, i, 0))]
    for w_ih, w_hh, b in padded_params:
        in_specs.append(pl.BlockSpec(w_ih.shape, lambda i: (0, 0)))
        in_specs.append(pl.BlockSpec(w_hh.shape, lambda i: (0, 0)))
        in_specs.append(pl.BlockSpec(b.shape, lambda i: (0, 0)))
    out_spec = pl.BlockSpec((bt, hp_last), lambda i: (i, 0))

    scratch_shapes = []
    scratch_bytes = 0
    for (_, w_hh, _) in padded_params:                 # z_in per layer
        hp = w_hh.shape[0]
        scratch_shapes.append(pltpu.VMEM((T * bt, 4 * hp), jnp.float32))
        scratch_bytes += T * bt * 4 * hp * 4
    for (_, w_hh, _) in padded_params[:-1]:            # h-sequence per non-last layer
        hp = w_hh.shape[0]
        scratch_shapes.append(pltpu.VMEM((T * bt, hp), jnp.float32))
        scratch_bytes += T * bt * hp * 4

    # Explicit VMEM budget (v7x: 64 MiB physical per TC, 32 MiB scoped default).
    io_bytes = (int(x_tm.size) + sum(int(p.size) for p in flat_params)
                + B * hp_last) * 4
    vmem_limit = int(min(max(2 * io_bytes + scratch_bytes, 32 * 1024 * 1024),
                         64 * 1024 * 1024))

    out_p = pl.pallas_call(
        kernel,
        out_shape=jax.ShapeDtypeStruct((B, hp_last), jnp.float32),
        grid=grid,
        in_specs=in_specs,
        out_specs=out_spec,
        scratch_shapes=scratch_shapes,
        compiler_params=pltpu.CompilerParams(
            dimension_semantics=("parallel",),
            vmem_limit_bytes=vmem_limit,
        ),
    )(x_tm, *flat_params)

    return out_p[:, :embedding_dim]


class RecurrentEncoder:
    """JAX/Pallas port of the PyTorch RecurrentEncoder (rnn1 -> rnn2, returns hidden_n)."""

    def __init__(self, seq_len, n_features, embedding_dim, n_layers, key,
                 matmul_precision=jax.lax.Precision.DEFAULT):
        # PyTorch's forward does hidden_n.reshape((batch, embedding_dim)), which is
        # only element-count-valid when num_layers == 1.
        assert n_layers == 1, "hidden_n.reshape((B, emb)) requires num_layers == 1"
        self.seq_len = seq_len
        self.n_features = n_features
        self.embedding_dim = embedding_dim
        self.hidden_dim = 2 * embedding_dim
        self.n_layers = n_layers
        self.matmul_precision = matmul_precision

        # Flattened stack of LSTM layers: rnn1 layers then rnn2 layers.
        layer_dims = []
        for l in range(n_layers):
            layer_dims.append((n_features if l == 0 else self.hidden_dim, self.hidden_dim))
        for l in range(n_layers):
            layer_dims.append((self.hidden_dim if l == 0 else embedding_dim, embedding_dim))

        self.ref_params = []     # (w_ih_t, w_hh_t, b, dh)  unpadded, PyTorch gate order
        self.padded_params = []  # (w_ih_p, w_hh_p, b_p)    lane-padded, kernel layout
        prev_hp = None
        for idx, (din, dh) in enumerate(layer_dims):
            bound = 1.0 / (dh ** 0.5)  # PyTorch LSTM init: U(-1/sqrt(H), 1/sqrt(H))
            key, k1, k2, k3, k4 = jax.random.split(key, 5)
            w_ih = jax.random.uniform(k1, (4 * dh, din), jnp.float32, -bound, bound)
            w_hh = jax.random.uniform(k2, (4 * dh, dh), jnp.float32, -bound, bound)
            b_ih = jax.random.uniform(k3, (4 * dh,), jnp.float32, -bound, bound)
            b_hh = jax.random.uniform(k4, (4 * dh,), jnp.float32, -bound, bound)

            w_ih_t, w_hh_t, b = w_ih.T, w_hh.T, b_ih + b_hh  # hoisted: done once
            self.ref_params.append((w_ih_t, w_hh_t, b, dh))

            hp = _round_up(dh, 128)
            # Layer 0 consumes unpadded features; deeper layers consume the
            # zero-padded hidden state of the previous layer.
            din_p = din if idx == 0 else prev_hp
            self.padded_params.append((
                _pad_gate_matrix(w_ih_t, dh, hp, din, din_p),
                _pad_gate_matrix(w_hh_t, dh, hp, dh, hp),
                _pad_gate_bias(b, dh, hp),
            ))
            prev_hp = hp

    def __call__(self, x):
        return recurrent_encoder_forward(x, self.padded_params, self.embedding_dim,
                                          self.matmul_precision)

    def reference(self, x):
        """Pure-jnp stacked LSTM reference (unpadded), same op structure & precision."""
        B, T, _ = x.shape
        prec = self.matmul_precision
        seq = x
        h = None
        for w_ih_t, w_hh_t, b, dh in self.ref_params:
            din = seq.shape[-1]
            zin = (jnp.dot(seq.reshape(B * T, din), w_ih_t, precision=prec)
                   + b).reshape(B, T, 4 * dh)
            h = jnp.zeros((B, dh), jnp.float32)
            c = jnp.zeros((B, dh), jnp.float32)
            outs = []
            for t in range(T):
                z = zin[:, t, :] + jnp.dot(h, w_hh_t, precision=prec)
                i = _sigmoid(z[:, 0 * dh:1 * dh])
                f = _sigmoid(z[:, 1 * dh:2 * dh])
                g = jnp.tanh(z[:, 2 * dh:3 * dh])
                o = _sigmoid(z[:, 3 * dh:4 * dh])
                c = f * c + i * g
                h = o * jnp.tanh(c)
                outs.append(h)
            seq = jnp.stack(outs, axis=1)
        return h  # == hidden_n.reshape((B, emb)) for num_layers == 1


if __name__ == "__main__":
    key = jax.random.PRNGKey(0)
    seq_len, n_features, embedding_dim, n_layers = 8, 32, 8, 1
    batch = 8

    key, kx, kp = jax.random.split(key, 3)
    x = jax.random.normal(kx, (batch, seq_len, n_features), jnp.float32)

    enc = RecurrentEncoder(seq_len, n_features, embedding_dim, n_layers, kp)

    out = jax.block_until_ready(enc(x))
    ref = enc.reference(x)

    assert out.shape == (batch, embedding_dim), out.shape
    # Kernel and reference use the same (DEFAULT) matmul precision and the same
    # op structure, so they agree to accumulation-reassociation level.
    assert jnp.allclose(out, ref, atol=1e-3, rtol=1e-3), (
        "mismatch vs jnp reference, max abs diff = "
        f"{float(jnp.max(jnp.abs(out - ref)))}")

    print("KERNEL_OK")
</pallas_src>

<mosaic_0001>
module attributes {stable_mosaic.version = 11 : i64} {
  func.func @kernel(%arg0: i32, %arg1: memref<8x8x32xf32, #tpu.memory_space<vmem>>, %arg2: memref<32x512xf32, #tpu.memory_space<vmem>>, %arg3: memref<128x512xf32, #tpu.memory_space<vmem>>, %arg4: memref<1x512xf32, #tpu.memory_space<vmem>>, %arg5: memref<128x512xf32, #tpu.memory_space<vmem>>, %arg6: memref<128x512xf32, #tpu.memory_space<vmem>>, %arg7: memref<1x512xf32, #tpu.memory_space<vmem>>, %arg8: memref<8x128xf32, #tpu.memory_space<vmem>>, %arg9: memref<64x512xf32, #tpu.memory_space<vmem>>, %arg10: memref<64x512xf32, #tpu.memory_space<vmem>>, %arg11: memref<64x128xf32, #tpu.memory_space<vmem>>) attributes {dimension_semantics = [#tpu.dimension_semantics<parallel>], iteration_bounds = array<i64: 1>, scalar_prefetch = 0 : i64, scratch_operands = 3 : i64, tpu.core_type = #tpu.core_type<tc>, window_params = [{transform_indices = @transform_0, window_bounds = array<i64: 8, 8, 32>}, {pipeline_mode = #tpu.pipeline_mode<synchronous>, transform_indices = @transform_1, window_bounds = array<i64: 32, 512>}, {pipeline_mode = #tpu.pipeline_mode<synchronous>, transform_indices = @transform_2, window_bounds = array<i64: 128, 512>}, {pipeline_mode = #tpu.pipeline_mode<synchronous>, transform_indices = @transform_3, window_bounds = array<i64: 1, 512>}, {pipeline_mode = #tpu.pipeline_mode<synchronous>, transform_indices = @transform_4, window_bounds = array<i64: 128, 512>}, {pipeline_mode = #tpu.pipeline_mode<synchronous>, transform_indices = @transform_5, window_bounds = array<i64: 128, 512>}, {pipeline_mode = #tpu.pipeline_mode<synchronous>, transform_indices = @transform_6, window_bounds = array<i64: 1, 512>}, {transform_indices = @transform_7, window_bounds = array<i64: 8, 128>}]} {
    %c0 = arith.constant 0 : index
    %c0_0 = arith.constant 0 : index
    %c0_1 = arith.constant 0 : index
    %0 = vector.load %arg1[%c0, %c0_0, %c0_1] : memref<8x8x32xf32, #tpu.memory_space<vmem>>, vector<8x8x32xf32>
    %1 = vector.shape_cast %0 : vector<8x8x32xf32> to vector<64x32xf32>
    %c0_2 = arith.constant 0 : index
    %c0_3 = arith.constant 0 : index
    %2 = vector.load %arg2[%c0_2, %c0_3] : memref<32x512xf32, #tpu.memory_space<vmem>>, vector<32x512xf32>
    %cst = arith.constant dense<0.000000e+00> : vector<64x512xf32>
    %3 = tpu.matmul %1, %2, %cst {dimension_numbers = #tpu.dot_dimension_numbers<[1], [0], [0], [1], [0, 0, 1, 1], [], []>} : vector<64x32xf32>, vector<32x512xf32>, vector<64x512xf32> -> vector<64x512xf32>
    %c0_4 = arith.constant 0 : index
    %c0_5 = arith.constant 0 : index
    %4 = vector.load %arg4[%c0_4, %c0_5] : memref<1x512xf32, #tpu.memory_space<vmem>>, vector<1x512xf32>
    %5 = vector.broadcast %4 : vector<1x512xf32> to vector<64x512xf32>
    %6 = arith.addf %3, %5 : vector<64x512xf32>
    %c0_6 = arith.constant 0 : index
    %c0_7 = arith.constant 0 : index
    %7 = vector.load %arg9[%c0_6, %c0_7] : memref<64x512xf32, #tpu.memory_space<vmem>>, vector<64x512xf32>
    tpu.vector_store %arg9[%c0_6, %c0_7], %6 {strides = array<i32>} : memref<64x512xf32, #tpu.memory_space<vmem>>, vector<64x512xf32>,
    %cst_8 = arith.constant 0.000000e+00 : f32
    %8 = vector.broadcast %cst_8 : f32 to vector<8x128xf32>
    %cst_9 = arith.constant 0.000000e+00 : f32
    %9 = vector.broadcast %cst_9 : f32 to vector<8x128xf32>
    %c0_i32 = arith.constant 0 : i32
    %c8_i32 = arith.constant 8 : i32
    %10 = arith.muli %c0_i32, %c8_i32 : i32
    %11 = tpu.assume_multiple %10, 8 : i32
    %12 = arith.index_cast %11 : i32 to index
    %c0_10 = arith.constant 0 : index
    %13 = vector.load %arg9[%12, %c0_10] : memref<64x512xf32, #tpu.memory_space<vmem>>, vector<8x512xf32>
    %c0_11 = arith.constant 0 : index
    %c0_12 = arith.constant 0 : index
    %14 = vector.load %arg3[%c0_11, %c0_12] : memref<128x512xf32, #tpu.memory_space<vmem>>, vector<128x512xf32>
    %cst_13 = arith.constant dense<0.000000e+00> : vector<8x512xf32>
    %15 = tpu.matmul %8, %14, %cst_13 {dimension_numbers = #tpu.dot_dimension_numbers<[1], [0], [0], [1], [0, 0, 1, 1], [], []>} : vector<8x128xf32>, vector<128x512xf32>, vector<8x512xf32> -> vector<8x512xf32>
    %16 = arith.addf %13, %15 : vector<8x512xf32>
    %17 = vector.extract_strided_slice %16 {offsets = [0, 0], sizes = [8, 384], strides = [1, 1]} : vector<8x512xf32> to vector<8x384xf32>
    %cst_14 = arith.constant 5.000000e-01 : f32
    %18 = vector.broadcast %cst_14 : f32 to vector<8x384xf32>
    %19 = arith.mulf %18, %17 : vector<8x384xf32>
    %20 = math.tanh %19 : vector<8x384xf32>
    %cst_15 = arith.constant 1.000000e+00 : f32
    %21 = vector.broadcast %cst_15 : f32 to vector<8x384xf32>
    %22 = arith.addf %20, %21 : vector<8x384xf32>
    %cst_16 = arith.constant 5.000000e-01 : f32
    %23 = vector.broadcast %cst_16 : f32 to vector<8x384xf32>
    %24 = arith.mulf %23, %22 : vector<8x384xf32>
    %25 = vector.extract_strided_slice %24 {offsets = [0, 0], sizes = [8, 128], strides = [1, 1]} : vector<8x384xf32> to vector<8x128xf32>
    %26 = vector.extract_strided_slice %24 {offsets = [0, 128], sizes = [8, 128], strides = [1, 1]} : vector<8x384xf32> to vector<8x128xf32>
    %27 = vector.extract_strided_slice %24 {offsets = [0, 256], sizes = [8, 128], strides = [1, 1]} : vector<8x384xf32> to vector<8x128xf32>
    %28 = vector.extract_strided_slice %16 {offsets = [0, 384], sizes = [8, 128], strides = [1, 1]} : vector<8x512xf32> to vector<8x128xf32>
    %29 = math.tanh %28 : vector<8x128xf32>
    %30 = arith.mulf %26, %9 : vector<8x128xf32>
    %31 = arith.mulf %25, %29 : vector<8x128xf32>
    %32 = arith.addf %30, %31 : vector<8x128xf32>
    %33 = math.tanh %32 : vector<8x128xf32>
    %34 = arith.mulf %27, %33 : vector<8x128xf32>
    %35 = arith.index_cast %11 : i32 to index
    %c0_17 = arith.constant 0 : index
    %36 = vector.load %arg11[%35, %c0_17] : memref<64x128xf32, #tpu.memory_space<vmem>>, vector<8x128xf32>
    tpu.vector_store %arg11[%35, %c0_17], %34 {strides = array<i32>} : memref<64x128xf32, #tpu.memory_space<vmem>>, vector<8x128xf32>,
    %c1_i32 = arith.constant 1 : i32
    %c8_i32_18 = arith.constant 8 : i32
    %37 = arith.muli %c1_i32, %c8_i32_18 : i32
    %38 = tpu.assume_multiple %37, 8 : i32
    %39 = arith.index_cast %38 : i32 to index
    %c0_19 = arith.constant 0 : index
    %40 = vector.load %arg9[%39, %c0_19] : memref<64x512xf32, #tpu.memory_space<vmem>>, vector<8x512xf32>
    %c0_20 = arith.constant 0 : index
    %c0_21 = arith.constant 0 : index
    %41 = vector.load %arg3[%c0_20, %c0_21] : memref<128x512xf32, #tpu.memory_space<vmem>>, vector<128x512xf32>
    %cst_22 = arith.constant dense<0.000000e+00> : vector<8x512xf32>
    %42 = tpu.matmul %34, %41, %cst_22 {dimension_numbers = #tpu.dot_dimension_numbers<[1], [0], [0], [1], [0, 0, 1, 1], [], []>} : vector<8x128xf32>, vector<128x512xf32>, vector<8x512xf32> -> vector<8x512xf32>
    %43 = arith.addf %40, %42 : vector<8x512xf32>
    %44 = vector.extract_strided_slice %43 {offsets = [0, 0], sizes = [8, 384], strides = [1, 1]} : vector<8x512xf32> to vector<8x384xf32>
    %cst_23 = arith.constant 5.000000e-01 : f32
    %45 = vector.broadcast %cst_23 : f32 to vector<8x384xf32>
    %46 = arith.mulf %45, %44 : vector<8x384xf32>
    %47 = math.tanh %46 : vector<8x384xf32>
    %cst_24 = arith.constant 1.000000e+00 : f32
    %48 = vector.broadcast %cst_24 : f32 to vector<8x384xf32>
    %49 = arith.addf %47, %48 : vector<8x384xf32>
    %cst_25 = arith.constant 5.000000e-01 : f32
    %50 = vector.broadcast %cst_25 : f32 to vector<8x384xf32>
    %51 = arith.mulf %50, %49 : vector<8x384xf32>
    %52 = vector.extract_strided_slice %51 {offsets = [0, 0], sizes = [8, 128], strides = [1, 1]} : vector<8x384xf32> to vector<8x128xf32>
    %53 = vector.extract_strided_slice %51 {offsets = [0, 128], sizes = [8, 128], strides = [1, 1]} : vector<8x384xf32> to vector<8x128xf32>
    %54 = vector.extract_strided_slice %51 {offsets = [0, 256], sizes = [8, 128], strides = [1, 1]} : vector<8x384xf32> to vector<8x128xf32>
    %55 = vector.extract_strided_slice %43 {offsets = [0, 384], sizes = [8, 128], strides = [1, 1]} : vector<8x512xf32> to vector<8x128xf32>
    %56 = math.tanh %55 : vector<8x128xf32>
    %57 = arith.mulf %53, %32 : vector<8x128xf32>
    %58 = arith.mulf %52, %56 : vector<8x128xf32>
    %59 = arith.addf %57, %58 : vector<8x128xf32>
    %60 = math.tanh %59 : vector<8x128xf32>
    %61 = arith.mulf %54, %60 : vector<8x128xf32>
    %62 = arith.index_cast %38 : i32 to index
    %c0_26 = arith.constant 0 : index
    %63 = vector.load %arg11[%62, %c0_26] : memref<64x128xf32, #tpu.memory_space<vmem>>, vector<8x128xf32>
    tpu.vector_store %arg11[%62, %c0_26], %61 {strides = array<i32>} : memref<64x128xf32, #tpu.memory_space<vmem>>, vector<8x128xf32>,
    %c2_i32 = arith.constant 2 : i32
    %c8_i32_27 = arith.constant 8 : i32
    %64 = arith.muli %c2_i32, %c8_i32_27 : i32
    %65 = tpu.assume_multiple %64, 8 : i32
    %66 = arith.index_cast %65 : i32 to index
    %c0_28 = arith.constant 0 : index
    %67 = vector.load %arg9[%66, %c0_28] : memref<64x512xf32, #tpu.memory_space<vmem>>, vector<8x512xf32>
    %c0_29 = arith.constant 0 : index
    %c0_30 = arith.constant 0 : index
    %68 = vector.load %arg3[%c0_29, %c0_30] : memref<128x512xf32, #tpu.memory_space<vmem>>, vector<128x512xf32>
    %cst_31 = arith.constant dense<0.000000e+00> : vector<8x512xf32>
    %69 = tpu.matmul %61, %68, %cst_31 {dimension_numbers = #tpu.dot_dimension_numbers<[1], [0], [0], [1], [0, 0, 1, 1], [], []>} : vector<8x128xf32>, vector<128x512xf32>, vector<8x512xf32> -> vector<8x512xf32>
    %70 = arith.addf %67, %69 : vector<8x512xf32>
    %71 = vector.extract_strided_slice %70 {offsets = [0, 0], sizes = [8, 384], strides = [1, 1]} : vector<8x512xf32> to vector<8x384xf32>
    %cst_32 = arith.constant 5.000000e-01 : f32
    %72 = vector.broadcast %cst_32 : f32 to vector<8x384xf32>
    %73 = arith.mulf %72, %71 : vector<8x384xf32>
    %74 = math.tanh %73 : vector<8x384xf32>
    %cst_33 = arith.constant 1.000000e+00 : f32
    %75 = vector.broadcast %cst_33 : f32 to vector<8x384xf32>
    %76 = arith.addf %74, %75 : vector<8x384xf32>
    %cst_34 = arith.constant 5.000000e-01 : f32
    %77 = vector.broadcast %cst_34 : f32 to vector<8x384xf32>
    %78 = arith.mulf %77, %76 : vector<8x384xf32>
    %79 = vector.extract_strided_slice %78 {offsets = [0, 0], sizes = [8, 128], strides = [1, 1]} : vector<8x384xf32> to vector<8x128xf32>
    %80 = vector.extract_strided_slice %78 {offsets = [0, 128], sizes = [8, 128], strides = [1, 1]} : vector<8x384xf32> to vector<8x128xf32>
    %81 = vector.extract_strided_slice %78 {offsets = [0, 256], sizes = [8, 128], strides = [1, 1]} : vector<8x384xf32> to vector<8x128xf32>
    %82 = vector.extract_strided_slice %70 {offsets = [0, 384], sizes = [8, 128], strides = [1, 1]} : vector<8x512xf32> to vector<8x128xf32>
    %83 = math.tanh %82 : vector<8x128xf32>
    %84 = arith.mulf %80, %59 : vector<8x128xf32>
    %85 = arith.mulf %79, %83 : vector<8x128xf32>
    %86 = arith.addf %84, %85 : vector<8x128xf32>
    %87 = math.tanh %86 : vector<8x128xf32>
    %88 = arith.mulf %81, %87 : vector<8x128xf32>
    %89 = arith.index_cast %65 : i32 to index
    %c0_35 = arith.constant 0 : index
    %90 = vector.load %arg11[%89, %c0_35] : memref<64x128xf32, #tpu.memory_space<vmem>>, vector<8x128xf32>
    tpu.vector_store %arg11[%89, %c0_35], %88 {strides = array<i32>} : memref<64x128xf32, #tpu.memory_space<vmem>>, vector<8x128xf32>,
    %c3_i32 = arith.constant 3 : i32
    %c8_i32_36 = arith.constant 8 : i32
    %91 = arith.muli %c3_i32, %c8_i32_36 : i32
    %92 = tpu.assume_multiple %91, 8 : i32
    %93 = arith.index_cast %92 : i32 to index
    %c0_37 = arith.constant 0 : index
    %94 = vector.load %arg9[%93, %c0_37] : memref<64x512xf32, #tpu.memory_space<vmem>>, vector<8x512xf32>
    %c0_38 = arith.constant 0 : index
    %c0_39 = arith.constant 0 : index
    %95 = vector.load %arg3[%c0_38, %c0_39] : memref<128x512xf32, #tpu.memory_space<vmem>>, vector<128x512xf32>
    %cst_40 = arith.constant dense<0.000000e+00> : vector<8x512xf32>
    %96 = tpu.matmul %88, %95, %cst_40 {dimension_numbers = #tpu.dot_dimension_numbers<[1], [0], [0], [1], [0, 0, 1, 1], [], []>} : vector<8x128xf32>, vector<128x512xf32>, vector<8x512xf32> -> vector<8x512xf32>
    %97 = arith.addf %94, %96 : vector<8x512xf32>
    %98 = vector.extract_strided_slice %97 {offsets = [0, 0], sizes = [8, 384], strides = [1, 1]} : vector<8x512xf32> to vector<8x384xf32>
    %cst_41 = arith.constant 5.000000e-01 : f32
    %99 = vector.broadcast %cst_41 : f32 to vector<8x384xf32>
    %100 = arith.mulf %99, %98 : vector<8x384xf32>
    %101 = math.tanh %100 : vector<8x384xf32>
    %cst_42 = arith.constant 1.000000e+00 : f32
    %102 = vector.broadcast %cst_42 : f32 to vector<8x384xf32>
    %103 = arith.addf %101, %102 : vector<8x384xf32>
    %cst_43 = arith.constant 5.000000e-01 : f32
    %104 = vector.broadcast %cst_43 : f32 to vector<8x384xf32>
    %105 = arith.mulf %104, %103 : vector<8x384xf32>
    %106 = vector.extract_strided_slice %105 {offsets = [0, 0], sizes = [8, 128], strides = [1, 1]} : vector<8x384xf32> to vector<8x128xf32>
    %107 = vector.extract_strided_slice %105 {offsets = [0, 128], sizes = [8, 128], strides = [1, 1]} : vector<8x384xf32> to vector<8x128xf32>
    %108 = vector.extract_strided_slice %105 {offsets = [0, 256], sizes = [8, 128], strides = [1, 1]} : vector<8x384xf32> to vector<8x128xf32>
    %109 = vector.extract_strided_slice %97 {offsets = [0, 384], sizes = [8, 128], strides = [1, 1]} : vector<8x512xf32> to vector<8x128xf32>
    %110 = math.tanh %109 : vector<8x128xf32>
    %111 = arith.mulf %107, %86 : vector<8x128xf32>
    %112 = arith.mulf %106, %110 : vector<8x128xf32>
    %113 = arith.addf %111, %112 : vector<8x128xf32>
    %114 = math.tanh %113 : vector<8x128xf32>
    %115 = arith.mulf %108, %114 : vector<8x128xf32>
    %116 = arith.index_cast %92 : i32 to index
    %c0_44 = arith.constant 0 : index
    %117 = vector.load %arg11[%116, %c0_44] : memref<64x128xf32, #tpu.memory_space<vmem>>, vector<8x128xf32>
    tpu.vector_store %arg11[%116, %c0_44], %115 {strides = array<i32>} : memref<64x128xf32, #tpu.memory_space<vmem>>, vector<8x128xf32>,
    %c4_i32 = arith.constant 4 : i32
    %c8_i32_45 = arith.constant 8 : i32
    %118 = arith.muli %c4_i32, %c8_i32_45 : i32
    %119 = tpu.assume_multiple %118, 8 : i32
    %120 = arith.index_cast %119 : i32 to index
    %c0_46 = arith.constant 0 : index
    %121 = vector.load %arg9[%120, %c0_46] : memref<64x512xf32, #tpu.memory_space<vmem>>, vector<8x512xf32>
    %c0_47 = arith.constant 0 : index
    %c0_48 = arith.constant 0 : index
    %122 = vector.load %arg3[%c0_47, %c0_48] : memref<128x512xf32, #tpu.memory_space<vmem>>, vector<128x512xf32>
    %cst_49 = arith.constant dense<0.000000e+00> : vector<8x512xf32>
    %123 = tpu.matmul %115, %122, %cst_49 {dimension_numbers = #tpu.dot_dimension_numbers<[1], [0], [0], [1], [0, 0, 1, 1], [], []>} : vector<8x128xf32>, vector<128x512xf32>, vector<8x512xf32> -> vector<8x512xf32>
    %124 = arith.addf %121, %123 : vector<8x512xf32>
    %125 = vector.extract_strided_slice %124 {offsets = [0, 0], sizes = [8, 384], strides = [1, 1]} : vector<8x512xf32> to vector<8x384xf32>
    %cst_50 = arith.constant 5.000000e-01 : f32
    %126 = vector.broadcast %cst_50 : f32 to vector<8x384xf32>
    %127 = arith.mulf %126, %125 : vector<8x384xf32>
    %128 = math.tanh %127 : vector<8x384xf32>
    %cst_51 = arith.constant 1.000000e+00 : f32
    %129 = vector.broadcast %cst_51 : f32 to vector<8x384xf32>
    %130 = arith.addf %128, %129 : vector<8x384xf32>
    %cst_52 = arith.constant 5.000000e-01 : f32
    %131 = vector.broadcast %cst_52 : f32 to vector<8x384xf32>
    %132 = arith.mulf %131, %130 : vector<8x384xf32>
    %133 = vector.extract_strided_slice %132 {offsets = [0, 0], sizes = [8, 128], strides = [1, 1]} : vector<8x384xf32> to vector<8x128xf32>
    %134 = vector.extract_strided_slice %132 {offsets = [0, 128], sizes = [8, 128], strides = [1, 1]} : vector<8x384xf32> to vector<8x128xf32>
    %135 = vector.extract_strided_slice %132 {offsets = [0, 256], sizes = [8, 128], strides = [1, 1]} : vector<8x384xf32> to vector<8x128xf32>
    %136 = vector.extract_strided_slice %124 {offsets = [0, 384], sizes = [8, 128], strides = [1, 1]} : vector<8x512xf32> to vector<8x128xf32>
    %137 = math.tanh %136 : vector<8x128xf32>
    %138 = arith.mulf %134, %113 : vector<8x128xf32>
    %139 = arith.mulf %133, %137 : vector<8x128xf32>
    %140 = arith.addf %138, %139 : vector<8x128xf32>
    %141 = math.tanh %140 : vector<8x128xf32>
    %142 = arith.mulf %135, %141 : vector<8x128xf32>
    %143 = arith.index_cast %119 : i32 to index
    %c0_53 = arith.constant 0 : index
    %144 = vector.load %arg11[%143, %c0_53] : memref<64x128xf32, #tpu.memory_space<vmem>>, vector<8x128xf32>
    tpu.vector_store %arg11[%143, %c0_53], %142 {strides = array<i32>} : memref<64x128xf32, #tpu.memory_space<vmem>>, vector<8x128xf32>,
    %c5_i32 = arith.constant 5 : i32
    %c8_i32_54 = arith.constant 8 : i32
    %145 = arith.muli %c5_i32, %c8_i32_54 : i32
    %146 = tpu.assume_multiple %145, 8 : i32
    %147 = arith.index_cast %146 : i32 to index
    %c0_55 = arith.constant 0 : index
    %148 = vector.load %arg9[%147, %c0_55] : memref<64x512xf32, #tpu.memory_space<vmem>>, vector<8x512xf32>
    %c0_56 = arith.constant 0 : index
    %c0_57 = arith.constant 0 : index
    %149 = vector.load %arg3[%c0_56, %c0_57] : memref<128x512xf32, #tpu.memory_space<vmem>>, vector<128x512xf32>
    %cst_58 = arith.constant dense<0.000000e+00> : vector<8x512xf32>
    %150 = tpu.matmul %142, %149, %cst_58 {dimension_numbers = #tpu.dot_dimension_numbers<[1], [0], [0], [1], [0, 0, 1, 1], [], []>} : vector<8x128xf32>, vector<128x512xf32>, vector<8x512xf32> -> vector<8x512xf32>
    %151 = arith.addf %148, %150 : vector<8x512xf32>
    %152 = vector.extract_strided_slice %151 {offsets = [0, 0], sizes = [8, 384], strides = [1, 1]} : vector<8x512xf32> to vector<8x384xf32>
    %cst_59 = arith.constant 5.000000e-01 : f32
    %153 = vector.broadcast %cst_59 : f32 to vector<8x384xf32>
    %154 = arith.mulf %153, %152 : vector<8x384xf32>
    %155 = math.tanh %154 : vector<8x384xf32>
    %cst_60 = arith.constant 1.000000e+00 : f32
    %156 = vector.broadcast %cst_60 : f32 to vector<8x384xf32>
    %157 = arith.addf %155, %156 : vector<8x384xf32>
    %cst_61 = arith.constant 5.000000e-01 : f32
    %158 = vector.broadcast %cst_61 : f32 to vector<8x384xf32>
    %159 = arith.mulf %158, %157 : vector<8x384xf32>
    %160 = vector.extract_strided_slice %159 {offsets = [0, 0], sizes = [8, 128], strides = [1, 1]} : vector<8x384xf32> to vector<8x128xf32>
    %161 = vector.extract_strided_slice %159 {offsets = [0, 128], sizes = [8, 128], strides = [1, 1]} : vector<8x384xf32> to vector<8x128xf32>
    %162 = vector.extract_strided_slice %159 {offsets = [0, 256], sizes = [8, 128], strides = [1, 1]} : vector<8x384xf32> to vector<8x128xf32>
    %163 = vector.extract_strided_slice %151 {offsets = [0, 384], sizes = [8, 128], strides = [1, 1]} : vector<8x512xf32> to vector<8x128xf32>
    %164 = math.tanh %163 : vector<8x128xf32>
    %165 = arith.mulf %161, %140 : vector<8x128xf32>
    %166 = arith.mulf %160, %164 : vector<8x128xf32>
    %167 = arith.addf %165, %166 : vector<8x128xf32>
    %168 = math.tanh %167 : vector<8x128xf32>
    %169 = arith.mulf %162, %168 : vector<8x128xf32>
    %170 = arith.index_cast %146 : i32 to index
    %c0_62 = arith.constant 0 : index
    %171 = vector.load %arg11[%170, %c0_62] : memref<64x128xf32, #tpu.memory_space<vmem>>, vector<8x128xf32>
    tpu.vector_store %arg11[%170, %c0_62], %169 {strides = array<i32>} : memref<64x128xf32, #tpu.memory_space<vmem>>, vector<8x128xf32>,
    %c6_i32 = arith.constant 6 : i32
    %c8_i32_63 = arith.constant 8 : i32
    %172 = arith.muli %c6_i32, %c8_i32_63 : i32
    %173 = tpu.assume_multiple %172, 8 : i32
    %174 = arith.index_cast %173 : i32 to index
    %c0_64 = arith.constant 0 : index
    %175 = vector.load %arg9[%174, %c0_64] : memref<64x512xf32, #tpu.memory_space<vmem>>, vector<8x512xf32>
    %c0_65 = arith.constant 0 : index
    %c0_66 = arith.constant 0 : index
    %176 = vector.load %arg3[%c0_65, %c0_66] : memref<128x512xf32, #tpu.memory_space<vmem>>, vector<128x512xf32>
    %cst_67 = arith.constant dense<0.000000e+00> : vector<8x512xf32>
    %177 = tpu.matmul %169, %176, %cst_67 {dimension_numbers = #tpu.dot_dimension_numbers<[1], [0], [0], [1], [0, 0, 1, 1], [], []>} : vector<8x128xf32>, vector<128x512xf32>, vector<8x512xf32> -> vector<8x512xf32>
    %178 = arith.addf %175, %177 : vector<8x512xf32>
    %179 = vector.extract_strided_slice %178 {offsets = [0, 0], sizes = [8, 384], strides = [1, 1]} : vector<8x512xf32> to vector<8x384xf32>
    %cst_68 = arith.constant 5.000000e-01 : f32
    %180 = vector.broadcast %cst_68 : f32 to vector<8x384xf32>
    %181 = arith.mulf %180, %179 : vector<8x384xf32>
    %182 = math.tanh %181 : vector<8x384xf32>
    %cst_69 = arith.constant 1.000000e+00 : f32
    %183 = vector.broadcast %cst_69 : f32 to vector<8x384xf32>
    %184 = arith.addf %182, %183 : vector<8x384xf32>
    %cst_70 = arith.constant 5.000000e-01 : f32
    %185 = vector.broadcast %cst_70 : f32 to vector<8x384xf32>
    %186 = arith.mulf %185, %184 : vector<8x384xf32>
    %187 = vector.extract_strided_slice %186 {offsets = [0, 0], sizes = [8, 128], strides = [1, 1]} : vector<8x384xf32> to vector<8x128xf32>
    %188 = vector.extract_strided_slice %186 {offsets = [0, 128], sizes = [8, 128], strides = [1, 1]} : vector<8x384xf32> to vector<8x128xf32>
    %189 = vector.extract_strided_slice %186 {offsets = [0, 256], sizes = [8, 128], strides = [1, 1]} : vector<8x384xf32> to vector<8x128xf32>
    %190 = vector.extract_strided_slice %178 {offsets = [0, 384], sizes = [8, 128], strides = [1, 1]} : vector<8x512xf32> to vector<8x128xf32>
    %191 = math.tanh %190 : vector<8x128xf32>
    %192 = arith.mulf %188, %167 : vector<8x128xf32>
    %193 = arith.mulf %187, %191 : vector<8x128xf32>
    %194 = arith.addf %192, %193 : vector<8x128xf32>
    %195 = math.tanh %194 : vector<8x128xf32>
    %196 = arith.mulf %189, %195 : vector<8x128xf32>
    %197 = arith.index_cast %173 : i32 to index
    %c0_71 = arith.constant 0 : index
    %198 = vector.load %arg11[%197, %c0_71] : memref<64x128xf32, #tpu.memory_space<vmem>>, vector<8x128xf32>
    tpu.vector_store %arg11[%197, %c0_71], %196 {strides = array<i32>} : memref<64x128xf32, #tpu.memory_space<vmem>>, vector<8x128xf32>,
    %c7_i32 = arith.constant 7 : i32
    %c8_i32_72 = arith.constant 8 : i32
    %199 = arith.muli %c7_i32, %c8_i32_72 : i32
    %200 = tpu.assume_multiple %199, 8 : i32
    %201 = arith.index_cast %200 : i32 to index
    %c0_73 = arith.constant 0 : index
    %202 = vector.load %arg9[%201, %c0_73] : memref<64x512xf32, #tpu.memory_space<vmem>>, vector<8x512xf32>
    %c0_74 = arith.constant 0 : index
    %c0_75 = arith.constant 0 : index
    %203 = vector.load %arg3[%c0_74, %c0_75] : memref<128x512xf32, #tpu.memory_space<vmem>>, vector<128x512xf32>
    %cst_76 = arith.constant dense<0.000000e+00> : vector<8x512xf32>
    %204 = tpu.matmul %196, %203, %cst_76 {dimension_numbers = #tpu.dot_dimension_numbers<[1], [0], [0], [1], [0, 0, 1, 1], [], []>} : vector<8x128xf32>, vector<128x512xf32>, vector<8x512xf32> -> vector<8x512xf32>
    %205 = arith.addf %202, %204 : vector<8x512xf32>
    %206 = vector.extract_strided_slice %205 {offsets = [0, 0], sizes = [8, 384], strides = [1, 1]} : vector<8x512xf32> to vector<8x384xf32>
    %cst_77 = arith.constant 5.000000e-01 : f32
    %207 = vector.broadcast %cst_77 : f32 to vector<8x384xf32>
    %208 = arith.mulf %207, %206 : vector<8x384xf32>
    %209 = math.tanh %208 : vector<8x384xf32>
    %cst_78 = arith.constant 1.000000e+00 : f32
    %210 = vector.broadcast %cst_78 : f32 to vector<8x384xf32>
    %211 = arith.addf %209, %210 : vector<8x384xf32>
    %cst_79 = arith.constant 5.000000e-01 : f32
    %212 = vector.broadcast %cst_79 : f32 to vector<8x384xf32>
    %213 = arith.mulf %212, %211 : vector<8x384xf32>
    %214 = vector.extract_strided_slice %213 {offsets = [0, 0], sizes = [8, 128], strides = [1, 1]} : vector<8x384xf32> to vector<8x128xf32>
    %215 = vector.extract_strided_slice %213 {offsets = [0, 128], sizes = [8, 128], strides = [1, 1]} : vector<8x384xf32> to vector<8x128xf32>
    %216 = vector.extract_strided_slice %213 {offsets = [0, 256], sizes = [8, 128], strides = [1, 1]} : vector<8x384xf32> to vector<8x128xf32>
    %217 = vector.extract_strided_slice %205 {offsets = [0, 384], sizes = [8, 128], strides = [1, 1]} : vector<8x512xf32> to vector<8x128xf32>
    %218 = math.tanh %217 : vector<8x128xf32>
    %219 = arith.mulf %215, %194 : vector<8x128xf32>
    %220 = arith.mulf %214, %218 : vector<8x128xf32>
    %221 = arith.addf %219, %220 : vector<8x128xf32>
    %222 = math.tanh %221 : vector<8x128xf32>
    %223 = arith.mulf %216, %222 : vector<8x128xf32>
    %224 = arith.index_cast %200 : i32 to index
    %c0_80 = arith.constant 0 : index
    %225 = vector.load %arg11[%224, %c0_80] : memref<64x128xf32, #tpu.memory_space<vmem>>, vector<8x128xf32>
    tpu.vector_store %arg11[%224, %c0_80], %223 {strides = array<i32>} : memref<64x128xf32, #tpu.memory_space<vmem>>, vector<8x128xf32>,
    %c8_i32_81 = arith.constant 8 : i32
    %c0_82 = arith.constant 0 : index
    %c0_83 = arith.constant 0 : index
    %226 = vector.load %arg11[%c0_82, %c0_83] : memref<64x128xf32, #tpu.memory_space<vmem>>, vector<64x128xf32>
    %c0_84 = arith.constant 0 : index
    %c0_85 = arith.constant 0 : index
    %227 = vector.load %arg5[%c0_84, %c0_85] : memref<128x512xf32, #tpu.memory_space<vmem>>, vector<128x512xf32>
    %cst_86 = arith.constant dense<0.000000e+00> : vector<64x512xf32>
    %228 = tpu.matmul %226, %227, %cst_86 {dimension_numbers = #tpu.dot_dimension_numbers<[1], [0], [0], [1], [0, 0, 1, 1], [], []>} : vector<64x128xf32>, vector<128x512xf32>, vector<64x512xf32> -> vector<64x512xf32>
    %c0_87 = arith.constant 0 : index
    %c0_88 = arith.constant 0 : index
    %229 = vector.load %arg7[%c0_87, %c0_88] : memref<1x512xf32, #tpu.memory_space<vmem>>, vector<1x512xf32>
    %230 = vector.broadcast %229 : vector<1x512xf32> to vector<64x512xf32>
    %231 = arith.addf %228, %230 : vector<64x512xf32>
    %c0_89 = arith.constant 0 : index
    %c0_90 = arith.constant 0 : index
    %232 = vector.load %arg10[%c0_89, %c0_90] : memref<64x512xf32, #tpu.memory_space<vmem>>, vector<64x512xf32>
    tpu.vector_store %arg10[%c0_89, %c0_90], %231 {strides = array<i32>} : memref<64x512xf32, #tpu.memory_space<vmem>>, vector<64x512xf32>,
    %cst_91 = arith.constant 0.000000e+00 : f32
    %233 = vector.broadcast %cst_91 : f32 to vector<8x128xf32>
    %cst_92 = arith.constant 0.000000e+00 : f32
    %234 = vector.broadcast %cst_92 : f32 to vector<8x128xf32>
    %c0_i32_93 = arith.constant 0 : i32
    %c8_i32_94 = arith.constant 8 : i32
    %235 = arith.muli %c0_i32_93, %c8_i32_94 : i32
    %236 = tpu.assume_multiple %235, 8 : i32
    %237 = arith.index_cast %236 : i32 to index
    %c0_95 = arith.constant 0 : index
    %238 = vector.load %arg10[%237, %c0_95] : memref<64x512xf32, #tpu.memory_space<vmem>>, vector<8x512xf32>
    %c0_96 = arith.constant 0 : index
    %c0_97 = arith.constant 0 : index
    %239 = vector.load %arg6[%c0_96, %c0_97] : memref<128x512xf32, #tpu.memory_space<vmem>>, vector<128x512xf32>
    %cst_98 = arith.constant dense<0.000000e+00> : vector<8x512xf32>
    %240 = tpu.matmul %233, %239, %cst_98 {dimension_numbers = #tpu.dot_dimension_numbers<[1], [0], [0], [1], [0, 0, 1, 1], [], []>} : vector<8x128xf32>, vector<128x512xf32>, vector<8x512xf32> -> vector<8x512xf32>
    %241 = arith.addf %238, %240 : vector<8x512xf32>
    %242 = vector.extract_strided_slice %241 {offsets = [0, 0], sizes = [8, 384], strides = [1, 1]} : vector<8x512xf32> to vector<8x384xf32>
    %cst_99 = arith.constant 5.000000e-01 : f32
    %243 = vector.broadcast %cst_99 : f32 to vector<8x384xf32>
    %244 = arith.mulf %243, %242 : vector<8x384xf32>
    %245 = math.tanh %244 : vector<8x384xf32>
    %cst_100 = arith.constant 1.000000e+00 : f32
    %246 = vector.broadcast %cst_100 : f32 to vector<8x384xf32>
    %247 = arith.addf %245, %246 : vector<8x384xf32>
    %cst_101 = arith.constant 5.000000e-01 : f32
    %248 = vector.broadcast %cst_101 : f32 to vector<8x384xf32>
    %249 = arith.mulf %248, %247 : vector<8x384xf32>
    %250 = vector.extract_strided_slice %249 {offsets = [0, 0], sizes = [8, 128], strides = [1, 1]} : vector<8x384xf32> to vector<8x128xf32>
    %251 = vector.extract_strided_slice %249 {offsets = [0, 128], sizes = [8, 128], strides = [1, 1]} : vector<8x384xf32> to vector<8x128xf32>
    %252 = vector.extract_strided_slice %249 {offsets = [0, 256], sizes = [8, 128], strides = [1, 1]} : vector<8x384xf32> to vector<8x128xf32>
    %253 = vector.extract_strided_slice %241 {offsets = [0, 384], sizes = [8, 128], strides = [1, 1]} : vector<8x512xf32> to vector<8x128xf32>
    %254 = math.tanh %253 : vector<8x128xf32>
    %255 = arith.mulf %251, %234 : vector<8x128xf32>
    %256 = arith.mulf %250, %254 : vector<8x128xf32>
    %257 = arith.addf %255, %256 : vector<8x128xf32>
    %258 = math.tanh %257 : vector<8x128xf32>
    %259 = arith.mulf %252, %258 : vector<8x128xf32>
    %c1_i32_102 = arith.constant 1 : i32
    %c8_i32_103 = arith.constant 8 : i32
    %260 = arith.muli %c1_i32_102, %c8_i32_103 : i32
    %261 = tpu.assume_multiple %260, 8 : i32
    %262 = arith.index_cast %261 : i32 to index
    %c0_104 = arith.constant 0 : index
    %263 = vector.load %arg10[%262, %c0_104] : memref<64x512xf32, #tpu.memory_space<vmem>>, vector<8x512xf32>
    %c0_105 = arith.constant 0 : index
    %c0_106 = arith.constant 0 : index
    %264 = vector.load %arg6[%c0_105, %c0_106] : memref<128x512xf32, #tpu.memory_space<vmem>>, vector<128x512xf32>
    %cst_107 = arith.constant dense<0.000000e+00> : vector<8x512xf32>
    %265 = tpu.matmul %259, %264, %cst_107 {dimension_numbers = #tpu.dot_dimension_numbers<[1], [0], [0], [1], [0, 0, 1, 1], [], []>} : vector<8x128xf32>, vector<128x512xf32>, vector<8x512xf32> -> vector<8x512xf32>
    %266 = arith.addf %263, %265 : vector<8x512xf32>
    %267 = vector.extract_strided_slice %266 {offsets = [0, 0], sizes = [8, 384], strides = [1, 1]} : vector<8x512xf32> to vector<8x384xf32>
    %cst_108 = arith.constant 5.000000e-01 : f32
    %268 = vector.broadcast %cst_108 : f32 to vector<8x384xf32>
    %269 = arith.mulf %268, %267 : vector<8x384xf32>
    %270 = math.tanh %269 : vector<8x384xf32>
    %cst_109 = arith.constant 1.000000e+00 : f32
    %271 = vector.broadcast %cst_109 : f32 to vector<8x384xf32>
    %272 = arith.addf %270, %271 : vector<8x384xf32>
    %cst_110 = arith.constant 5.000000e-01 : f32
    %273 = vector.broadcast %cst_110 : f32 to vector<8x384xf32>
    %274 = arith.mulf %273, %272 : vector<8x384xf32>
    %275 = vector.extract_strided_slice %274 {offsets = [0, 0], sizes = [8, 128], strides = [1, 1]} : vector<8x384xf32> to vector<8x128xf32>
    %276 = vector.extract_strided_slice %274 {offsets = [0, 128], sizes = [8, 128], strides = [1, 1]} : vector<8x384xf32> to vector<8x128xf32>
    %277 = vector.extract_strided_slice %274 {offsets = [0, 256], sizes = [8, 128], strides = [1, 1]} : vector<8x384xf32> to vector<8x128xf32>
    %278 = vector.extract_strided_slice %266 {offsets = [0, 384], sizes = [8, 128], strides = [1, 1]} : vector<8x512xf32> to vector<8x128xf32>
    %279 = math.tanh %278 : vector<8x128xf32>
    %280 = arith.mulf %276, %257 : vector<8x128xf32>
    %281 = arith.mulf %275, %279 : vector<8x128xf32>
    %282 = arith.addf %280, %281 : vector<8x128xf32>
    %283 = math.tanh %282 : vector<8x128xf32>
    %284 = arith.mulf %277, %283 : vector<8x128xf32>
    %c2_i32_111 = arith.constant 2 : i32
    %c8_i32_112 = arith.constant 8 : i32
    %285 = arith.muli %c2_i32_111, %c8_i32_112 : i32
    %286 = tpu.assume_multiple %285, 8 : i32
    %287 = arith.index_cast %286 : i32 to index
    %c0_113 = arith.constant 0 : index
    %288 = vector.load %arg10[%287, %c0_113] : memref<64x512xf32, #tpu.memory_space<vmem>>, vector<8x512xf32>
    %c0_114 = arith.constant 0 : index
    %c0_115 = arith.constant 0 : index
    %289 = vector.load %arg6[%c0_114, %c0_115] : memref<128x512xf32, #tpu.memory_space<vmem>>, vector<128x512xf32>
    %cst_116 = arith.constant dense<0.000000e+00> : vector<8x512xf32>
    %290 = tpu.matmul %284, %289, %cst_116 {dimension_numbers = #tpu.dot_dimension_numbers<[1], [0], [0], [1], [0, 0, 1, 1], [], []>} : vector<8x128xf32>, vector<128x512xf32>, vector<8x512xf32> -> vector<8x512xf32>
    %291 = arith.addf %288, %290 : vector<8x512xf32>
    %292 = vector.extract_strided_slice %291 {offsets = [0, 0], sizes = [8, 384], strides = [1, 1]} : vector<8x512xf32> to vector<8x384xf32>
    %cst_117 = arith.constant 5.000000e-01 : f32
    %293 = vector.broadcast %cst_117 : f32 to vector<8x384xf32>
    %294 = arith.mulf %293, %292 : vector<8x384xf32>
    %295 = math.tanh %294 : vector<8x384xf32>
    %cst_118 = arith.constant 1.000000e+00 : f32
    %296 = vector.broadcast %cst_118 : f32 to vector<8x384xf32>
    %297 = arith.addf %295, %296 : vector<8x384xf32>
    %cst_119 = arith.constant 5.000000e-01 : f32
    %298 = vector.broadcast %cst_119 : f32 to vector<8x384xf32>
    %299 = arith.mulf %298, %297 : vector<8x384xf32>
    %300 = vector.extract_strided_slice %299 {offsets = [0, 0], sizes = [8, 128], strides = [1, 1]} : vector<8x384xf32> to vector<8x128xf32>
    %301 = vector.extract_strided_slice %299 {offsets = [0, 128], sizes = [8, 128], strides = [1, 1]} : vector<8x384xf32> to vector<8x128xf32>
    %302 = vector.extract_strided_slice %299 {offsets = [0, 256], sizes = [8, 128], strides = [1, 1]} : vector<8x384xf32> to vector<8x128xf32>
    %303 = vector.extract_strided_slice %291 {offsets = [0, 384], sizes = [8, 128], strides = [1, 1]} : vector<8x512xf32> to vector<8x128xf32>
    %304 = math.tanh %303 : vector<8x128xf32>
    %305 = arith.mulf %301, %282 : vector<8x128xf32>
    %306 = arith.mulf %300, %304 : vector<8x128xf32>
    %307 = arith.addf %305, %306 : vector<8x128xf32>
    %308 = math.tanh %307 : vector<8x128xf32>
    %309 = arith.mulf %302, %308 : vector<8x128xf32>
    %c3_i32_120 = arith.constant 3 : i32
    %c8_i32_121 = arith.constant 8 : i32
    %310 = arith.muli %c3_i32_120, %c8_i32_121 : i32
    %311 = tpu.assume_multiple %310, 8 : i32
    %312 = arith.index_cast %311 : i32 to index
    %c0_122 = arith.constant 0 : index
    %313 = vector.load %arg10[%312, %c0_122] : memref<64x512xf32, #tpu.memory_space<vmem>>, vector<8x512xf32>
    %c0_123 = arith.constant 0 : index
    %c0_124 = arith.constant 0 : index
    %314 = vector.load %arg6[%c0_123, %c0_124] : memref<128x512xf32, #tpu.memory_space<vmem>>, vector<128x512xf32>
    %cst_125 = arith.constant dense<0.000000e+00> : vector<8x512xf32>
    %315 = tpu.matmul %309, %314, %cst_125 {dimension_numbers = #tpu.dot_dimension_numbers<[1], [0], [0], [1], [0, 0, 1, 1], [], []>} : vector<8x128xf32>, vector<128x512xf32>, vector<8x512xf32> -> vector<8x512xf32>
    %316 = arith.addf %313, %315 : vector<8x512xf32>
    %317 = vector.extract_strided_slice %316 {offsets = [0, 0], sizes = [8, 384], strides = [1, 1]} : vector<8x512xf32> to vector<8x384xf32>
    %cst_126 = arith.constant 5.000000e-01 : f32
    %318 = vector.broadcast %cst_126 : f32 to vector<8x384xf32>
    %319 = arith.mulf %318, %317 : vector<8x384xf32>
    %320 = math.tanh %319 : vector<8x384xf32>
    %cst_127 = arith.constant 1.000000e+00 : f32
    %321 = vector.broadcast %cst_127 : f32 to vector<8x384xf32>
    %322 = arith.addf %320, %321 : vector<8x384xf32>
    %cst_128 = arith.constant 5.000000e-01 : f32
    %323 = vector.broadcast %cst_128 : f32 to vector<8x384xf32>
    %324 = arith.mulf %323, %322 : vector<8x384xf32>
    %325 = vector.extract_strided_slice %324 {offsets = [0, 0], sizes = [8, 128], strides = [1, 1]} : vector<8x384xf32> to vector<8x128xf32>
    %326 = vector.extract_strided_slice %324 {offsets = [0, 128], sizes = [8, 128], strides = [1, 1]} : vector<8x384xf32> to vector<8x128xf32>
    %327 = vector.extract_strided_slice %324 {offsets = [0, 256], sizes = [8, 128], strides = [1, 1]} : vector<8x384xf32> to vector<8x128xf32>
    %328 = vector.extract_strided_slice %316 {offsets = [0, 384], sizes = [8, 128], strides = [1, 1]} : vector<8x512xf32> to vector<8x128xf32>
    %329 = math.tanh %328 : vector<8x128xf32>
    %330 = arith.mulf %326, %307 : vector<8x128xf32>
    %331 = arith.mulf %325, %329 : vector<8x128xf32>
    %332 = arith.addf %330, %331 : vector<8x128xf32>
    %333 = math.tanh %332 : vector<8x128xf32>
    %334 = arith.mulf %327, %333 : vector<8x128xf32>
    %c4_i32_129 = arith.constant 4 : i32
    %c8_i32_130 = arith.constant 8 : i32
    %335 = arith.muli %c4_i32_129, %c8_i32_130 : i32
    %336 = tpu.assume_multiple %335, 8 : i32
    %337 = arith.index_cast %336 : i32 to index
    %c0_131 = arith.constant 0 : index
    %338 = vector.load %arg10[%337, %c0_131] : memref<64x512xf32, #tpu.memory_space<vmem>>, vector<8x512xf32>
    %c0_132 = arith.constant 0 : index
    %c0_133 = arith.constant 0 : index
    %339 = vector.load %arg6[%c0_132, %c0_133] : memref<128x512xf32, #tpu.memory_space<vmem>>, vector<128x512xf32>
    %cst_134 = arith.constant dense<0.000000e+00> : vector<8x512xf32>
    %340 = tpu.matmul %334, %339, %cst_134 {dimension_numbers = #tpu.dot_dimension_numbers<[1], [0], [0], [1], [0, 0, 1, 1], [], []>} : vector<8x128xf32>, vector<128x512xf32>, vector<8x512xf32> -> vector<8x512xf32>
    %341 = arith.addf %338, %340 : vector<8x512xf32>
    %342 = vector.extract_strided_slice %341 {offsets = [0, 0], sizes = [8, 384], strides = [1, 1]} : vector<8x512xf32> to vector<8x384xf32>
    %cst_135 = arith.constant 5.000000e-01 : f32
    %343 = vector.broadcast %cst_135 : f32 to vector<8x384xf32>
    %344 = arith.mulf %343, %342 : vector<8x384xf32>
    %345 = math.tanh %344 : vector<8x384xf32>
    %cst_136 = arith.constant 1.000000e+00 : f32
    %346 = vector.broadcast %cst_136 : f32 to vector<8x384xf32>
    %347 = arith.addf %345, %346 : vector<8x384xf32>
    %cst_137 = arith.constant 5.000000e-01 : f32
    %348 = vector.broadcast %cst_137 : f32 to vector<8x384xf32>
    %349 = arith.mulf %348, %347 : vector<8x384xf32>
    %350 = vector.extract_strided_slice %349 {offsets = [0, 0], sizes = [8, 128], strides = [1, 1]} : vector<8x384xf32> to vector<8x128xf32>
    %351 = vector.extract_strided_slice %349 {offsets = [0, 128], sizes = [8, 128], strides = [1, 1]} : vector<8x384xf32> to vector<8x128xf32>
    %352 = vector.extract_strided_slice %349 {offsets = [0, 256], sizes = [8, 128], strides = [1, 1]} : vector<8x384xf32> to vector<8x128xf32>
    %353 = vector.extract_strided_slice %341 {offsets = [0, 384], sizes = [8, 128], strides = [1, 1]} : vector<8x512xf32> to vector<8x128xf32>
    %354 = math.tanh %353 : vector<8x128xf32>
    %355 = arith.mulf %351, %332 : vector<8x128xf32>
    %356 = arith.mulf %350, %354 : vector<8x128xf32>
    %357 = arith.addf %355, %356 : vector<8x128xf32>
    %358 = math.tanh %357 : vector<8x128xf32>
    %359 = arith.mulf %352, %358 : vector<8x128xf32>
    %c5_i32_138 = arith.constant 5 : i32
    %c8_i32_139 = arith.constant 8 : i32
    %360 = arith.muli %c5_i32_138, %c8_i32_139 : i32
    %361 = tpu.assume_multiple %360, 8 : i32
    %362 = arith.index_cast %361 : i32 to index
    %c0_140 = arith.constant 0 : index
    %363 = vector.load %arg10[%362, %c0_140] : memref<64x512xf32, #tpu.memory_space<vmem>>, vector<8x512xf32>
    %c0_141 = arith.constant 0 : index
    %c0_142 = arith.constant 0 : index
    %364 = vector.load %arg6[%c0_141, %c0_142] : memref<128x512xf32, #tpu.memory_space<vmem>>, vector<128x512xf32>
    %cst_143 = arith.constant dense<0.000000e+00> : vector<8x512xf32>
    %365 = tpu.matmul %359, %364, %cst_143 {dimension_numbers = #tpu.dot_dimension_numbers<[1], [0], [0], [1], [0, 0, 1, 1], [], []>} : vector<8x128xf32>, vector<128x512xf32>, vector<8x512xf32> -> vector<8x512xf32>
    %366 = arith.addf %363, %365 : vector<8x512xf32>
    %367 = vector.extract_strided_slice %366 {offsets = [0, 0], sizes = [8, 384], strides = [1, 1]} : vector<8x512xf32> to vector<8x384xf32>
    %cst_144 = arith.constant 5.000000e-01 : f32
    %368 = vector.broadcast %cst_144 : f32 to vector<8x384xf32>
    %369 = arith.mulf %368, %367 : vector<8x384xf32>
    %370 = math.tanh %369 : vector<8x384xf32>
    %cst_145 = arith.constant 1.000000e+00 : f32
    %371 = vector.broadcast %cst_145 : f32 to vector<8x384xf32>
    %372 = arith.addf %370, %371 : vector<8x384xf32>
    %cst_146 = arith.constant 5.000000e-01 : f32
    %373 = vector.broadcast %cst_146 : f32 to vector<8x384xf32>
    %374 = arith.mulf %373, %372 : vector<8x384xf32>
    %375 = vector.extract_strided_slice %374 {offsets = [0, 0], sizes = [8, 128], strides = [1, 1]} : vector<8x384xf32> to vector<8x128xf32>
    %376 = vector.extract_strided_slice %374 {offsets = [0, 128], sizes = [8, 128], strides = [1, 1]} : vector<8x384xf32> to vector<8x128xf32>
    %377 = vector.extract_strided_slice %374 {offsets = [0, 256], sizes = [8, 128], strides = [1, 1]} : vector<8x384xf32> to vector<8x128xf32>
    %378 = vector.extract_strided_slice %366 {offsets = [0, 384], sizes = [8, 128], strides = [1, 1]} : vector<8x512xf32> to vector<8x128xf32>
    %379 = math.tanh %378 : vector<8x128xf32>
    %380 = arith.mulf %376, %357 : vector<8x128xf32>
    %381 = arith.mulf %375, %379 : vector<8x128xf32>
    %382 = arith.addf %380, %381 : vector<8x128xf32>
    %383 = math.tanh %382 : vector<8x128xf32>
    %384 = arith.mulf %377, %383 : vector<8x128xf32>
    %c6_i32_147 = arith.constant 6 : i32
    %c8_i32_148 = arith.constant 8 : i32
    %385 = arith.muli %c6_i32_147, %c8_i32_148 : i32
    %386 = tpu.assume_multiple %385, 8 : i32
    %387 = arith.index_cast %386 : i32 to index
    %c0_149 = arith.constant 0 : index
    %388 = vector.load %arg10[%387, %c0_149] : memref<64x512xf32, #tpu.memory_space<vmem>>, vector<8x512xf32>
    %c0_150 = arith.constant 0 : index
    %c0_151 = arith.constant 0 : index
    %389 = vector.load %arg6[%c0_150, %c0_151] : memref<128x512xf32, #tpu.memory_space<vmem>>, vector<128x512xf32>
    %cst_152 = arith.constant dense<0.000000e+00> : vector<8x512xf32>
    %390 = tpu.matmul %384, %389, %cst_152 {dimension_numbers = #tpu.dot_dimension_numbers<[1], [0], [0], [1], [0, 0, 1, 1], [], []>} : vector<8x128xf32>, vector<128x512xf32>, vector<8x512xf32> -> vector<8x512xf32>
    %391 = arith.addf %388, %390 : vector<8x512xf32>
    %392 = vector.extract_strided_slice %391 {offsets = [0, 0], sizes = [8, 384], strides = [1, 1]} : vector<8x512xf32> to vector<8x384xf32>
    %cst_153 = arith.constant 5.000000e-01 : f32
    %393 = vector.broadcast %cst_153 : f32 to vector<8x384xf32>
    %394 = arith.mulf %393, %392 : vector<8x384xf32>
    %395 = math.tanh %394 : vector<8x384xf32>
    %cst_154 = arith.constant 1.000000e+00 : f32
    %396 = vector.broadcast %cst_154 : f32 to vector<8x384xf32>
    %397 = arith.addf %395, %396 : vector<8x384xf32>
    %cst_155 = arith.constant 5.000000e-01 : f32
    %398 = vector.broadcast %cst_155 : f32 to vector<8x384xf32>
    %399 = arith.mulf %398, %397 : vector<8x384xf32>
    %400 = vector.extract_strided_slice %399 {offsets = [0, 0], sizes = [8, 128], strides = [1, 1]} : vector<8x384xf32> to vector<8x128xf32>
    %401 = vector.extract_strided_slice %399 {offsets = [0, 128], sizes = [8, 128], strides = [1, 1]} : vector<8x384xf32> to vector<8x128xf32>
    %402 = vector.extract_strided_slice %399 {offsets = [0, 256], sizes = [8, 128], strides = [1, 1]} : vector<8x384xf32> to vector<8x128xf32>
    %403 = vector.extract_strided_slice %391 {offsets = [0, 384], sizes = [8, 128], strides = [1, 1]} : vector<8x512xf32> to vector<8x128xf32>
    %404 = math.tanh %403 : vector<8x128xf32>
    %405 = arith.mulf %401, %382 : vector<8x128xf32>
    %406 = arith.mulf %400, %404 : vector<8x128xf32>
    %407 = arith.addf %405, %406 : vector<8x128xf32>
    %408 = math.tanh %407 : vector<8x128xf32>
    %409 = arith.mulf %402, %408 : vector<8x128xf32>
    %c7_i32_156 = arith.constant 7 : i32
    %c8_i32_157 = arith.constant 8 : i32
    %410 = arith.muli %c7_i32_156, %c8_i32_157 : i32
    %411 = tpu.assume_multiple %410, 8 : i32
    %412 = arith.index_cast %411 : i32 to index
    %c0_158 = arith.constant 0 : index
    %413 = vector.load %arg10[%412, %c0_158] : memref<64x512xf32, #tpu.memory_space<vmem>>, vector<8x512xf32>
    %c0_159 = arith.constant 0 : index
    %c0_160 = arith.constant 0 : index
    %414 = vector.load %arg6[%c0_159, %c0_160] : memref<128x512xf32, #tpu.memory_space<vmem>>, vector<128x512xf32>
    %cst_161 = arith.constant dense<0.000000e+00> : vector<8x512xf32>
    %415 = tpu.matmul %409, %414, %cst_161 {dimension_numbers = #tpu.dot_dimension_numbers<[1], [0], [0], [1], [0, 0, 1, 1], [], []>} : vector<8x128xf32>, vector<128x512xf32>, vector<8x512xf32> -> vector<8x512xf32>
    %416 = arith.addf %413, %415 : vector<8x512xf32>
    %417 = vector.extract_strided_slice %416 {offsets = [0, 0], sizes = [8, 384], strides = [1, 1]} : vector<8x512xf32> to vector<8x384xf32>
    %cst_162 = arith.constant 5.000000e-01 : f32
    %418 = vector.broadcast %cst_162 : f32 to vector<8x384xf32>
    %419 = arith.mulf %418, %417 : vector<8x384xf32>
    %420 = math.tanh %419 : vector<8x384xf32>
    %cst_163 = arith.constant 1.000000e+00 : f32
    %421 = vector.broadcast %cst_163 : f32 to vector<8x384xf32>
    %422 = arith.addf %420, %421 : vector<8x384xf32>
    %cst_164 = arith.constant 5.000000e-01 : f32
    %423 = vector.broadcast %cst_164 : f32 to vector<8x384xf32>
    %424 = arith.mulf %423, %422 : vector<8x384xf32>
    %425 = vector.extract_strided_slice %424 {offsets = [0, 0], sizes = [8, 128], strides = [1, 1]} : vector<8x384xf32> to vector<8x128xf32>
    %426 = vector.extract_strided_slice %424 {offsets = [0, 128], sizes = [8, 128], strides = [1, 1]} : vector<8x384xf32> to vector<8x128xf32>
    %427 = vector.extract_strided_slice %424 {offsets = [0, 256], sizes = [8, 128], strides = [1, 1]} : vector<8x384xf32> to vector<8x128xf32>
    %428 = vector.extract_strided_slice %416 {offsets = [0, 384], sizes = [8, 128], strides = [1, 1]} : vector<8x512xf32> to vector<8x128xf32>
    %429 = math.tanh %428 : vector<8x128xf32>
    %430 = arith.mulf %426, %407 : vector<8x128xf32>
    %431 = arith.mulf %425, %429 : vector<8x128xf32>
    %432 = arith.addf %430, %431 : vector<8x128xf32>
    %433 = math.tanh %432 : vector<8x128xf32>
    %434 = arith.mulf %427, %433 : vector<8x128xf32>
    %c8_i32_165 = arith.constant 8 : i32
    %c0_166 = arith.constant 0 : index
    %c0_167 = arith.constant 0 : index
    %435 = vector.load %arg8[%c0_166, %c0_167] : memref<8x128xf32, #tpu.memory_space<vmem>>, vector<8x128xf32>
    tpu.vector_store %arg8[%c0_166, %c0_167], %434 {strides = array<i32>} : memref<8x128xf32, #tpu.memory_space<vmem>>, vector<8x128xf32>,
    return
  }
  func.func @transform_0(%arg0: i32) -> (i32, i32, i32) {
    %c0_i32 = arith.constant 0 : i32
    %c0_i32_0 = arith.constant 0 : i32
    %c0_i32_1 = arith.constant 0 : i32
    return %c0_i32, %arg0, %c0_i32_0 : i32, i32, i32
  }
  func.func @transform_1(%arg0: i32) -> (i32, i32) {
    %c0_i32 = arith.constant 0 : i32
    %c0_i32_0 = arith.constant 0 : i32
    %c0_i32_1 = arith.constant 0 : i32
    return %c0_i32, %c0_i32_0 : i32, i32
  }
  func.func @transform_2(%arg0: i32) -> (i32, i32) {
    %c0_i32 = arith.constant 0 : i32
    %c0_i32_0 = arith.constant 0 : i32
    %c0_i32_1 = arith.constant 0 : i32
    return %c0_i32, %c0_i32_0 : i32, i32
  }
  func.func @transform_3(%arg0: i32) -> (i32, i32) {
    %c0_i32 = arith.constant 0 : i32
    %c0_i32_0 = arith.constant 0 : i32
    %c0_i32_1 = arith.constant 0 : i32
    return %c0_i32, %c0_i32_0 : i32, i32
  }
  func.func @transform_4(%arg0: i32) -> (i32, i32) {
    %c0_i32 = arith.constant 0 : i32
    %c0_i32_0 = arith.constant 0 : i32
    %c0_i32_1 = arith.constant 0 : i32
    return %c0_i32, %c0_i32_0 : i32, i32
  }
  func.func @transform_5(%arg0: i32) -> (i32, i32) {
    %c0_i32 = arith.constant 0 : i32
    %c0_i32_0 = arith.constant 0 : i32
    %c0_i32_1 = arith.constant 0 : i32
    return %c0_i32, %c0_i32_0 : i32, i32
  }
  func.func @transform_6(%arg0: i32) -> (i32, i32) {
    %c0_i32 = arith.constant 0 : i32
    %c0_i32_0 = arith.constant 0 : i32
    %c0_i32_1 = arith.constant 0 : i32
    return %c0_i32, %c0_i32_0 : i32, i32
  }
  func.func @transform_7(%arg0: i32) -> (i32, i32) {
    %c0_i32 = arith.constant 0 : i32
    %c0_i32_0 = arith.constant 0 : i32
    return %arg0, %c0_i32 : i32, i32
  }
}

</mosaic_0001>

<bundles_post_ra>
// kernel: tpu_custom_call.1
= control target key start
LH: loop header
LB: loop body
LE: loop exit
PB: predicated region body
PF: predicated region fallthrough
CT: control target
= control target key end

     0   :  { %12 = vsyncpa [#allocation6], 0  ;;  %s6505_s0 = inlined_call_operand.hbm [shape: f32[8,8,32], index: 0, kind: input, shape index: {}]   ;;  %s6506_s1 = inlined_call_operand.hbm [shape: f32[32,512], index: 1, kind: input, shape index: {}]   ;;  %s6507_s2 = inlined_call_operand.hbm [shape: f32[128,512], index: 2, kind: input, shape index: {}]   ;;  %s6508_s3 = inlined_call_operand.vmem [shape: f32[1,512], index: 3, kind: input, shape index: {}]   ;;  %s6509_s4 = inlined_call_operand.hbm [shape: f32[128,512], index: 4, kind: input, shape index: {}]   ;;  %s6510_s5 = inlined_call_operand.hbm [shape: f32[128,512], index: 5, kind: input, shape index: {}]   ;;  %s6511_s6 = inlined_call_operand.vmem [shape: f32[1,512], index: 6, kind: input, shape index: {}]   ;;  %s6512_s7 = inlined_call_operand.hbm [shape: f32[8,128], index: 7, kind: output, shape index: {}]  }
   0x1   :  { %13 = vsyncpa [#allocation9], 0 }
   0x2   :  { %14 = vsyncpa [#allocation12], 0 }
   0x3   :  { %15 = vsyncpa [#allocation7], 0  ;;  %s4506_s24 = smov [#allocation8]  }
   0x4   :  { %s33_s25 = sshll.u32 %s4506_s24, 4  ;;  %s34_s25 = int_to_ptr.vmem [resolvable:$true] %s33_s25 }
   0x5   :  { %s4386_s26 = scalar_lea.vmem %s34_s25, 2048  ;;  %p4391_p1 = scmp.lt.s32.totalorder %s34_s25, %s34_s25 }
   0x6   :  { %p4387_p0 = scmp.ne.s32.totalorder %s34_s25, %s4386_s26  ;;  %p4392_p2 = scmp.lt.s32.totalorder %s4386_s26, %s4386_s26 }
   0x8   :  { %p4393_p3 = por %p4392_p2, %p4391_p1 }
   0xa   :  { %p4394_p4 = pnand %p4393_p3, %p4387_p0 }
   0xc   :  { %4397 = shalt.err (!%p4394_p4)
}
   0xd   :  { %s4507_s27 = smov 512   ;;  %s4508_s28 = smov 32  }
   0xe   :  { %39 = dma.hbm_to_vmem [thread:$0]  %s6506_s1, 2048, %s34_s25, [#allocation9], %s4507_s27, %s4507_s27, %s4508_s28  }
   0xf   :  { %s4509_s8 = smov [#allocation11]   ;;  %s4510_s10 = smov [#allocation5]  }
  0x10   :  { %s59_s9 = sshll.u32 %s4509_s8, 4  ;;  %s21_s11 = sshll.u32 %s4510_s10, 4  ;;  %s60_s9 = int_to_ptr.vmem [resolvable:$true] %s59_s9  ;;  %s22_s11 = int_to_ptr.vmem [resolvable:$true] %s21_s11 }
  0x11   :  { %s4406_s12 = scalar_lea.vmem %s60_s9, 8192  ;;  %p4411_p6 = scmp.lt.s32.totalorder %s60_s9, %s60_s9 }
  0x12   :  { %p4407_p5 = scmp.ne.s32.totalorder %s60_s9, %s4406_s12  ;;  %p4412_p7 = scmp.lt.s32.totalorder %s4406_s12, %s4406_s12 }
  0x14   :  { %p4413_p8 = por %p4412_p7, %p4411_p6 }
  0x16   :  { %p4414_p9 = pnand %p4413_p8, %p4407_p5 }
  0x18   :  { %4417 = shalt.err (!%p4414_p9)
}
  0x19   :  { %65 = dma.hbm_to_vmem [thread:$0]  %s6509_s4, 8192, %s60_s9, [#allocation12], %s4507_s27, %s4507_s27, %s4508_s28  }
  0x1a   :  { %s4426_s1 = scalar_lea.vmem %s22_s11, 1024  ;;  %p4431_p11 = scmp.lt.s32.totalorder %s22_s11, %s22_s11 }
  0x1b   :  { %p4427_p10 = scmp.ne.s32.totalorder %s22_s11, %s4426_s1  ;;  %p4432_p12 = scmp.lt.s32.totalorder %s4426_s1, %s4426_s1 }
  0x1d   :  { %p4433_p13 = por %p4432_p12, %p4431_p11 }
  0x1f   :  { %p4434_p0 = pnand %p4433_p13, %p4427_p10 }
  0x21   :  { %4437 = shalt.err (!%p4434_p0)
}
  0x22   :  { %s4511_s15 = smov 128   ;;  %s4512_s16 = smov 8  }
  0x23   :  { %27 = dma.hbm_to_vmem [thread:$0]  %s6505_s0, 1024, %s22_s11, [#allocation6], %s4511_s15, %s4511_s15, %s4512_s16  }
  0x24   :  { %s4513_s19 = smov [#allocation10]   ;;  %s4514_s21 = smov [#allocation13]  }
  0x25   :  { %s45_s20 = sshll.u32 %s4513_s19, 4  ;;  %s71_s22 = sshll.u32 %s4514_s21, 4  ;;  %s46_s20 = int_to_ptr.vmem [resolvable:$true] %s45_s20  ;;  %s72_s22 = int_to_ptr.vmem [resolvable:$true] %s71_s22 }
  0x26   :  { %s4446_s4 = scalar_lea.vmem %s46_s20, 8192  ;;  %p4451_p2 = scmp.lt.s32.totalorder %s46_s20, %s46_s20 }
  0x27   :  { %p4447_p1 = scmp.ne.s32.totalorder %s46_s20, %s4446_s4  ;;  %p4452_p3 = scmp.lt.s32.totalorder %s4446_s4, %s4446_s4 }
  0x29   :  { %p4453_p4 = por %p4452_p3, %p4451_p2 }
  0x2b   :  { %p4454_p5 = pnand %p4453_p4, %p4447_p1 }
  0x2d   :  { %4457 = shalt.err (!%p4454_p5)
}
  0x2e   :  { %51 = dma.hbm_to_vmem [thread:$0]  %s6507_s2, 8192, %s46_s20, [#allocation9], %s4507_s27, %s4507_s27, %s4508_s28  }
  0x2f   :  { %s4466_s0 = scalar_lea.vmem %s72_s22, 8192  ;;  %p4471_p7 = scmp.lt.s32.totalorder %s72_s22, %s72_s22 }
  0x30   :  { %p4467_p6 = scmp.ne.s32.totalorder %s72_s22, %s4466_s0  ;;  %p4472_p8 = scmp.lt.s32.totalorder %s4466_s0, %s4466_s0 }
  0x32   :  { %p4473_p9 = por %p4472_p8, %p4471_p7 }
  0x34   :  { %p4474_p10 = pnand %p4473_p9, %p4467_p6 }
  0x36   :  { %4477 = shalt.err (!%p4474_p10)
}
  0x37   :  { %77 = dma.hbm_to_vmem [thread:$0]  %s6510_s5, 8192, %s72_s22, [#allocation12], %s4507_s27, %s4507_s27, %s4508_s28  }
  0x38   :  { %4498 = dma.done.wait [#allocation6], 1024  }
  0x39   :  { %4499 = vsyncadd [#allocation6], 4294966272 }
  0x3a   :  { %4500 = dma.done.wait [#allocation9], 10240  }
  0x3b   :  { %4501 = vsyncadd [#allocation9], 4294957056 }
  0x3c   :  { %4502 = dma.done.wait [#allocation12], 16384  }
  0x3d   :  { %4503 = vsyncadd [#allocation12], 4294950912  ;;  %v6513_v0 = vmov 0.0   ;;  %v116_v1 = vld [vmem:[#allocation8 + $0x68] sm:$0xff]  ;;  %v118_v2 = vld [vmem:[#allocation8 + $0x78] sm:$0xff]  ;;  %vm141_vm0 = vcmask 261120  }
  0x3e   :  { %230 = vmatprep.mubr.f32.mxu0 %v6513_v0  ;;  %343 = vmatprep.mubr.f32.mxu1 %v6513_v0  ;;  %v115_v3 = vld [vmem:[#allocation8 + $0x60] sm:$0xff]  ;;  %v117_v4 = vld [vmem:[#allocation8 + $0x70] sm:$0xff]  ;;  %v112_v5 = vld [vmem:[#allocation8 + $0x48] sm:$0xff] }
  0x3f   :  { %190 = vmatprep.subr.mxu0 %v116_v1  ;;  %303 = vmatprep.subr.mxu1 %v118_v2  ;;  %v114_v6 = vld [vmem:[#allocation8 + $0x58] sm:$0xff]  ;;  %v111_v7 = vld [vmem:[#allocation8 + $0x40] sm:$0xff]  ;;  %v113_v8 = vld [vmem:[#allocation8 + $0x50] sm:$0xff] }
  0x40   :  { %191 = vmatpush1.msra.mxu0 %v115_v3  ;;  %304 = vmatpush1.msra.mxu1 %v117_v4  ;;  %v108_v9 = vld [vmem:[#allocation8 + $0x28] sm:$0xff]  ;;  %v110_v10 = vld [vmem:[#allocation8 + $0x38] sm:$0xff]  ;;  %v107_v11 = vld [vmem:[#allocation8 + $0x20] sm:$0xff] }
  0x41   :  { %192 = vmatprep.subr.mxu0 %v112_v5  ;;  %305 = vmatprep.subr.mxu1 %v114_v6  ;;  %v109_v12 = vld [vmem:[#allocation8 + $0x30] sm:$0xff]  ;;  %v104_v13 = vld [vmem:[#allocation8 + $0x8] sm:$0xff]  ;;  %v106_v14 = vld [vmem:[#allocation8 + $0x18] sm:$0xff] }
  0x42   :  { %193 = vmatpush1.msra.mxu0 %v111_v7  ;;  %306 = vmatpush1.msra.mxu1 %v113_v8  ;;  %v103_v15 = vld [vmem:[#allocation8] sm:$0xff]  ;;  %v105_v16 = vld [vmem:[#allocation8 + $0x10] sm:$0xff]  ;;  %v4586_v18 = vld [vmem:[#allocation10 + $0x1e8] sm:$0xff] }
  0x43   :  { %194 = vmatprep.subr.mxu0 %v108_v9  ;;  %307 = vmatprep.subr.mxu1 %v110_v10  ;;  %v95_v17 = vld [vmem:[#allocation5] sm:$0xff]  ;;  %v4588_v19 = vld [vmem:[#allocation10 + $0x1f8] sm:$0xff]  ;;  %v4592_v21 = vld [vmem:[#allocation10 + $0x1f0] sm:$0xff] }
  0x44   :  { %195 = vmatpush1.msra.mxu0 %v107_v11  ;;  %308 = vmatpush1.msra.mxu1 %v109_v12  ;;  %v4590_v20 = vld [vmem:[#allocation10 + $0x1e0] sm:$0xff]  ;;  %v4596_v22 = vld [vmem:[#allocation10 + $0x1c8] sm:$0xff]  ;;  %v4598_v23 = vld [vmem:[#allocation10 + $0x1d8] sm:$0xff] }
  0x45   :  { %196 = vmatprep.subr.mxu0 %v104_v13  ;;  %309 = vmatprep.subr.mxu1 %v106_v14  ;;  %v4604_v24 = vld [vmem:[#allocation10 + $0x1c0] sm:$0xff]  ;;  %v4606_v25 = vld [vmem:[#allocation10 + $0x1d0] sm:$0xff]  ;;  %v96_v26 = vld [vmem:[#allocation5 + $0x8] sm:$0xff] }
  0x46   :  { %197 = vmatpush1.msra.mxu0 %v103_v15  ;;  %310 = vmatpush1.msra.mxu1 %v105_v16  ;;  %v4612_v27 = vld [vmem:[#allocation10 + $0x1a8] sm:$0xff]  ;;  %v4614_v28 = vld [vmem:[#allocation10 + $0x1b8] sm:$0xff]  ;;  %v4618_v29 = vld [vmem:[#allocation10 + $0x1a0] sm:$0xff] }
  0x47   :  { %4127 = vmatmul.mubr.msk.f32.vlgmr.msra.gmra.mxu0 %vm141_vm0, %v95_v17  ;;  %4135 = vmatmul.mubr.msk.f32.vlgmr.msra.gmra.mxu1 %vm141_vm0, %v95_v17  ;;  %v4620_v30 = vld [vmem:[#allocation10 + $0x1b0] sm:$0xff]  ;;  %v4624_v31 = vld [vmem:[#allocation10 + $0x188] sm:$0xff]  ;;  %v4626_v32 = vld [vmem:[#allocation10 + $0x198] sm:$0xff] }
  0x48   :  { %495 = vmatprep.subr.mxu0 %v4586_v18  ;;  %566 = vmatprep.subr.mxu1 %v4588_v19  ;;  %v4632_v33 = vld [vmem:[#allocation10 + $0x180] sm:$0xff]  ;;  %v4634_v34 = vld [vmem:[#allocation10 + $0x190] sm:$0xff]  ;;  %v4640_v36 = vld [vmem:[#allocation10 + $0x168] sm:$0xff] }
  0x49   :  { %496 = vmatpush1.msra.mxu0 %v4590_v20  ;;  %567 = vmatpush1.msra.mxu1 %v4592_v21  ;;  %v97_v35 = vld [vmem:[#allocation5 + $0x10] sm:$0xff]  ;;  %v4642_v37 = vld [vmem:[#allocation10 + $0x178] sm:$0xff]  ;;  %v4646_v38 = vld [vmem:[#allocation10 + $0x160] sm:$0xff] }
  0x4a   :  { %497 = vmatprep.subr.mxu0 %v4596_v22  ;;  %568 = vmatprep.subr.mxu1 %v4598_v23  ;;  %v4648_v39 = vld [vmem:[#allocation10 + $0x170] sm:$0xff]  ;;  %v4652_v40 = vld [vmem:[#allocation10 + $0x148] sm:$0xff]  ;;  %v4654_v41 = vld [vmem:[#allocation10 + $0x158] sm:$0xff] }
  0x4b   :  { %236 = vmatprep.mubr.f32.mxu0 %v6513_v0  ;;  %349 = vmatprep.mubr.f32.mxu1 %v6513_v0  ;;  %v4660_v42 = vld [vmem:[#allocation10 + $0x140] sm:$0xff]  ;;  %v4662_v43 = vld [vmem:[#allocation10 + $0x150] sm:$0xff]  ;;  %v98_v44 = vld [vmem:[#allocation5 + $0x18] sm:$0xff] }
  0x4c   :  { %498 = vmatpush1.msra.mxu0 %v4604_v24  ;;  %569 = vmatpush1.msra.mxu1 %v4606_v25  ;;  %v4668_v45 = vld [vmem:[#allocation10 + $0x128] sm:$0xff]  ;;  %v4670_v46 = vld [vmem:[#allocation10 + $0x138] sm:$0xff]  ;;  %v4674_v47 = vld [vmem:[#allocation10 + $0x120] sm:$0xff] }
  0x4d   :  { %4128 = vmatmul.mubr.msk.f32.gmra.mxu0 %vm141_vm0, %v96_v26  ;;  %4136 = vmatmul.mubr.msk.f32.gmra.mxu1 %vm141_vm0, %v96_v26  ;;  %v4676_v48 = vld [vmem:[#allocation10 + $0x130] sm:$0xff]  ;;  %v4680_v49 = vld [vmem:[#allocation10 + $0x108] sm:$0xff]  ;;  %v4682_v50 = vld [vmem:[#allocation10 + $0x118] sm:$0xff] }
  0x4e   :  { %499 = vmatprep.subr.mxu0 %v4612_v27  ;;  %570 = vmatprep.subr.mxu1 %v4614_v28  ;;  %v4688_v51 = vld [vmem:[#allocation10 + $0x100] sm:$0xff]  ;;  %v4690_v52 = vld [vmem:[#allocation10 + $0x110] sm:$0xff]  ;;  %v4696_v54 = vld [vmem:[#allocation10 + $0xe8] sm:$0xff] }
  0x4f   :  { %500 = vmatpush1.msra.mxu0 %v4618_v29  ;;  %571 = vmatpush1.msra.mxu1 %v4620_v30  ;;  %v99_v53 = vld [vmem:[#allocation5 + $0x20] sm:$0xff]  ;;  %v4698_v55 = vld [vmem:[#allocation10 + $0xf8] sm:$0xff]  ;;  %v4704_v57 = vld [vmem:[#allocation10 + $0xf0] sm:$0xff] }
  0x50   :  { %501 = vmatprep.subr.mxu0 %v4624_v31  ;;  %572 = vmatprep.subr.mxu1 %v4626_v32  ;;  %v4702_v56 = vld [vmem:[#allocation10 + $0xe0] sm:$0xff]  ;;  %v4708_v58 = vld [vmem:[#allocation10 + $0xc8] sm:$0xff]  ;;  %v4710_v59 = vld [vmem:[#allocation10 + $0xd8] sm:$0xff] }
  0x51   :  { %242 = vmatprep.mubr.f32.mxu0 %v6513_v0  ;;  %355 = vmatprep.mubr.f32.mxu1 %v6513_v0  ;;  %v4716_v60 = vld [vmem:[#allocation10 + $0xc0] sm:$0xff]  ;;  %v4718_v61 = vld [vmem:[#allocation10 + $0xd0] sm:$0xff]  ;;  %v100_v62 = vld [vmem:[#allocation5 + $0x28] sm:$0xff] }
  0x52   :  { %502 = vmatpush1.msra.mxu0 %v4632_v33  ;;  %573 = vmatpush1.msra.mxu1 %v4634_v34  ;;  %v4724_v63 = vld [vmem:[#allocation10 + $0xa8] sm:$0xff]  ;;  %v4726_v1 = vld [vmem:[#allocation10 + $0xb8] sm:$0xff]  ;;  %v4730_v2 = vld [vmem:[#allocation10 + $0xa0] sm:$0xff] }
  0x53   :  { %4129 = vmatmul.mubr.msk.f32.gmra.mxu0 %vm141_vm0, %v97_v35  ;;  %4137 = vmatmul.mubr.msk.f32.gmra.mxu1 %vm141_vm0, %v97_v35  ;;  %v4732_v3 = vld [vmem:[#allocation10 + $0xb0] sm:$0xff]  ;;  %v4736_v4 = vld [vmem:[#allocation10 + $0x88] sm:$0xff]  ;;  %v4738_v5 = vld [vmem:[#allocation10 + $0x98] sm:$0xff] }
  0x54   :  { %503 = vmatprep.subr.mxu0 %v4640_v36  ;;  %574 = vmatprep.subr.mxu1 %v4642_v37  ;;  %6704 = vst [vmem:[#allocation19_spill] sm:$0xff] %v4732_v3  ;;  %6705 = vst [vmem:[#allocation20_spill] sm:$0xff] %v4736_v4  ;;  %v4744_v6 = vld [vmem:[#allocation10 + $0x80] sm:$0xff]  ;;  %v4746_v7 = vld [vmem:[#allocation10 + $0x90] sm:$0xff] }
  0x55   :  { %504 = vmatpush1.msra.mxu0 %v4646_v38  ;;  %575 = vmatpush1.msra.mxu1 %v4648_v39  ;;  %6706 = vst [vmem:[#allocation21_spill] sm:$0xff] %v4738_v5  ;;  %6707 = vst [vmem:[#allocation22_spill] sm:$0xff] %v4744_v6  ;;  %v101_v8 = vld [vmem:[#allocation5 + $0x30] sm:$0xff]  ;;  %v4752_v9 = vld [vmem:[#allocation10 + $0x68] sm:$0xff] }
  0x56   :  { %505 = vmatprep.subr.mxu0 %v4652_v40  ;;  %576 = vmatprep.subr.mxu1 %v4654_v41  ;;  %6708 = vst [vmem:[#allocation23_spill] sm:$0xff] %v4746_v7  ;;  %6709 = vst [vmem:[#allocation24_spill] sm:$0xff] %v4752_v9  ;;  %v4754_v10 = vld [vmem:[#allocation10 + $0x78] sm:$0xff]  ;;  %v4758_v11 = vld [vmem:[#allocation10 + $0x60] sm:$0xff] }
  0x57   :  { %248 = vmatprep.mubr.f32.mxu0 %v6513_v0  ;;  %361 = vmatprep.mubr.f32.mxu1 %v6513_v0  ;;  %6710 = vst [vmem:[#allocation25_spill] sm:$0xff] %v4754_v10  ;;  %6711 = vst [vmem:[#allocation26_spill] sm:$0xff] %v4758_v11  ;;  %v4760_v12 = vld [vmem:[#allocation10 + $0x70] sm:$0xff]  ;;  %v4764_v13 = vld [vmem:[#allocation10 + $0x48] sm:$0xff] }
  0x58   :  { %506 = vmatpush1.msra.mxu0 %v4660_v42  ;;  %577 = vmatpush1.msra.mxu1 %v4662_v43  ;;  %6712 = vst [vmem:[#allocation27_spill] sm:$0xff] %v4760_v12  ;;  %6713 = vst [vmem:[#allocation28_spill] sm:$0xff] %v4764_v13  ;;  %v4766_v14 = vld [vmem:[#allocation10 + $0x58] sm:$0xff]  ;;  %v4772_v15 = vld [vmem:[#allocation10 + $0x40] sm:$0xff] }
  0x59   :  { %4130 = vmatmul.mubr.msk.f32.gmra.mxu0 %vm141_vm0, %v98_v44  ;;  %4138 = vmatmul.mubr.msk.f32.gmra.mxu1 %vm141_vm0, %v98_v44  ;;  %6714 = vst [vmem:[#allocation29_spill] sm:$0xff] %v4766_v14  ;;  %6715 = vst [vmem:[#allocation30_spill] sm:$0xff] %v4772_v15  ;;  %v4774_v16 = vld [vmem:[#allocation10 + $0x50] sm:$0xff]  ;;  %v102_v17 = vld [vmem:[#allocation5 + $0x38] sm:$0xff] }
  0x5a   :  { %507 = vmatprep.subr.mxu0 %v4668_v45  ;;  %578 = vmatprep.subr.mxu1 %v4670_v46  ;;  %6716 = vst [vmem:[#allocation31_spill] sm:$0xff] %v4774_v16  ;;  %v4780_v26 = vld [vmem:[#allocation10 + $0x28] sm:$0xff]  ;;  %v4782_v35 = vld [vmem:[#allocation10 + $0x38] sm:$0xff]  ;;  %v4786_v44 = vld [vmem:[#allocation10 + $0x20] sm:$0xff] }
  0x5b   :  { %508 = vmatpush1.msra.mxu0 %v4674_v47  ;;  %579 = vmatpush1.msra.mxu1 %v4676_v48  ;;  %6717 = vst [vmem:[#allocation32_spill] sm:$0xff] %v4780_v26  ;;  %6718 = vst [vmem:[#allocation33_spill] sm:$0xff] %v4782_v35 }
  0x5c   :  { %509 = vmatprep.subr.mxu0 %v4680_v49  ;;  %580 = vmatprep.subr.mxu1 %v4682_v50  ;;  %6719 = vst [vmem:[#allocation34_spill] sm:$0xff] %v4786_v44 }
  0x5d   :  { %254 = vmatprep.mubr.f32.mxu0 %v6513_v0  ;;  %367 = vmatprep.mubr.f32.mxu1 %v6513_v0 }
  0x5e   :  { %510 = vmatpush1.msra.mxu0 %v4688_v51  ;;  %581 = vmatpush1.msra.mxu1 %v4690_v52 }
  0x5f   :  { %4131 = vmatmul.mubr.msk.f32.gmra.mxu0 %vm141_vm0, %v99_v53  ;;  %4139 = vmatmul.mubr.msk.f32.gmra.mxu1 %vm141_vm0, %v99_v53  ;;  %v4788_v53 = vld [vmem:[#allocation10 + $0x30] sm:$0xff] }
  0x60   :  { %511 = vmatprep.subr.mxu0 %v4696_v54  ;;  %582 = vmatprep.subr.mxu1 %v4698_v55  ;;  %6720 = vst [vmem:[#allocation35_spill] sm:$0xff] %v4788_v53 }
  0x61   :  { %512 = vmatpush1.msra.mxu0 %v4702_v56  ;;  %583 = vmatpush1.msra.mxu1 %v4704_v57 }
  0x62   :  { %513 = vmatprep.subr.mxu0 %v4708_v58  ;;  %584 = vmatprep.subr.mxu1 %v4710_v59 }
  0x63   :  { %260 = vmatprep.mubr.f32.mxu0 %v6513_v0  ;;  %373 = vmatprep.mubr.f32.mxu1 %v6513_v0 }
  0x64   :  { %514 = vmatpush1.msra.mxu0 %v4716_v60  ;;  %585 = vmatpush1.msra.mxu1 %v4718_v61 }
  0x65   :  { %4132 = vmatmul.mubr.msk.f32.gmra.mxu0 %vm141_vm0, %v100_v62  ;;  %4140 = vmatmul.mubr.msk.f32.gmra.mxu1 %vm141_vm0, %v100_v62  ;;  %v4792_v62 = vld [vmem:[#allocation10 + $0x8] sm:$0xff] }
  0x66   :  { %515 = vmatprep.subr.mxu0 %v4724_v63  ;;  %586 = vmatprep.subr.mxu1 %v4726_v1  ;;  %6721 = vst [vmem:[#allocation36_spill] sm:$0xff] %v4792_v62 }
  0x67   :  { %516 = vmatpush1.msra.mxu0 %v4730_v2  ;;  %587 = vmatpush1.msra.mxu1 %v4732_v3 }
  0x68   :  { %517 = vmatprep.subr.mxu0 %v4736_v4  ;;  %588 = vmatprep.subr.mxu1 %v4738_v5 }
  0x69   :  { %266 = vmatprep.mubr.f32.mxu0 %v6513_v0  ;;  %379 = vmatprep.mubr.f32.mxu1 %v6513_v0 }
  0x6a   :  { %518 = vmatpush1.msra.mxu0 %v4744_v6  ;;  %589 = vmatpush1.msra.mxu1 %v4746_v7 }
  0x6b   :  { %4133 = vmatmul.mubr.msk.f32.gmra.mxu0 %vm141_vm0, %v101_v8  ;;  %4141 = vmatmul.mubr.msk.f32.gmra.mxu1 %vm141_vm0, %v101_v8  ;;  %v4794_v8 = vld [vmem:[#allocation10 + $0x18] sm:$0xff] }
  0x6c   :  { %519 = vmatprep.subr.mxu0 %v4752_v9  ;;  %590 = vmatprep.subr.mxu1 %v4754_v10  ;;  %6722 = vst [vmem:[#allocation37_spill] sm:$0xff] %v4794_v8 }
  0x6d   :  { %520 = vmatpush1.msra.mxu0 %v4758_v11  ;;  %591 = vmatpush1.msra.mxu1 %v4760_v12 }
  0x6e   :  { %521 = vmatprep.subr.mxu0 %v4764_v13  ;;  %592 = vmatprep.subr.mxu1 %v4766_v14 }
  0x6f   :  { %272 = vmatprep.mubr.f32.mxu0 %v6513_v0  ;;  %385 = vmatprep.mubr.f32.mxu1 %v6513_v0  ;;  %v4798_v0 = vld [vmem:[#allocation10] sm:$0xff] }
  0x70   :  { %522 = vmatpush1.msra.mxu0 %v4772_v15  ;;  %593 = vmatpush1.msra.mxu1 %v4774_v16  ;;  %6723 = vst [vmem:[#allocation38_spill] sm:$0xff] %v4798_v0  ;;  %v4802_v16 = vld [vmem:[#allocation10 + $0x10] sm:$0xff] }
  0x71   :  { %4134 = vmatmul.mubr.msk.f32.gmra.mxu0 %vm141_vm0, %v102_v17  ;;  %4142 = vmatmul.mubr.msk.f32.gmra.mxu1 %vm141_vm0, %v102_v17  ;;  %6724 = vst [vmem:[#allocation39_spill] sm:$0xff] %v4802_v16  ;;  %v6725_v17 = vmov 0.0  }
  0x72   :  { %523 = vmatprep.subr.mxu0 %v4780_v26  ;;  %594 = vmatprep.subr.mxu1 %v4782_v35 }
  0x73   :  { %524 = vmatpush1.msra.mxu0 %v4786_v44  ;;  %595 = vmatpush1.msra.mxu1 %v4788_v53 }
  0x74   :  { %525 = vmatprep.subr.mxu0 %v4792_v62  ;;  %596 = vmatprep.subr.mxu1 %v4794_v8 }
  0x75   :  { %526 = vmatpush1.msra.mxu0 %v4798_v0  ;;  %559 = vmatprep.mubr.f32.mxu0 %v6725_v17 }
  0x76   :  { %597 = vmatpush1.msra.mxu1 %v4802_v16  ;;  %630 = vmatprep.mubr.f32.mxu1 %v6725_v17 }
  0x77   :  { %560 = vmatmul.mubr.f32.vlgmr.msra.gmra.mxu0 %v6725_v17  ;;  %631 = vmatmul.mubr.f32.vlgmr.msra.gmra.mxu1 %v6725_v17 }
  0x78   :  { %731 = vmatprep.subr.mxu0 %v4586_v18  ;;  %802 = vmatprep.subr.mxu1 %v4588_v19 }
  0x79   :  { %732 = vmatpush1.msra.mxu0 %v4590_v20  ;;  %803 = vmatpush1.msra.mxu1 %v4592_v21 }
  0x7a   :  { %733 = vmatprep.subr.mxu0 %v4596_v22  ;;  %804 = vmatprep.subr.mxu1 %v4598_v23 }
  0x7b   :  { %734 = vmatpush1.msra.mxu0 %v4604_v24  ;;  %805 = vmatpush1.msra.mxu1 %v4606_v25 }
  0x7c   :  { %735 = vmatprep.subr.mxu0 %v4612_v27  ;;  %806 = vmatprep.subr.mxu1 %v4614_v28 }
  0x7d   :  { %736 = vmatpush1.msra.mxu0 %v4618_v29  ;;  %807 = vmatpush1.msra.mxu1 %v4620_v30 }
  0x7e   :  { %737 = vmatprep.subr.mxu0 %v4624_v31  ;;  %808 = vmatprep.subr.mxu1 %v4626_v32 }
  0x7f   :  { %738 = vmatpush1.msra.mxu0 %v4632_v33  ;;  %809 = vmatpush1.msra.mxu1 %v4634_v34 }
  0x80   :  { %739 = vmatprep.subr.mxu0 %v4640_v36  ;;  %810 = vmatprep.subr.mxu1 %v4642_v37 }
  0x81   :  { %740 = vmatpush1.msra.mxu0 %v4646_v38  ;;  %811 = vmatpush1.msra.mxu1 %v4648_v39 }
  0x82   :  { %741 = vmatprep.subr.mxu0 %v4652_v40  ;;  %812 = vmatprep.subr.mxu1 %v4654_v41 }
  0x83   :  { %742 = vmatpush1.msra.mxu0 %v4660_v42  ;;  %813 = vmatpush1.msra.mxu1 %v4662_v43 }
  0x84   :  { %743 = vmatprep.subr.mxu0 %v4668_v45  ;;  %814 = vmatprep.subr.mxu1 %v4670_v46 }
  0x85   :  { %744 = vmatpush1.msra.mxu0 %v4674_v47  ;;  %815 = vmatpush1.msra.mxu1 %v4676_v48 }
  0x86   :  { %745 = vmatprep.subr.mxu0 %v4680_v49  ;;  %816 = vmatprep.subr.mxu1 %v4682_v50 }
  0x87   :  { %746 = vmatpush1.msra.mxu0 %v4688_v51  ;;  %817 = vmatpush1.msra.mxu1 %v4690_v52 }
  0x88   :  { %747 = vmatprep.subr.mxu0 %v4696_v54  ;;  %818 = vmatprep.subr.mxu1 %v4698_v55 }
  0x89   :  { %748 = vmatpush1.msra.mxu0 %v4702_v56  ;;  %819 = vmatpush1.msra.mxu1 %v4704_v57 }
  0x8a   :  { %749 = vmatprep.subr.mxu0 %v4708_v58  ;;  %820 = vmatprep.subr.mxu1 %v4710_v59 }
  0x8b   :  { %750 = vmatpush1.msra.mxu0 %v4716_v60  ;;  %821 = vmatpush1.msra.mxu1 %v4718_v61 }
  0x8c   :  { %751 = vmatprep.subr.mxu0 %v4724_v63  ;;  %822 = vmatprep.subr.mxu1 %v4726_v1 }
  0x8d   :  { %752 = vmatpush1.msra.mxu0 %v4730_v2  ;;  %823 = vmatpush1.msra.mxu1 %v4732_v3 }
  0x8e   :  { %753 = vmatprep.subr.mxu0 %v4736_v4  ;;  %824 = vmatprep.subr.mxu1 %v4738_v5  ;;  %v6726_v4 = vld [vmem:[#allocation31_spill] sm:$0xff] }
  0x8f   :  { %754 = vmatpush1.msra.mxu0 %v4744_v6  ;;  %825 = vmatpush1.msra.mxu1 %v4746_v7 }
  0x90   :  { %755 = vmatprep.subr.mxu0 %v4752_v9  ;;  %826 = vmatprep.subr.mxu1 %v4754_v10 }
  0x91   :  { %756 = vmatpush1.msra.mxu0 %v4758_v11  ;;  %827 = vmatpush1.msra.mxu1 %v4760_v12 }
  0x92   :  { %757 = vmatprep.subr.mxu0 %v4764_v13  ;;  %828 = vmatprep.subr.mxu1 %v4766_v14 }
  0x93   :  { %758 = vmatpush1.msra.mxu0 %v4772_v15  ;;  %829 = vmatpush1.msra.mxu1 %v6726_v4 }
  0x94   :  { %759 = vmatprep.subr.mxu0 %v4780_v26  ;;  %830 = vmatprep.subr.mxu1 %v4782_v35  ;;  %v121_v35 = vlaneseq }
  0x95   :  { %760 = vmatpush1.msra.mxu0 %v4786_v44  ;;  %831 = vmatpush1.msra.mxu1 %v4788_v53 }
  0x96   :  { %761 = vmatprep.subr.mxu0 %v4792_v62  ;;  %832 = vmatprep.subr.mxu1 %v4794_v8  ;;  %v4880_v44 = vshrl.u32 %v121_v35, 7 }
  0x97   :  { %762 = vmatpush1.msra.mxu0 %v4798_v0  ;;  %795 = vmatprep.mubr.f32.mxu0 %v6725_v17 }
  0x98   :  { %833 = vmatpush1.msra.mxu1 %v4802_v16  ;;  %866 = vmatprep.mubr.f32.mxu1 %v6725_v17  ;;  %6727 = vst [vmem:[#allocation40_spill] sm:$0xff] %v4880_v44  ;;  %v6534_v8 = vsub.s32 0, %v4880_v44  ;;  %v6536_v0 = vsub.s32 2, %v4880_v44  ;;  %v119_v16 = vld [vmem:[%s6508_s3] sm:$0xf]  ;;  %v6541_v35 = vsub.s32 3, %v4880_v44 }
  0x99   :  { %968 = vmatprep.subr.mxu0 %v4586_v18  ;;  %1039 = vmatprep.subr.mxu1 %v4588_v19  ;;  %v6540_v19 = vsub.s32 1, %v4880_v44 }
  0x9a   :  { %v124_v26 = vrot.slane %v119_v16, %v6534_v8  ;;  %v4901_v4 = vrot.slane %v119_v16, %v6536_v0  ;;  %v4907_v12 = vrot.slane %v119_v16, %v6541_v35 }
  0x9b   :  { %v128_v13 = vrot.slane %v119_v16, %v6540_v19 }
 0x107   :  { %v4882_v53 = vpop.f32.mrf.mxu0  ;;  %v4884_v62 = vpop.f32.mrf.mxu1 }
 0x109   :  { %v4891_v17 = vpop.f32.mrf.mxu0  ;;  %v4893_v18 = vpop.f32.mrf.mxu1 }
 0x10d   :  { %v238_v15 = vpop.f32.mrf.mxu0  ;;  %v351_v14 = vpop.f32.mrf.mxu1 }
 0x10e   :  { %v4909_v11 = vadd.f32 %v238_v15, %v124_v26  ;;  %v4912_v10 = vadd.f32 %v351_v14, %v4901_v4 }
 0x10f   :  { %v240_v9 = vpop.f32.mrf.mxu0  ;;  %v353_v8 = vpop.f32.mrf.mxu1 }
 0x110   :  { %6728 = vst [vmem:[#allocation41_spill] sm:$0xff] %v4909_v11  ;;  %6729 = vst [vmem:[#allocation42_spill] sm:$0xff] %v4912_v10  ;;  %v4914_v7 = vadd.f32 %v240_v9, %v128_v13  ;;  %v4917_v0 = vadd.f32 %v353_v8, %v4907_v12 }
 0x112   :  { %6730 = vst [vmem:[#allocation43_spill] sm:$0xff] %v4914_v7  ;;  %6731 = vst [vmem:[#allocation44_spill] sm:$0xff] %v4917_v0 }
 0x113   :  { %v244_v6 = vpop.f32.mrf.mxu0  ;;  %v357_v5 = vpop.f32.mrf.mxu1 }
 0x114   :  { %v4919_v3 = vadd.f32 %v244_v6, %v124_v26  ;;  %v4922_v19 = vadd.f32 %v357_v5, %v4901_v4 }
 0x115   :  { %v246_v16 = vpop.f32.mrf.mxu0  ;;  %v359_v15 = vpop.f32.mrf.mxu1 }
 0x116   :  { %6732 = vst [vmem:[#allocation45_spill] sm:$0xff] %v4919_v3  ;;  %6733 = vst [vmem:[#allocation46_spill] sm:$0xff] %v4922_v19  ;;  %v4924_v35 = vadd.f32 %v246_v16, %v128_v13  ;;  %v4927_v14 = vadd.f32 %v359_v15, %v4907_v12 }
 0x118   :  { %6734 = vst [vmem:[#allocation47_spill] sm:$0xff] %v4924_v35  ;;  %6735 = vst [vmem:[#allocation48_spill] sm:$0xff] %v4927_v14 }
 0x119   :  { %v250_v44 = vpop.f32.mrf.mxu0  ;;  %v363_v9 = vpop.f32.mrf.mxu1 }
 0x11a   :  { %v4929_v10 = vadd.f32 %v250_v44, %v124_v26  ;;  %v4932_v8 = vadd.f32 %v363_v9, %v4901_v4 }
 0x11b   :  { %v252_v0 = vpop.f32.mrf.mxu0  ;;  %v365_v6 = vpop.f32.mrf.mxu1 }
 0x11c   :  { %6736 = vst [vmem:[#allocation49_spill] sm:$0xff] %v4929_v10  ;;  %6737 = vst [vmem:[#allocation50_spill] sm:$0xff] %v4932_v8  ;;  %v4934_v3 = vadd.f32 %v252_v0, %v128_v13  ;;  %v4937_v5 = vadd.f32 %v365_v6, %v4907_v12 }
 0x11e   :  { %6738 = vst [vmem:[#allocation51_spill] sm:$0xff] %v4934_v3  ;;  %6739 = vst [vmem:[#allocation52_spill] sm:$0xff] %v4937_v5 }
 0x11f   :  { %v256_v19 = vpop.f32.mrf.mxu0  ;;  %v369_v16 = vpop.f32.mrf.mxu1 }
 0x120   :  { %v4939_v35 = vadd.f32 %v256_v19, %v124_v26  ;;  %v4942_v15 = vadd.f32 %v369_v16, %v4901_v4 }
 0x121   :  { %v258_v14 = vpop.f32.mrf.mxu0  ;;  %v371_v44 = vpop.f32.mrf.mxu1 }
 0x122   :  { %6740 = vst [vmem:[#allocation53_spill] sm:$0xff] %v4939_v35  ;;  %6741 = vst [vmem:[#allocation54_spill] sm:$0xff] %v4942_v15  ;;  %v4944_v10 = vadd.f32 %v258_v14, %v128_v13  ;;  %v4947_v9 = vadd.f32 %v371_v44, %v4907_v12 }
 0x124   :  { %6742 = vst [vmem:[#allocation55_spill] sm:$0xff] %v4944_v10  ;;  %6743 = vst [vmem:[#allocation56_spill] sm:$0xff] %v4947_v9 }
 0x125   :  { %v262_v8 = vpop.f32.mrf.mxu0  ;;  %v375_v0 = vpop.f32.mrf.mxu1 }
 0x126   :  { %v4949_v3 = vadd.f32 %v262_v8, %v124_v26  ;;  %v4952_v6 = vadd.f32 %v375_v0, %v4901_v4 }
 0x127   :  { %v264_v5 = vpop.f32.mrf.mxu0  ;;  %v377_v19 = vpop.f32.mrf.mxu1 }
 0x128   :  { %6744 = vst [vmem:[#allocation57_spill] sm:$0xff] %v4949_v3  ;;  %6745 = vst [vmem:[#allocation58_spill] sm:$0xff] %v4952_v6  ;;  %v4954_v35 = vadd.f32 %v264_v5, %v128_v13  ;;  %v4957_v16 = vadd.f32 %v377_v19, %v4907_v12 }
 0x12a   :  { %6746 = vst [vmem:[#allocation59_spill] sm:$0xff] %v4954_v35  ;;  %6747 = vst [vmem:[#allocation60_spill] sm:$0xff] %v4957_v16 }
 0x12b   :  { %v268_v15 = vpop.f32.mrf.mxu0  ;;  %v381_v14 = vpop.f32.mrf.mxu1 }
 0x12c   :  { %v4959_v10 = vadd.f32 %v268_v15, %v124_v26  ;;  %v4962_v44 = vadd.f32 %v381_v14, %v4901_v4 }
 0x12d   :  { %v270_v9 = vpop.f32.mrf.mxu0  ;;  %v383_v8 = vpop.f32.mrf.mxu1 }
 0x12e   :  { %6748 = vst [vmem:[#allocation61_spill] sm:$0xff] %v4959_v10  ;;  %6749 = vst [vmem:[#allocation62_spill] sm:$0xff] %v4962_v44  ;;  %v4964_v3 = vadd.f32 %v270_v9, %v128_v13  ;;  %v4967_v0 = vadd.f32 %v383_v8, %v4907_v12  ;;  %v233_v9 = vadd.f32 %v4882_v53, %v124_v26 }
 0x12f   :  { %v235_v8 = vadd.f32 %v4891_v17, %v128_v13 }
 0x130   :  { %6750 = vst [vmem:[#allocation63_spill] sm:$0xff] %v4964_v3  ;;  %6751 = vst [vmem:[#allocation64_spill] sm:$0xff] %v4967_v0 }
 0x131   :  { %v274_v6 = vpop.f32.mrf.mxu0  ;;  %v387_v5 = vpop.f32.mrf.mxu1 }
 0x132   :  { %v4969_v35 = vadd.f32 %v274_v6, %v124_v26  ;;  %v4972_v19 = vadd.f32 %v387_v5, %v4901_v4  ;;  %v348_v5 = vadd.f32 %v4893_v18, %v4907_v12 }
 0x133   :  { %v276_v16 = vpop.f32.mrf.mxu0  ;;  %v389_v15 = vpop.f32.mrf.mxu1 }
 0x134   :  { %6752 = vst [vmem:[#allocation65_spill] sm:$0xff] %v4969_v35  ;;  %6753 = vst [vmem:[#allocation66_spill] sm:$0xff] %v4972_v19  ;;  %v4974_v10 = vadd.f32 %v276_v16, %v128_v13  ;;  %v4977_v14 = vadd.f32 %v389_v15, %v4907_v12  ;;  %v346_v15 = vadd.f32 %v4884_v62, %v4901_v4 }
 0x136   :  { %6754 = vst [vmem:[#allocation67_spill] sm:$0xff] %v4974_v10  ;;  %6755 = vst [vmem:[#allocation68_spill] sm:$0xff] %v4977_v14  ;;  %v5242_v10 = vld [vmem:[#allocation10 + $0x30] sm:$0xff] }
 0x137   :  { %v561_v44 = vpop.f32.mrf.mxu0  ;;  %v632_v3 = vpop.f32.mrf.mxu1 }
 0x138   :  { %v637_v0 = vadd.f32 %v561_v44, %v233_v9  ;;  %v639_v26 = vadd.f32 %v632_v3, %v346_v15 }
 0x139   :  { %v563_v7 = vpop.f32.mrf.mxu0  ;;  %v634_v11 = vpop.f32.mrf.mxu1 }
 0x13a   :  { %v641_v6 = vmul.f32 0.5, %v637_v0  ;;  %v638_v35 = vadd.f32 %v563_v7, %v235_v8  ;;  %v640_v19 = vadd.f32 %v634_v11, %v348_v5  ;;  %v643_v53 = vmul.f32 0.5, %v639_v26 }
 0x13c   :  { %4154 = vtanh.f32 %v641_v6  ;;  %v642_v16 = vmul.f32 0.5, %v638_v35 }
 0x13e   :  { %4156 = vtanh.f32 %v642_v16 }
 0x13f   :  { %4158 = vtanh.f32 %v640_v19 }
 0x140   :  { %4160 = vtanh.f32 %v643_v53 }
 0x149   :  { %v4155_v14 = vpop.eup %4154 }
 0x14a   :  { %v647_v13 = vadd.f32 1.0, %v4155_v14 }
 0x14b   :  { %v4157_v17 = vpop.eup %4156 }
 0x14c   :  { %v650_v44 = vmul.f32 0.5, %v647_v13  ;;  %v648_v7 = vadd.f32 1.0, %v4157_v17  ;;  %v4159_v9 = vpop.eup %4158 }
 0x14d   :  { %v4161_v11 = vpop.eup %4160 }
 0x14e   :  { %v651_v0 = vmul.f32 0.5, %v648_v7  ;;  %v655_v12 = vmul.f32 %v4159_v9, %v650_v44  ;;  %v649_v35 = vadd.f32 1.0, %v4161_v11  ;;  %v5070_v7 = vld [vmem:[#allocation10 + $0x1e8] sm:$0xff]  ;;  %v5076_v9 = vld [vmem:[#allocation10 + $0x1e0] sm:$0xff] }
 0x14f   :  { %v5088_v11 = vld [vmem:[#allocation10 + $0x1c0] sm:$0xff] }
 0x150   :  { %v654_v8 = vmul.f32 0.0, %v651_v0  ;;  %v652_v4 = vmul.f32 0.5, %v649_v35  ;;  %v5072_v0 = vld [vmem:[#allocation10 + $0x1f8] sm:$0xff]  ;;  %v5090_v35 = vld [vmem:[#allocation10 + $0x1d0] sm:$0xff] }
 0x152   :  { %v4985_v18 = vadd.f32 %v655_v12, %v654_v8  ;;  %v5078_v8 = vld [vmem:[#allocation10 + $0x1f0] sm:$0xff]  ;;  %v5082_v12 = vld [vmem:[#allocation10 + $0x1c8] sm:$0xff] }
 0x154   :  { %4162 = vtanh.f32 %v4985_v18 }
 0x161   :  { %v4163_v62 = vpop.eup %4162 }
 0x162   :  { %v4988_v3 = vmul.f32 %v4163_v62, %v652_v4  ;;  %v5094_v4 = vld [vmem:[#allocation10 + $0x1a8] sm:$0xff]  ;;  %v5096_v62 = vld [vmem:[#allocation10 + $0x1b8] sm:$0xff] }
 0x164   :  { %6756 = vst [vmem:[#allocation69_spill] sm:$0xff] %v4988_v3  ;;  %796 = vmatmul.mubr.f32.vlgmr.msra.gmra.mxu0 %v4988_v3  ;;  %867 = vmatmul.mubr.f32.vlgmr.msra.gmra.mxu1 %v4988_v3  ;;  %v5248_v3 = vld [vmem:[#allocation10 + $0x18] sm:$0xff] }
 0x165   :  { %969 = vmatpush1.msra.mxu0 %v4590_v20  ;;  %1040 = vmatpush1.msra.mxu1 %v4592_v21  ;;  %v6757_v20 = vld [vmem:[#allocation19_spill] sm:$0xff]  ;;  %v6758_v21 = vld [vmem:[#allocation20_spill] sm:$0xff] }
 0x166   :  { %970 = vmatprep.subr.mxu0 %v4596_v22  ;;  %1041 = vmatprep.subr.mxu1 %v4598_v23  ;;  %v6759_v22 = vld [vmem:[#allocation21_spill] sm:$0xff]  ;;  %v6760_v23 = vld [vmem:[#allocation22_spill] sm:$0xff]  ;;  %6784 = vst [vmem:[#allocation20_spill] sm:$0xff] %v5070_v7 }
 0x167   :  { %971 = vmatpush1.msra.mxu0 %v4604_v24  ;;  %1042 = vmatpush1.msra.mxu1 %v4606_v25  ;;  %v6761_v24 = vld [vmem:[#allocation23_spill] sm:$0xff]  ;;  %v6762_v25 = vld [vmem:[#allocation24_spill] sm:$0xff]  ;;  %6785 = vst [vmem:[#allocation21_spill] sm:$0xff] %v5072_v0 }
 0x168   :  { %972 = vmatprep.subr.mxu0 %v4612_v27  ;;  %1043 = vmatprep.subr.mxu1 %v4614_v28  ;;  %v6763_v27 = vld [vmem:[#allocation25_spill] sm:$0xff]  ;;  %v6764_v28 = vld [vmem:[#allocation26_spill] sm:$0xff] }
 0x169   :  { %973 = vmatpush1.msra.mxu0 %v4618_v29  ;;  %1044 = vmatpush1.msra.mxu1 %v4620_v30  ;;  %v6765_v29 = vld [vmem:[#allocation27_spill] sm:$0xff]  ;;  %v6766_v30 = vld [vmem:[#allocation28_spill] sm:$0xff] }
 0x16a   :  { %974 = vmatprep.subr.mxu0 %v4624_v31  ;;  %1045 = vmatprep.subr.mxu1 %v4626_v32  ;;  %v6767_v31 = vld [vmem:[#allocation29_spill] sm:$0xff]  ;;  %v6768_v32 = vld [vmem:[#allocation30_spill] sm:$0xff] }
 0x16b   :  { %975 = vmatpush1.msra.mxu0 %v4632_v33  ;;  %1046 = vmatpush1.msra.mxu1 %v4634_v34  ;;  %v6769_v33 = vld [vmem:[#allocation31_spill] sm:$0xff]  ;;  %v6770_v34 = vld [vmem:[#allocation32_spill] sm:$0xff] }
 0x16c   :  { %976 = vmatprep.subr.mxu0 %v4640_v36  ;;  %1047 = vmatprep.subr.mxu1 %v4642_v37  ;;  %v6771_v36 = vld [vmem:[#allocation33_spill] sm:$0xff]  ;;  %v6772_v37 = vld [vmem:[#allocation34_spill] sm:$0xff] }
 0x16d   :  { %977 = vmatpush1.msra.mxu0 %v4646_v38  ;;  %1048 = vmatpush1.msra.mxu1 %v4648_v39  ;;  %v6773_v38 = vld [vmem:[#allocation35_spill] sm:$0xff]  ;;  %v6774_v39 = vld [vmem:[#allocation36_spill] sm:$0xff] }
 0x16e   :  { %978 = vmatprep.subr.mxu0 %v4652_v40  ;;  %1049 = vmatprep.subr.mxu1 %v4654_v41  ;;  %v6775_v40 = vld [vmem:[#allocation37_spill] sm:$0xff]  ;;  %v6776_v41 = vld [vmem:[#allocation38_spill] sm:$0xff]  ;;  %6800 = vst [vmem:[#allocation36_spill] sm:$0xff] %v5242_v10 }
 0x16f   :  { %979 = vmatpush1.msra.mxu0 %v4660_v42  ;;  %1050 = vmatpush1.msra.mxu1 %v4662_v43  ;;  %v6777_v42 = vmov 0.0   ;;  %v6778_v43 = vld [vmem:[#allocation39_spill] sm:$0xff]  ;;  %6802 = vst [vmem:[#allocation38_spill] sm:$0xff] %v5248_v3 }
 0x170   :  { %980 = vmatprep.subr.mxu0 %v4668_v45  ;;  %1051 = vmatprep.subr.mxu1 %v4670_v46 }
 0x171   :  { %981 = vmatpush1.msra.mxu0 %v4674_v47  ;;  %1052 = vmatpush1.msra.mxu1 %v4676_v48  ;;  %v6779_v47 = vld [vmem:[#allocation41_spill] sm:$0xff] }
 0x172   :  { %982 = vmatprep.subr.mxu0 %v4680_v49  ;;  %1053 = vmatprep.subr.mxu1 %v4682_v50 }
 0x173   :  { %983 = vmatpush1.msra.mxu0 %v4688_v51  ;;  %1054 = vmatpush1.msra.mxu1 %v4690_v52  ;;  %v6780_v52 = vld [vmem:[#allocation43_spill] sm:$0xff] }
 0x174   :  { %984 = vmatprep.subr.mxu0 %v4696_v54  ;;  %1055 = vmatprep.subr.mxu1 %v4698_v55 }
 0x175   :  { %985 = vmatpush1.msra.mxu0 %v4702_v56  ;;  %1056 = vmatpush1.msra.mxu1 %v4704_v57  ;;  %v6781_v56 = vld [vmem:[#allocation44_spill] sm:$0xff] }
 0x176   :  { %986 = vmatprep.subr.mxu0 %v4708_v58  ;;  %1057 = vmatprep.subr.mxu1 %v4710_v59  ;;  %v6782_v58 = vld [vmem:[#allocation42_spill] sm:$0xff] }
 0x177   :  { %987 = vmatpush1.msra.mxu0 %v4716_v60  ;;  %1058 = vmatpush1.msra.mxu1 %v4718_v61 }
 0x178   :  { %988 = vmatprep.subr.mxu0 %v4724_v63  ;;  %1059 = vmatprep.subr.mxu1 %v4726_v1 }
 0x179   :  { %989 = vmatpush1.msra.mxu0 %v4730_v2  ;;  %1060 = vmatpush1.msra.mxu1 %v6757_v20  ;;  %v5100_v20 = vld [vmem:[#allocation10 + $0x1a0] sm:$0xff] }
 0x17a   :  { %990 = vmatprep.subr.mxu0 %v6758_v21  ;;  %1061 = vmatprep.subr.mxu1 %v6759_v22  ;;  %v5102_v21 = vld [vmem:[#allocation10 + $0x1b0] sm:$0xff]  ;;  %v5106_v22 = vld [vmem:[#allocation10 + $0x188] sm:$0xff] }
 0x17b   :  { %991 = vmatpush1.msra.mxu0 %v6760_v23  ;;  %1062 = vmatpush1.msra.mxu1 %v6761_v24  ;;  %v5108_v23 = vld [vmem:[#allocation10 + $0x198] sm:$0xff]  ;;  %v5112_v24 = vld [vmem:[#allocation10 + $0x180] sm:$0xff] }
 0x17c   :  { %992 = vmatprep.subr.mxu0 %v6762_v25  ;;  %1063 = vmatprep.subr.mxu1 %v6763_v27  ;;  %v5114_v25 = vld [vmem:[#allocation10 + $0x190] sm:$0xff]  ;;  %v5118_v27 = vld [vmem:[#allocation10 + $0x168] sm:$0xff] }
 0x17d   :  { %993 = vmatpush1.msra.mxu0 %v6764_v28  ;;  %1064 = vmatpush1.msra.mxu1 %v6765_v29  ;;  %v5120_v28 = vld [vmem:[#allocation10 + $0x178] sm:$0xff]  ;;  %v5124_v29 = vld [vmem:[#allocation10 + $0x160] sm:$0xff] }
 0x17e   :  { %994 = vmatprep.subr.mxu0 %v6766_v30  ;;  %1065 = vmatprep.subr.mxu1 %v6767_v31  ;;  %v5126_v30 = vld [vmem:[#allocation10 + $0x170] sm:$0xff]  ;;  %v5130_v31 = vld [vmem:[#allocation10 + $0x148] sm:$0xff] }
 0x17f   :  { %995 = vmatpush1.msra.mxu0 %v6768_v32  ;;  %1066 = vmatpush1.msra.mxu1 %v6769_v33  ;;  %v5132_v32 = vld [vmem:[#allocation10 + $0x158] sm:$0xff]  ;;  %v5136_v33 = vld [vmem:[#allocation10 + $0x140] sm:$0xff] }
 0x180   :  { %996 = vmatprep.subr.mxu0 %v6770_v34  ;;  %1067 = vmatprep.subr.mxu1 %v6771_v36  ;;  %v5138_v34 = vld [vmem:[#allocation10 + $0x150] sm:$0xff]  ;;  %v5142_v36 = vld [vmem:[#allocation10 + $0x128] sm:$0xff] }
 0x181   :  { %997 = vmatpush1.msra.mxu0 %v6772_v37  ;;  %1068 = vmatpush1.msra.mxu1 %v6773_v38  ;;  %v5144_v37 = vld [vmem:[#allocation10 + $0x138] sm:$0xff]  ;;  %v5148_v38 = vld [vmem:[#allocation10 + $0x120] sm:$0xff] }
 0x182   :  { %998 = vmatprep.subr.mxu0 %v6774_v39  ;;  %1069 = vmatprep.subr.mxu1 %v6775_v40  ;;  %v5150_v39 = vld [vmem:[#allocation10 + $0x130] sm:$0xff]  ;;  %v5154_v40 = vld [vmem:[#allocation10 + $0x108] sm:$0xff] }
 0x183   :  { %999 = vmatpush1.msra.mxu0 %v6776_v41  ;;  %1032 = vmatprep.mubr.f32.mxu0 %v6777_v42  ;;  %v5156_v41 = vld [vmem:[#allocation10 + $0x118] sm:$0xff] }
 0x184   :  { %1070 = vmatpush1.msra.mxu1 %v6778_v43  ;;  %1103 = vmatprep.mubr.f32.mxu1 %v6777_v42  ;;  %v5158_v43 = vld [vmem:[#allocation10 + $0x100] sm:$0xff] }
 0x185   :  { %1205 = vmatprep.subr.mxu0 %v5070_v7  ;;  %1276 = vmatprep.subr.mxu1 %v5072_v0 }
 0x224   :  { %v797_v45 = vpop.f32.mrf.mxu0  ;;  %v868_v46 = vpop.f32.mrf.mxu1 }
 0x225   :  { %v873_v48 = vadd.f32 %v797_v45, %v6779_v47  ;;  %v875_v59 = vadd.f32 %v868_v46, %v6782_v58  ;;  %v5162_v45 = vld [vmem:[#allocation10 + $0x110] sm:$0xff]  ;;  %v5164_v46 = vld [vmem:[#allocation10 + $0xe8] sm:$0xff]  ;;  %v5166_v47 = vld [vmem:[#allocation10 + $0xf8] sm:$0xff] }
 0x226   :  { %v799_v49 = vpop.f32.mrf.mxu0  ;;  %v870_v50 = vpop.f32.mrf.mxu1  ;;  %v5194_v58 = vld [vmem:[#allocation10 + $0xb0] sm:$0xff] }
 0x227   :  { %v877_v51 = vmul.f32 0.5, %v873_v48  ;;  %v874_v54 = vadd.f32 %v799_v49, %v6780_v52  ;;  %v876_v57 = vadd.f32 %v870_v50, %v6781_v56  ;;  %v879_v60 = vmul.f32 0.5, %v875_v59  ;;  %v5170_v48 = vld [vmem:[#allocation10 + $0xe0] sm:$0xff]  ;;  %v5172_v49 = vld [vmem:[#allocation10 + $0xf0] sm:$0xff]  ;;  %v5174_v50 = vld [vmem:[#allocation10 + $0xc8] sm:$0xff] }
 0x228   :  { %v5180_v52 = vld [vmem:[#allocation10 + $0xc0] sm:$0xff]  ;;  %v5188_v56 = vld [vmem:[#allocation10 + $0xb8] sm:$0xff]  ;;  %v5198_v59 = vld [vmem:[#allocation10 + $0x88] sm:$0xff] }
 0x229   :  { %4164 = vtanh.f32 %v877_v51  ;;  %v878_v55 = vmul.f32 0.5, %v874_v54  ;;  %v5178_v51 = vld [vmem:[#allocation10 + $0xd8] sm:$0xff]  ;;  %v5182_v54 = vld [vmem:[#allocation10 + $0xd0] sm:$0xff] }
 0x22b   :  { %4166 = vtanh.f32 %v878_v55  ;;  %v5186_v55 = vld [vmem:[#allocation10 + $0xa8] sm:$0xff] }
 0x22c   :  { %4168 = vtanh.f32 %v876_v57  ;;  %v5192_v57 = vld [vmem:[#allocation10 + $0xa0] sm:$0xff] }
 0x22d   :  { %4170 = vtanh.f32 %v879_v60  ;;  %v5200_v60 = vld [vmem:[#allocation10 + $0x98] sm:$0xff] }
 0x22e   :  { %6786 = vst [vmem:[#allocation22_spill] sm:$0xff] %v5200_v60 }
 0x236   :  { %v4165_v61 = vpop.eup %4164 }
 0x237   :  { %v883_v63 = vadd.f32 1.0, %v4165_v61  ;;  %v5204_v61 = vld [vmem:[#allocation10 + $0x80] sm:$0xff] }
 0x238   :  { %v4167_v1 = vpop.eup %4166  ;;  %6787 = vst [vmem:[#allocation23_spill] sm:$0xff] %v5204_v61 }
 0x239   :  { %v886_v2 = vmul.f32 0.5, %v883_v63  ;;  %v884_v19 = vadd.f32 1.0, %v4167_v1  ;;  %v4169_v14 = vpop.eup %4168  ;;  %v5206_v63 = vld [vmem:[#allocation10 + $0x90] sm:$0xff]  ;;  %v5210_v1 = vld [vmem:[#allocation10 + $0x68] sm:$0xff] }
 0x23a   :  { %v4171_v26 = vpop.eup %4170  ;;  %6788 = vst [vmem:[#allocation24_spill] sm:$0xff] %v5206_v63  ;;  %6789 = vst [vmem:[#allocation25_spill] sm:$0xff] %v5210_v1 }
 0x23b   :  { %v887_v6 = vmul.f32 0.5, %v884_v19  ;;  %v891_v5 = vmul.f32 %v4169_v14, %v886_v2  ;;  %v885_v53 = vadd.f32 1.0, %v4171_v26  ;;  %v5212_v2 = vld [vmem:[#allocation10 + $0x78] sm:$0xff]  ;;  %v5216_v19 = vld [vmem:[#allocation10 + $0x60] sm:$0xff]  ;;  %v5218_v14 = vld [vmem:[#allocation10 + $0x70] sm:$0xff] }
 0x23c   :  { %6790 = vst [vmem:[#allocation26_spill] sm:$0xff] %v5212_v2  ;;  %6791 = vst [vmem:[#allocation27_spill] sm:$0xff] %v5216_v19  ;;  %v5230_v26 = vld [vmem:[#allocation10 + $0x50] sm:$0xff] }
 0x23d   :  { %v890_v16 = vmul.f32 %v887_v6, %v4985_v18  ;;  %v888_v13 = vmul.f32 0.5, %v885_v53  ;;  %v5084_v18 = vld [vmem:[#allocation10 + $0x1d8] sm:$0xff]  ;;  %6792 = vst [vmem:[#allocation28_spill] sm:$0xff] %v5218_v14  ;;  %v5222_v6 = vld [vmem:[#allocation10 + $0x48] sm:$0xff]  ;;  %6796 = vst [vmem:[#allocation32_spill] sm:$0xff] %v5230_v26 }
 0x23e   :  { %6793 = vst [vmem:[#allocation29_spill] sm:$0xff] %v5222_v6  ;;  %v5234_v53 = vld [vmem:[#allocation10 + $0x28] sm:$0xff] }
 0x23f   :  { %v5061_v15 = vadd.f32 %v891_v5, %v890_v16  ;;  %v5224_v5 = vld [vmem:[#allocation10 + $0x58] sm:$0xff]  ;;  %v5228_v16 = vld [vmem:[#allocation10 + $0x40] sm:$0xff]  ;;  %6797 = vst [vmem:[#allocation33_spill] sm:$0xff] %v5234_v53 }
 0x240   :  { %6794 = vst [vmem:[#allocation30_spill] sm:$0xff] %v5224_v5  ;;  %6795 = vst [vmem:[#allocation31_spill] sm:$0xff] %v5228_v16 }
 0x241   :  { %4172 = vtanh.f32 %v5061_v15 }
 0x24e   :  { %v4173_v17 = vpop.eup %4172 }
 0x24f   :  { %v5064_v44 = vmul.f32 %v4173_v17, %v888_v13  ;;  %v5236_v13 = vld [vmem:[#allocation10 + $0x38] sm:$0xff]  ;;  %v5240_v17 = vld [vmem:[#allocation10 + $0x20] sm:$0xff] }
 0x250   :  { %6798 = vst [vmem:[#allocation34_spill] sm:$0xff] %v5236_v13  ;;  %6799 = vst [vmem:[#allocation35_spill] sm:$0xff] %v5240_v17 }
 0x251   :  { %6783 = vst [vmem:[#allocation19_spill] sm:$0xff] %v5064_v44  ;;  %1033 = vmatmul.mubr.f32.vlgmr.msra.gmra.mxu0 %v5064_v44  ;;  %1104 = vmatmul.mubr.f32.vlgmr.msra.gmra.mxu1 %v5064_v44  ;;  %v5246_v44 = vld [vmem:[#allocation10 + $0x8] sm:$0xff] }
 0x252   :  { %1269 = vmatprep.mubr.f32.mxu0 %v6777_v42  ;;  %1340 = vmatprep.mubr.f32.mxu1 %v6777_v42  ;;  %6801 = vst [vmem:[#allocation37_spill] sm:$0xff] %v5246_v44  ;;  %v5252_v42 = vld [vmem:[#allocation10] sm:$0xff] }
 0x253   :  { %1206 = vmatpush1.msra.mxu0 %v5076_v9  ;;  %1277 = vmatpush1.msra.mxu1 %v5078_v8  ;;  %6803 = vst [vmem:[#allocation39_spill] sm:$0xff] %v5252_v42 }
 0x254   :  { %1207 = vmatprep.subr.mxu0 %v5082_v12  ;;  %1278 = vmatprep.subr.mxu1 %v5084_v18 }
 0x255   :  { %1208 = vmatpush1.msra.mxu0 %v5088_v11  ;;  %1279 = vmatpush1.msra.mxu1 %v5090_v35 }
 0x256   :  { %1209 = vmatprep.subr.mxu0 %v5094_v4  ;;  %1280 = vmatprep.subr.mxu1 %v5096_v62 }
 0x257   :  { %1210 = vmatpush1.msra.mxu0 %v5100_v20  ;;  %1281 = vmatpush1.msra.mxu1 %v5102_v21 }
 0x258   :  { %1211 = vmatprep.subr.mxu0 %v5106_v22  ;;  %1282 = vmatprep.subr.mxu1 %v5108_v23 }
 0x259   :  { %1212 = vmatpush1.msra.mxu0 %v5112_v24  ;;  %1283 = vmatpush1.msra.mxu1 %v5114_v25 }
 0x25a   :  { %1213 = vmatprep.subr.mxu0 %v5118_v27  ;;  %1284 = vmatprep.subr.mxu1 %v5120_v28 }
 0x25b   :  { %1214 = vmatpush1.msra.mxu0 %v5124_v29  ;;  %1285 = vmatpush1.msra.mxu1 %v5126_v30 }
 0x25c   :  { %1215 = vmatprep.subr.mxu0 %v5130_v31  ;;  %1286 = vmatprep.subr.mxu1 %v5132_v32 }
 0x25d   :  { %1216 = vmatpush1.msra.mxu0 %v5136_v33  ;;  %1287 = vmatpush1.msra.mxu1 %v5138_v34 }
 0x25e   :  { %1217 = vmatprep.subr.mxu0 %v5142_v36  ;;  %1288 = vmatprep.subr.mxu1 %v5144_v37 }
 0x25f   :  { %1218 = vmatpush1.msra.mxu0 %v5148_v38  ;;  %1289 = vmatpush1.msra.mxu1 %v5150_v39 }
 0x260   :  { %1219 = vmatprep.subr.mxu0 %v5154_v40  ;;  %1290 = vmatprep.subr.mxu1 %v5156_v41 }
 0x261   :  { %1220 = vmatpush1.msra.mxu0 %v5158_v43  ;;  %1291 = vmatpush1.msra.mxu1 %v5162_v45 }
 0x262   :  { %1221 = vmatprep.subr.mxu0 %v5164_v46  ;;  %1292 = vmatprep.subr.mxu1 %v5166_v47 }
 0x263   :  { %1222 = vmatpush1.msra.mxu0 %v5170_v48  ;;  %1293 = vmatpush1.msra.mxu1 %v5172_v49 }
 0x264   :  { %1223 = vmatprep.subr.mxu0 %v5174_v50  ;;  %1294 = vmatprep.subr.mxu1 %v5178_v51 }
 0x265   :  { %1224 = vmatpush1.msra.mxu0 %v5180_v52  ;;  %1295 = vmatpush1.msra.mxu1 %v5182_v54 }
 0x266   :  { %1225 = vmatprep.subr.mxu0 %v5186_v55  ;;  %1296 = vmatprep.subr.mxu1 %v5188_v56 }
 0x267   :  { %1226 = vmatpush1.msra.mxu0 %v5192_v57  ;;  %1297 = vmatpush1.msra.mxu1 %v5194_v58 }
 0x268   :  { %1227 = vmatprep.subr.mxu0 %v5198_v59  ;;  %1298 = vmatprep.subr.mxu1 %v5200_v60 }
 0x269   :  { %1228 = vmatpush1.msra.mxu0 %v5204_v61  ;;  %1299 = vmatpush1.msra.mxu1 %v5206_v63 }
 0x26a   :  { %1229 = vmatprep.subr.mxu0 %v5210_v1  ;;  %1300 = vmatprep.subr.mxu1 %v5212_v2 }
 0x26b   :  { %1230 = vmatpush1.msra.mxu0 %v5216_v19  ;;  %1301 = vmatpush1.msra.mxu1 %v5218_v14 }
 0x26c   :  { %1231 = vmatprep.subr.mxu0 %v5222_v6  ;;  %1302 = vmatprep.subr.mxu1 %v5224_v5  ;;  %v5254_v6 = vld [vmem:[#allocation10 + $0x10] sm:$0xff] }
 0x26d   :  { %1232 = vmatpush1.msra.mxu0 %v5228_v16  ;;  %1303 = vmatpush1.msra.mxu1 %v5230_v26  ;;  %6804 = vst [vmem:[#allocation41_spill] sm:$0xff] %v5254_v6  ;;  %v6805_v26 = vld [vmem:[#allocation45_spill] sm:$0xff] }
 0x26e   :  { %1233 = vmatprep.subr.mxu0 %v5234_v53  ;;  %1304 = vmatprep.subr.mxu1 %v5236_v13 }
 0x26f   :  { %1234 = vmatpush1.msra.mxu0 %v5240_v17  ;;  %1305 = vmatpush1.msra.mxu1 %v5242_v10  ;;  %v6806_v10 = vld [vmem:[#allocation47_spill] sm:$0xff] }
 0x270   :  { %1235 = vmatprep.subr.mxu0 %v5246_v44  ;;  %1306 = vmatprep.subr.mxu1 %v5248_v3  ;;  %v6807_v3 = vld [vmem:[#allocation48_spill] sm:$0xff] }
 0x271   :  { %1236 = vmatpush1.msra.mxu0 %v5252_v42  ;;  %1307 = vmatpush1.msra.mxu1 %v5254_v6  ;;  %v6808_v6 = vld [vmem:[#allocation46_spill] sm:$0xff] }
 0x272   :  { %1442 = vmatprep.subr.mxu0 %v5070_v7  ;;  %1513 = vmatprep.subr.mxu1 %v5072_v0 }
 0x311   :  { %v1034_v13 = vpop.f32.mrf.mxu0  ;;  %v1105_v53 = vpop.f32.mrf.mxu1 }
 0x312   :  { %v1110_v16 = vadd.f32 %v1034_v13, %v6805_v26  ;;  %v1112_v42 = vadd.f32 %v1105_v53, %v6808_v6  ;;  %v6817_v6 = vld [vmem:[#allocation29_spill] sm:$0xff]  ;;  %v6819_v53 = vld [vmem:[#allocation31_spill] sm:$0xff] }
 0x313   :  { %v1036_v5 = vpop.f32.mrf.mxu0  ;;  %v1107_v17 = vpop.f32.mrf.mxu1 }
 0x314   :  { %v1114_v14 = vmul.f32 0.5, %v1110_v16  ;;  %v1111_v19 = vadd.f32 %v1036_v5, %v6806_v10  ;;  %v1113_v2 = vadd.f32 %v1107_v17, %v6807_v3  ;;  %v1116_v7 = vmul.f32 0.5, %v1112_v42  ;;  %v6818_v5 = vld [vmem:[#allocation30_spill] sm:$0xff]  ;;  %v6820_v17 = vld [vmem:[#allocation32_spill] sm:$0xff] }
 0x316   :  { %4174 = vtanh.f32 %v1114_v14  ;;  %v1115_v44 = vmul.f32 0.5, %v1111_v19 }
 0x318   :  { %4176 = vtanh.f32 %v1115_v44 }
 0x319   :  { %4178 = vtanh.f32 %v1113_v2 }
 0x31a   :  { %4180 = vtanh.f32 %v1116_v7  ;;  %v6811_v7 = vld [vmem:[#allocation23_spill] sm:$0xff] }
 0x323   :  { %v4175_v1 = vpop.eup %4174 }
 0x324   :  { %v1120_v0 = vadd.f32 1.0, %v4175_v1  ;;  %v6816_v1 = vld [vmem:[#allocation28_spill] sm:$0xff] }
 0x325   :  { %v4177_v63 = vpop.eup %4176 }
 0x326   :  { %v1123_v61 = vmul.f32 0.5, %v1120_v0  ;;  %v1121_v26 = vadd.f32 1.0, %v4177_v63  ;;  %v4179_v13 = vpop.eup %4178  ;;  %v6812_v0 = vld [vmem:[#allocation24_spill] sm:$0xff]  ;;  %v6815_v63 = vld [vmem:[#allocation27_spill] sm:$0xff] }
 0x327   :  { %v4181_v3 = vpop.eup %4180 }
 0x328   :  { %v1124_v60 = vmul.f32 0.5, %v1121_v26  ;;  %v1128_v16 = vmul.f32 %v4179_v13, %v1123_v61  ;;  %v1122_v44 = vadd.f32 1.0, %v4181_v3  ;;  %v6814_v61 = vld [vmem:[#allocation26_spill] sm:$0xff]  ;;  %v6821_v26 = vld [vmem:[#allocation33_spill] sm:$0xff] }
 0x329   :  { %v6822_v13 = vld [vmem:[#allocation34_spill] sm:$0xff]  ;;  %v6825_v3 = vld [vmem:[#allocation37_spill] sm:$0xff] }
 0x32a   :  { %v1127_v10 = vmul.f32 %v1124_v60, %v5061_v15  ;;  %v1125_v2 = vmul.f32 0.5, %v1122_v44  ;;  %v6810_v15 = vld [vmem:[#allocation22_spill] sm:$0xff]  ;;  %v6813_v60 = vld [vmem:[#allocation25_spill] sm:$0xff] }
 0x32b   :  { %v6826_v44 = vld [vmem:[#allocation38_spill] sm:$0xff] }
 0x32c   :  { %v5269_v14 = vadd.f32 %v1128_v16, %v1127_v10  ;;  %v6823_v16 = vld [vmem:[#allocation35_spill] sm:$0xff]  ;;  %v6824_v10 = vld [vmem:[#allocation36_spill] sm:$0xff] }
 0x32e   :  { %4182 = vtanh.f32 %v5269_v14 }
 0x33b   :  { %v4183_v19 = vpop.eup %4182 }
 0x33c   :  { %v5272_v42 = vmul.f32 %v4183_v19, %v1125_v2  ;;  %v6827_v2 = vld [vmem:[#allocation39_spill] sm:$0xff]  ;;  %v6828_v19 = vmov 0.0  }
 0x33e   :  { %6809 = vst [vmem:[#allocation43_spill] sm:$0xff] %v5272_v42  ;;  %1270 = vmatmul.mubr.f32.vlgmr.msra.gmra.mxu0 %v5272_v42  ;;  %1341 = vmatmul.mubr.f32.vlgmr.msra.gmra.mxu1 %v5272_v42  ;;  %v6829_v42 = vld [vmem:[#allocation41_spill] sm:$0xff] }
 0x33f   :  { %1443 = vmatpush1.msra.mxu0 %v5076_v9  ;;  %1514 = vmatpush1.msra.mxu1 %v5078_v8 }
 0x340   :  { %1444 = vmatprep.subr.mxu0 %v5082_v12  ;;  %1515 = vmatprep.subr.mxu1 %v5084_v18 }
 0x341   :  { %1445 = vmatpush1.msra.mxu0 %v5088_v11  ;;  %1516 = vmatpush1.msra.mxu1 %v5090_v35 }
 0x342   :  { %1446 = vmatprep.subr.mxu0 %v5094_v4  ;;  %1517 = vmatprep.subr.mxu1 %v5096_v62 }
 0x343   :  { %1447 = vmatpush1.msra.mxu0 %v5100_v20  ;;  %1518 = vmatpush1.msra.mxu1 %v5102_v21 }
 0x344   :  { %1448 = vmatprep.subr.mxu0 %v5106_v22  ;;  %1519 = vmatprep.subr.mxu1 %v5108_v23 }
 0x345   :  { %1449 = vmatpush1.msra.mxu0 %v5112_v24  ;;  %1520 = vmatpush1.msra.mxu1 %v5114_v25 }
 0x346   :  { %1450 = vmatprep.subr.mxu0 %v5118_v27  ;;  %1521 = vmatprep.subr.mxu1 %v5120_v28 }
 0x347   :  { %1451 = vmatpush1.msra.mxu0 %v5124_v29  ;;  %1522 = vmatpush1.msra.mxu1 %v5126_v30 }
 0x348   :  { %1452 = vmatprep.subr.mxu0 %v5130_v31  ;;  %1523 = vmatprep.subr.mxu1 %v5132_v32 }
 0x349   :  { %1453 = vmatpush1.msra.mxu0 %v5136_v33  ;;  %1524 = vmatpush1.msra.mxu1 %v5138_v34 }
 0x34a   :  { %1454 = vmatprep.subr.mxu0 %v5142_v36  ;;  %1525 = vmatprep.subr.mxu1 %v5144_v37 }
 0x34b   :  { %1455 = vmatpush1.msra.mxu0 %v5148_v38  ;;  %1526 = vmatpush1.msra.mxu1 %v5150_v39 }
 0x34c   :  { %1456 = vmatprep.subr.mxu0 %v5154_v40  ;;  %1527 = vmatprep.subr.mxu1 %v5156_v41 }
 0x34d   :  { %1457 = vmatpush1.msra.mxu0 %v5158_v43  ;;  %1528 = vmatpush1.msra.mxu1 %v5162_v45 }
 0x34e   :  { %1458 = vmatprep.subr.mxu0 %v5164_v46  ;;  %1529 = vmatprep.subr.mxu1 %v5166_v47 }
 0x34f   :  { %1459 = vmatpush1.msra.mxu0 %v5170_v48  ;;  %1530 = vmatpush1.msra.mxu1 %v5172_v49 }
 0x350   :  { %1460 = vmatprep.subr.mxu0 %v5174_v50  ;;  %1531 = vmatprep.subr.mxu1 %v5178_v51 }
 0x351   :  { %1461 = vmatpush1.msra.mxu0 %v5180_v52  ;;  %1532 = vmatpush1.msra.mxu1 %v5182_v54 }
 0x352   :  { %1462 = vmatprep.subr.mxu0 %v5186_v55  ;;  %1533 = vmatprep.subr.mxu1 %v5188_v56 }
 0x353   :  { %1463 = vmatpush1.msra.mxu0 %v5192_v57  ;;  %1534 = vmatpush1.msra.mxu1 %v5194_v58 }
 0x354   :  { %1464 = vmatprep.subr.mxu0 %v5198_v59  ;;  %1535 = vmatprep.subr.mxu1 %v6810_v15 }
 0x355   :  { %1465 = vmatpush1.msra.mxu0 %v6811_v7  ;;  %1536 = vmatpush1.msra.mxu1 %v6812_v0 }
 0x356   :  { %1466 = vmatprep.subr.mxu0 %v6813_v60  ;;  %1537 = vmatprep.subr.mxu1 %v6814_v61 }
 0x357   :  { %1467 = vmatpush1.msra.mxu0 %v6815_v63  ;;  %1538 = vmatpush1.msra.mxu1 %v6816_v1  ;;  %v6834_v63 = vld [vmem:[#allocation52_spill] sm:$0xff] }
 0x358   :  { %1468 = vmatprep.subr.mxu0 %v6817_v6  ;;  %1539 = vmatprep.subr.mxu1 %v6818_v5 }
 0x359   :  { %1469 = vmatpush1.msra.mxu0 %v6819_v53  ;;  %1540 = vmatpush1.msra.mxu1 %v6820_v17  ;;  %v6830_v17 = vld [vmem:[#allocation20_spill] sm:$0xff]  ;;  %v6832_v53 = vld [vmem:[#allocation49_spill] sm:$0xff] }
 0x35a   :  { %1470 = vmatprep.subr.mxu0 %v6821_v26  ;;  %1541 = vmatprep.subr.mxu1 %v6822_v13  ;;  %v6831_v26 = vld [vmem:[#allocation21_spill] sm:$0xff] }
 0x35b   :  { %1471 = vmatpush1.msra.mxu0 %v6823_v16  ;;  %1542 = vmatpush1.msra.mxu1 %v6824_v10 }
 0x35c   :  { %1472 = vmatprep.subr.mxu0 %v6825_v3  ;;  %1543 = vmatprep.subr.mxu1 %v6826_v44  ;;  %v6833_v44 = vld [vmem:[#allocation51_spill] sm:$0xff] }
 0x35d   :  { %1473 = vmatpush1.msra.mxu0 %v6827_v2  ;;  %1506 = vmatprep.mubr.f32.mxu0 %v6828_v19 }
 0x35e   :  { %1544 = vmatpush1.msra.mxu1 %v6829_v42  ;;  %1577 = vmatprep.mubr.f32.mxu1 %v6828_v19  ;;  %v6835_v42 = vld [vmem:[#allocation50_spill] sm:$0xff] }
 0x35f   :  { %1679 = vmatprep.subr.mxu0 %v6830_v17  ;;  %1750 = vmatprep.subr.mxu1 %v6831_v26 }
 0x3fe   :  { %v1271_v13 = vpop.f32.mrf.mxu0  ;;  %v1342_v16 = vpop.f32.mrf.mxu1 }
 0x3ff   :  { %v1347_v10 = vadd.f32 %v1271_v13, %v6832_v53  ;;  %v1349_v19 = vadd.f32 %v1342_v16, %v6835_v42 }
 0x400   :  { %v1273_v5 = vpop.f32.mrf.mxu0  ;;  %v1344_v3 = vpop.f32.mrf.mxu1 }
 0x401   :  { %v1351_v6 = vmul.f32 0.5, %v1347_v10  ;;  %v1348_v1 = vadd.f32 %v1273_v5, %v6833_v44  ;;  %v1350_v61 = vadd.f32 %v1344_v3, %v6834_v63  ;;  %v1353_v17 = vmul.f32 0.5, %v1349_v19  ;;  %v6844_v3 = vld [vmem:[#allocation29_spill] sm:$0xff]  ;;  %v6845_v44 = vld [vmem:[#allocation30_spill] sm:$0xff]  ;;  %v6847_v19 = vld [vmem:[#allocation32_spill] sm:$0xff] }
 0x403   :  { %4184 = vtanh.f32 %v1351_v6  ;;  %v1352_v2 = vmul.f32 0.5, %v1348_v1 }
 0x405   :  { %4186 = vtanh.f32 %v1352_v2  ;;  %v6846_v2 = vld [vmem:[#allocation31_spill] sm:$0xff] }
 0x406   :  { %4188 = vtanh.f32 %v1350_v61 }
 0x407   :  { %4190 = vtanh.f32 %v1353_v17  ;;  %v6842_v17 = vld [vmem:[#allocation27_spill] sm:$0xff] }
 0x410   :  { %v4185_v60 = vpop.eup %4184 }
 0x411   :  { %v1357_v26 = vadd.f32 1.0, %v4185_v60  ;;  %v6841_v60 = vld [vmem:[#allocation26_spill] sm:$0xff] }
 0x412   :  { %v4187_v0 = vpop.eup %4186 }
 0x413   :  { %v1360_v7 = vmul.f32 0.5, %v1357_v26  ;;  %v1358_v53 = vadd.f32 1.0, %v4187_v0  ;;  %v4189_v13 = vpop.eup %4188  ;;  %v6840_v0 = vld [vmem:[#allocation25_spill] sm:$0xff]  ;;  %v6843_v26 = vld [vmem:[#allocation28_spill] sm:$0xff] }
 0x414   :  { %v4191_v63 = vpop.eup %4190 }
 0x415   :  { %v1361_v15 = vmul.f32 0.5, %v1358_v53  ;;  %v1365_v10 = vmul.f32 %v4189_v13, %v1360_v7  ;;  %v1359_v61 = vadd.f32 1.0, %v4191_v63  ;;  %v6839_v7 = vld [vmem:[#allocation24_spill] sm:$0xff]  ;;  %v6848_v53 = vld [vmem:[#allocation33_spill] sm:$0xff]  ;;  %v6849_v13 = vld [vmem:[#allocation34_spill] sm:$0xff] }
 0x416   :  { %v6852_v63 = vld [vmem:[#allocation37_spill] sm:$0xff] }
 0x417   :  { %v1364_v5 = vmul.f32 %v1361_v15, %v5269_v14  ;;  %v1362_v1 = vmul.f32 0.5, %v1359_v61  ;;  %v6837_v14 = vld [vmem:[#allocation22_spill] sm:$0xff]  ;;  %v6838_v15 = vld [vmem:[#allocation23_spill] sm:$0xff] }
 0x418   :  { %v6853_v61 = vld [vmem:[#allocation38_spill] sm:$0xff] }
 0x419   :  { %v5347_v6 = vadd.f32 %v1365_v10, %v1364_v5  ;;  %v6850_v10 = vld [vmem:[#allocation35_spill] sm:$0xff]  ;;  %v6851_v5 = vld [vmem:[#allocation36_spill] sm:$0xff] }
 0x41b   :  { %4192 = vtanh.f32 %v5347_v6 }
 0x428   :  { %v4193_v42 = vpop.eup %4192 }
 0x429   :  { %v5350_v16 = vmul.f32 %v4193_v42, %v1362_v1  ;;  %v6854_v1 = vld [vmem:[#allocation39_spill] sm:$0xff]  ;;  %v6855_v42 = vmov 0.0  }
 0x42b   :  { %6836 = vst [vmem:[#allocation44_spill] sm:$0xff] %v5350_v16  ;;  %1507 = vmatmul.mubr.f32.vlgmr.msra.gmra.mxu0 %v5350_v16  ;;  %1578 = vmatmul.mubr.f32.vlgmr.msra.gmra.mxu1 %v5350_v16  ;;  %v6856_v16 = vld [vmem:[#allocation41_spill] sm:$0xff] }
 0x42c   :  { %1680 = vmatpush1.msra.mxu0 %v5076_v9  ;;  %1751 = vmatpush1.msra.mxu1 %v5078_v8 }
 0x42d   :  { %1681 = vmatprep.subr.mxu0 %v5082_v12  ;;  %1752 = vmatprep.subr.mxu1 %v5084_v18 }
 0x42e   :  { %1682 = vmatpush1.msra.mxu0 %v5088_v11  ;;  %1753 = vmatpush1.msra.mxu1 %v5090_v35 }
 0x42f   :  { %1683 = vmatprep.subr.mxu0 %v5094_v4  ;;  %1754 = vmatprep.subr.mxu1 %v5096_v62 }
 0x430   :  { %1684 = vmatpush1.msra.mxu0 %v5100_v20  ;;  %1755 = vmatpush1.msra.mxu1 %v5102_v21 }
 0x431   :  { %1685 = vmatprep.subr.mxu0 %v5106_v22  ;;  %1756 = vmatprep.subr.mxu1 %v5108_v23 }
 0x432   :  { %1686 = vmatpush1.msra.mxu0 %v5112_v24  ;;  %1757 = vmatpush1.msra.mxu1 %v5114_v25 }
 0x433   :  { %1687 = vmatprep.subr.mxu0 %v5118_v27  ;;  %1758 = vmatprep.subr.mxu1 %v5120_v28 }
 0x434   :  { %1688 = vmatpush1.msra.mxu0 %v5124_v29  ;;  %1759 = vmatpush1.msra.mxu1 %v5126_v30 }
 0x435   :  { %1689 = vmatprep.subr.mxu0 %v5130_v31  ;;  %1760 = vmatprep.subr.mxu1 %v5132_v32 }
 0x436   :  { %1690 = vmatpush1.msra.mxu0 %v5136_v33  ;;  %1761 = vmatpush1.msra.mxu1 %v5138_v34 }
 0x437   :  { %1691 = vmatprep.subr.mxu0 %v5142_v36  ;;  %1762 = vmatprep.subr.mxu1 %v5144_v37 }
 0x438   :  { %1692 = vmatpush1.msra.mxu0 %v5148_v38  ;;  %1763 = vmatpush1.msra.mxu1 %v5150_v39 }
 0x439   :  { %1693 = vmatprep.subr.mxu0 %v5154_v40  ;;  %1764 = vmatprep.subr.mxu1 %v5156_v41 }
 0x43a   :  { %1694 = vmatpush1.msra.mxu0 %v5158_v43  ;;  %1765 = vmatpush1.msra.mxu1 %v5162_v45 }
 0x43b   :  { %1695 = vmatprep.subr.mxu0 %v5164_v46  ;;  %1766 = vmatprep.subr.mxu1 %v5166_v47 }
 0x43c   :  { %1696 = vmatpush1.msra.mxu0 %v5170_v48  ;;  %1767 = vmatpush1.msra.mxu1 %v5172_v49 }
 0x43d   :  { %1697 = vmatprep.subr.mxu0 %v5174_v50  ;;  %1768 = vmatprep.subr.mxu1 %v5178_v51 }
 0x43e   :  { %1698 = vmatpush1.msra.mxu0 %v5180_v52  ;;  %1769 = vmatpush1.msra.mxu1 %v5182_v54 }
 0x43f   :  { %1699 = vmatprep.subr.mxu0 %v5186_v55  ;;  %1770 = vmatprep.subr.mxu1 %v5188_v56 }
 0x440   :  { %1700 = vmatpush1.msra.mxu0 %v5192_v57  ;;  %1771 = vmatpush1.msra.mxu1 %v5194_v58 }
 0x441   :  { %1701 = vmatprep.subr.mxu0 %v5198_v59  ;;  %1772 = vmatprep.subr.mxu1 %v6837_v14 }
 0x442   :  { %1702 = vmatpush1.msra.mxu0 %v6838_v15  ;;  %1773 = vmatpush1.msra.mxu1 %v6839_v7 }
 0x443   :  { %1703 = vmatprep.subr.mxu0 %v6840_v0  ;;  %1774 = vmatprep.subr.mxu1 %v6841_v60 }
 0x444   :  { %1704 = vmatpush1.msra.mxu0 %v6842_v17  ;;  %1775 = vmatpush1.msra.mxu1 %v6843_v26  ;;  %v6861_v17 = vld [vmem:[#allocation56_spill] sm:$0xff] }
 0x445   :  { %1705 = vmatprep.subr.mxu0 %v6844_v3  ;;  %1776 = vmatprep.subr.mxu1 %v6845_v44 }
 0x446   :  { %1706 = vmatpush1.msra.mxu0 %v6846_v2  ;;  %1777 = vmatpush1.msra.mxu1 %v6847_v19  ;;  %v6857_v19 = vld [vmem:[#allocation20_spill] sm:$0xff]  ;;  %v6859_v2 = vld [vmem:[#allocation53_spill] sm:$0xff] }
 0x447   :  { %1707 = vmatprep.subr.mxu0 %v6848_v53  ;;  %1778 = vmatprep.subr.mxu1 %v6849_v13  ;;  %v6858_v53 = vld [vmem:[#allocation21_spill] sm:$0xff] }
 0x448   :  { %1708 = vmatpush1.msra.mxu0 %v6850_v10  ;;  %1779 = vmatpush1.msra.mxu1 %v6851_v5 }
 0x449   :  { %1709 = vmatprep.subr.mxu0 %v6852_v63  ;;  %1780 = vmatprep.subr.mxu1 %v6853_v61  ;;  %v6860_v61 = vld [vmem:[#allocation55_spill] sm:$0xff] }
 0x44a   :  { %1710 = vmatpush1.msra.mxu0 %v6854_v1  ;;  %1743 = vmatprep.mubr.f32.mxu0 %v6855_v42 }
 0x44b   :  { %1781 = vmatpush1.msra.mxu1 %v6856_v16  ;;  %1814 = vmatprep.mubr.f32.mxu1 %v6855_v42  ;;  %v6862_v16 = vld [vmem:[#allocation54_spill] sm:$0xff] }
 0x44c   :  { %1916 = vmatprep.subr.mxu0 %v6857_v19  ;;  %1987 = vmatprep.subr.mxu1 %v6858_v53 }
 0x4eb   :  { %v1508_v13 = vpop.f32.mrf.mxu0  ;;  %v1579_v10 = vpop.f32.mrf.mxu1 }
 0x4ec   :  { %v1584_v5 = vadd.f32 %v1508_v13, %v6859_v2  ;;  %v1586_v42 = vadd.f32 %v1579_v10, %v6862_v16 }
 0x4ed   :  { %v1510_v44 = vpop.f32.mrf.mxu0  ;;  %v1581_v63 = vpop.f32.mrf.mxu1 }
 0x4ee   :  { %v1588_v3 = vmul.f32 0.5, %v1584_v5  ;;  %v1585_v26 = vadd.f32 %v1510_v44, %v6860_v61  ;;  %v1587_v60 = vadd.f32 %v1581_v63, %v6861_v17  ;;  %v1590_v19 = vmul.f32 0.5, %v1586_v42  ;;  %v2152_v42 = vld [vmem:[#allocation10 + $0x1f8] sm:$0xff] }
 0x4f0   :  { %4194 = vtanh.f32 %v1588_v3  ;;  %v1589_v1 = vmul.f32 0.5, %v1585_v26 }
 0x4f2   :  { %4196 = vtanh.f32 %v1589_v1  ;;  %v2150_v1 = vld [vmem:[#allocation10 + $0x1e8] sm:$0xff] }
 0x4f3   :  { %4198 = vtanh.f32 %v1587_v60 }
 0x4f4   :  { %4200 = vtanh.f32 %v1590_v19  ;;  %v2149_v19 = vld [vmem:[#allocation10 + $0x1e0] sm:$0xff] }
 0x4fd   :  { %v4195_v0 = vpop.eup %4194 }
 0x4fe   :  { %v1594_v53 = vadd.f32 1.0, %v4195_v0 }
 0x4ff   :  { %v4197_v7 = vpop.eup %4196 }
 0x500   :  { %v1597_v15 = vmul.f32 0.5, %v1594_v53  ;;  %v1595_v2 = vadd.f32 1.0, %v4197_v7  ;;  %v4199_v13 = vpop.eup %4198  ;;  %v2151_v53 = vld [vmem:[#allocation10 + $0x1f0] sm:$0xff] }
 0x501   :  { %v4201_v17 = vpop.eup %4200 }
 0x502   :  { %v1598_v14 = vmul.f32 0.5, %v1595_v2  ;;  %v1602_v5 = vmul.f32 %v4199_v13, %v1597_v15  ;;  %v1596_v60 = vadd.f32 1.0, %v4201_v17  ;;  %v2146_v2 = vld [vmem:[#allocation10 + $0x1c8] sm:$0xff]  ;;  %v2148_v13 = vld [vmem:[#allocation10 + $0x1d8] sm:$0xff] }
 0x503   :  { %v2144_v17 = vld [vmem:[#allocation10 + $0x1b8] sm:$0xff] }
 0x504   :  { %v1601_v44 = vmul.f32 %v1598_v14, %v5347_v6  ;;  %v1599_v26 = vmul.f32 0.5, %v1596_v60  ;;  %v2141_v60 = vld [vmem:[#allocation10 + $0x1a0] sm:$0xff] }
 0x506   :  { %v5425_v3 = vadd.f32 %v1602_v5, %v1601_v44  ;;  %v2145_v5 = vld [vmem:[#allocation10 + $0x1c0] sm:$0xff]  ;;  %v2147_v44 = vld [vmem:[#allocation10 + $0x1d0] sm:$0xff] }
 0x508   :  { %4202 = vtanh.f32 %v5425_v3 }
 0x515   :  { %v4203_v16 = vpop.eup %4202 }
 0x516   :  { %v5428_v10 = vmul.f32 %v4203_v16, %v1599_v26  ;;  %v2143_v26 = vld [vmem:[#allocation10 + $0x1b0] sm:$0xff]  ;;  %v2138_v16 = vld [vmem:[#allocation10 + $0x188] sm:$0xff] }
 0x518   :  { %1744 = vmatmul.mubr.f32.vlgmr.msra.gmra.mxu0 %v5428_v10  ;;  %1815 = vmatmul.mubr.f32.vlgmr.msra.gmra.mxu1 %v5428_v10 }
 0x519   :  { %1917 = vmatpush1.msra.mxu0 %v5076_v9  ;;  %1988 = vmatpush1.msra.mxu1 %v5078_v8  ;;  %v6863_v9 = vld [vmem:[#allocation22_spill] sm:$0xff]  ;;  %v6864_v8 = vld [vmem:[#allocation23_spill] sm:$0xff] }
 0x51a   :  { %1918 = vmatprep.subr.mxu0 %v5082_v12  ;;  %1989 = vmatprep.subr.mxu1 %v5084_v18  ;;  %v6865_v12 = vld [vmem:[#allocation24_spill] sm:$0xff]  ;;  %v6866_v18 = vld [vmem:[#allocation25_spill] sm:$0xff] }
 0x51b   :  { %1919 = vmatpush1.msra.mxu0 %v5088_v11  ;;  %1990 = vmatpush1.msra.mxu1 %v5090_v35  ;;  %v6867_v11 = vld [vmem:[#allocation26_spill] sm:$0xff]  ;;  %v6868_v35 = vld [vmem:[#allocation27_spill] sm:$0xff] }
 0x51c   :  { %1920 = vmatprep.subr.mxu0 %v5094_v4  ;;  %1991 = vmatprep.subr.mxu1 %v5096_v62  ;;  %v6869_v4 = vld [vmem:[#allocation28_spill] sm:$0xff]  ;;  %v6870_v62 = vld [vmem:[#allocation29_spill] sm:$0xff] }
 0x51d   :  { %1921 = vmatpush1.msra.mxu0 %v5100_v20  ;;  %1992 = vmatpush1.msra.mxu1 %v5102_v21  ;;  %v6871_v20 = vld [vmem:[#allocation30_spill] sm:$0xff]  ;;  %v6872_v21 = vld [vmem:[#allocation31_spill] sm:$0xff] }
 0x51e   :  { %1922 = vmatprep.subr.mxu0 %v5106_v22  ;;  %1993 = vmatprep.subr.mxu1 %v5108_v23  ;;  %v6873_v22 = vld [vmem:[#allocation32_spill] sm:$0xff]  ;;  %v6874_v23 = vld [vmem:[#allocation33_spill] sm:$0xff] }
 0x51f   :  { %1923 = vmatpush1.msra.mxu0 %v5112_v24  ;;  %1994 = vmatpush1.msra.mxu1 %v5114_v25  ;;  %v6875_v24 = vld [vmem:[#allocation34_spill] sm:$0xff]  ;;  %v6876_v25 = vld [vmem:[#allocation35_spill] sm:$0xff] }
 0x520   :  { %1924 = vmatprep.subr.mxu0 %v5118_v27  ;;  %1995 = vmatprep.subr.mxu1 %v5120_v28  ;;  %v6877_v27 = vld [vmem:[#allocation36_spill] sm:$0xff]  ;;  %v6878_v28 = vld [vmem:[#allocation37_spill] sm:$0xff] }
 0x521   :  { %1925 = vmatpush1.msra.mxu0 %v5124_v29  ;;  %1996 = vmatpush1.msra.mxu1 %v5126_v30  ;;  %v6879_v29 = vld [vmem:[#allocation38_spill] sm:$0xff]  ;;  %v6880_v30 = vld [vmem:[#allocation39_spill] sm:$0xff] }
 0x522   :  { %1926 = vmatprep.subr.mxu0 %v5130_v31  ;;  %1997 = vmatprep.subr.mxu1 %v5132_v32  ;;  %v6881_v31 = vmov 0.0   ;;  %v6882_v32 = vld [vmem:[#allocation41_spill] sm:$0xff] }
 0x523   :  { %1927 = vmatpush1.msra.mxu0 %v5136_v33  ;;  %1998 = vmatpush1.msra.mxu1 %v5138_v34 }
 0x524   :  { %1928 = vmatprep.subr.mxu0 %v5142_v36  ;;  %1999 = vmatprep.subr.mxu1 %v5144_v37  ;;  %v6883_v36 = vld [vmem:[#allocation57_spill] sm:$0xff] }
 0x525   :  { %1929 = vmatpush1.msra.mxu0 %v5148_v38  ;;  %2000 = vmatpush1.msra.mxu1 %v5150_v39 }
 0x526   :  { %1930 = vmatprep.subr.mxu0 %v5154_v40  ;;  %2001 = vmatprep.subr.mxu1 %v5156_v41  ;;  %v6884_v41 = vld [vmem:[#allocation59_spill] sm:$0xff] }
 0x527   :  { %1931 = vmatpush1.msra.mxu0 %v5158_v43  ;;  %2002 = vmatpush1.msra.mxu1 %v5162_v45 }
 0x528   :  { %1932 = vmatprep.subr.mxu0 %v5164_v46  ;;  %2003 = vmatprep.subr.mxu1 %v5166_v47  ;;  %v6885_v46 = vld [vmem:[#allocation60_spill] sm:$0xff] }
 0x529   :  { %1933 = vmatpush1.msra.mxu0 %v5170_v48  ;;  %2004 = vmatpush1.msra.mxu1 %v5172_v49  ;;  %v6886_v48 = vld [vmem:[#allocation58_spill] sm:$0xff] }
 0x52a   :  { %1934 = vmatprep.subr.mxu0 %v5174_v50  ;;  %2005 = vmatprep.subr.mxu1 %v5178_v51 }
 0x52b   :  { %1935 = vmatpush1.msra.mxu0 %v5180_v52  ;;  %2006 = vmatpush1.msra.mxu1 %v5182_v54 }
 0x52c   :  { %1936 = vmatprep.subr.mxu0 %v5186_v55  ;;  %2007 = vmatprep.subr.mxu1 %v5188_v56 }
 0x52d   :  { %1937 = vmatpush1.msra.mxu0 %v5192_v57  ;;  %2008 = vmatpush1.msra.mxu1 %v5194_v58 }
 0x52e   :  { %1938 = vmatprep.subr.mxu0 %v5198_v59  ;;  %2009 = vmatprep.subr.mxu1 %v6863_v9  ;;  %v2140_v9 = vld [vmem:[#allocation10 + $0x198] sm:$0xff] }
 0x52f   :  { %1939 = vmatpush1.msra.mxu0 %v6864_v8  ;;  %2010 = vmatpush1.msra.mxu1 %v6865_v12  ;;  %v2137_v8 = vld [vmem:[#allocation10 + $0x180] sm:$0xff]  ;;  %v2139_v12 = vld [vmem:[#allocation10 + $0x190] sm:$0xff] }
 0x530   :  { %1940 = vmatprep.subr.mxu0 %v6866_v18  ;;  %2011 = vmatprep.subr.mxu1 %v6867_v11  ;;  %v2134_v18 = vld [vmem:[#allocation10 + $0x168] sm:$0xff]  ;;  %v2136_v11 = vld [vmem:[#allocation10 + $0x178] sm:$0xff] }
 0x531   :  { %1941 = vmatpush1.msra.mxu0 %v6868_v35  ;;  %2012 = vmatpush1.msra.mxu1 %v6869_v4  ;;  %v2133_v35 = vld [vmem:[#allocation10 + $0x160] sm:$0xff]  ;;  %v2135_v4 = vld [vmem:[#allocation10 + $0x170] sm:$0xff] }
 0x532   :  { %1942 = vmatprep.subr.mxu0 %v6870_v62  ;;  %2013 = vmatprep.subr.mxu1 %v6871_v20  ;;  %v2130_v62 = vld [vmem:[#allocation10 + $0x148] sm:$0xff]  ;;  %v2132_v20 = vld [vmem:[#allocation10 + $0x158] sm:$0xff] }
 0x533   :  { %1943 = vmatpush1.msra.mxu0 %v6872_v21  ;;  %2014 = vmatpush1.msra.mxu1 %v6873_v22  ;;  %v2129_v21 = vld [vmem:[#allocation10 + $0x140] sm:$0xff]  ;;  %v2131_v22 = vld [vmem:[#allocation10 + $0x150] sm:$0xff] }
 0x534   :  { %1944 = vmatprep.subr.mxu0 %v6874_v23  ;;  %2015 = vmatprep.subr.mxu1 %v6875_v24  ;;  %v2126_v23 = vld [vmem:[#allocation10 + $0x128] sm:$0xff]  ;;  %v2128_v24 = vld [vmem:[#allocation10 + $0x138] sm:$0xff] }
 0x535   :  { %1945 = vmatpush1.msra.mxu0 %v6876_v25  ;;  %2016 = vmatpush1.msra.mxu1 %v6877_v27  ;;  %v2125_v25 = vld [vmem:[#allocation10 + $0x120] sm:$0xff]  ;;  %v2127_v27 = vld [vmem:[#allocation10 + $0x130] sm:$0xff] }
 0x536   :  { %1946 = vmatprep.subr.mxu0 %v6878_v28  ;;  %2017 = vmatprep.subr.mxu1 %v6879_v29  ;;  %v2122_v28 = vld [vmem:[#allocation10 + $0x108] sm:$0xff]  ;;  %v2124_v29 = vld [vmem:[#allocation10 + $0x118] sm:$0xff] }
 0x537   :  { %1947 = vmatpush1.msra.mxu0 %v6880_v30  ;;  %1980 = vmatprep.mubr.f32.mxu0 %v6881_v31  ;;  %v2121_v30 = vld [vmem:[#allocation10 + $0x100] sm:$0xff] }
 0x538   :  { %2018 = vmatpush1.msra.mxu1 %v6882_v32  ;;  %2051 = vmatprep.mubr.f32.mxu1 %v6881_v31  ;;  %v2123_v32 = vld [vmem:[#allocation10 + $0x110] sm:$0xff] }
 0x539   :  { %2153 = vmatprep.subr.mxu0 %v2150_v1  ;;  %2224 = vmatprep.subr.mxu1 %v2152_v42  ;;  %v2090_v1 = vld [vmem:[#allocation10 + $0x8] sm:$0xff]  ;;  %v2092_v42 = vld [vmem:[#allocation10 + $0x18] sm:$0xff] }
 0x5d8   :  { %v1745_v33 = vpop.f32.mrf.mxu0  ;;  %v1816_v34 = vpop.f32.mrf.mxu1 }
 0x5d9   :  { %v1821_v37 = vadd.f32 %v1745_v33, %v6883_v36  ;;  %v1823_v49 = vadd.f32 %v1816_v34, %v6886_v48  ;;  %v2118_v33 = vld [vmem:[#allocation10 + $0xe8] sm:$0xff]  ;;  %v2120_v34 = vld [vmem:[#allocation10 + $0xf8] sm:$0xff]  ;;  %v2117_v36 = vld [vmem:[#allocation10 + $0xe0] sm:$0xff] }
 0x5da   :  { %v1747_v38 = vpop.f32.mrf.mxu0  ;;  %v1818_v39 = vpop.f32.mrf.mxu1  ;;  %v2106_v48 = vld [vmem:[#allocation10 + $0x88] sm:$0xff] }
 0x5db   :  { %v1825_v40 = vmul.f32 0.5, %v1821_v37  ;;  %v1822_v43 = vadd.f32 %v1747_v38, %v6884_v41  ;;  %v1824_v47 = vadd.f32 %v1818_v39, %v6885_v46  ;;  %v1827_v50 = vmul.f32 0.5, %v1823_v49  ;;  %v2119_v37 = vld [vmem:[#allocation10 + $0xf0] sm:$0xff]  ;;  %v2114_v38 = vld [vmem:[#allocation10 + $0xc8] sm:$0xff]  ;;  %v2116_v39 = vld [vmem:[#allocation10 + $0xd8] sm:$0xff] }
 0x5dc   :  { %v2115_v41 = vld [vmem:[#allocation10 + $0xd0] sm:$0xff]  ;;  %v2109_v46 = vld [vmem:[#allocation10 + $0xa0] sm:$0xff]  ;;  %v2108_v49 = vld [vmem:[#allocation10 + $0x98] sm:$0xff] }
 0x5dd   :  { %4204 = vtanh.f32 %v1825_v40  ;;  %v1826_v45 = vmul.f32 0.5, %v1822_v43  ;;  %v2113_v40 = vld [vmem:[#allocation10 + $0xc0] sm:$0xff]  ;;  %v2110_v43 = vld [vmem:[#allocation10 + $0xa8] sm:$0xff] }
 0x5df   :  { %4206 = vtanh.f32 %v1826_v45  ;;  %v2112_v45 = vld [vmem:[#allocation10 + $0xb8] sm:$0xff] }
 0x5e0   :  { %4208 = vtanh.f32 %v1824_v47  ;;  %v2111_v47 = vld [vmem:[#allocation10 + $0xb0] sm:$0xff] }
 0x5e1   :  { %4210 = vtanh.f32 %v1827_v50  ;;  %v2105_v50 = vld [vmem:[#allocation10 + $0x80] sm:$0xff] }
 0x5ea   :  { %v4205_v51 = vpop.eup %4204 }
 0x5eb   :  { %v1831_v52 = vadd.f32 1.0, %v4205_v51  ;;  %v2107_v51 = vld [vmem:[#allocation10 + $0x90] sm:$0xff] }
 0x5ec   :  { %v4207_v54 = vpop.eup %4206 }
 0x5ed   :  { %v1834_v55 = vmul.f32 0.5, %v1831_v52  ;;  %v1832_v56 = vadd.f32 1.0, %v4207_v54  ;;  %v4209_v57 = vpop.eup %4208  ;;  %v2102_v52 = vld [vmem:[#allocation10 + $0x68] sm:$0xff]  ;;  %v2104_v54 = vld [vmem:[#allocation10 + $0x78] sm:$0xff] }
 0x5ee   :  { %v4211_v15 = vpop.eup %4210 }
 0x5ef   :  { %v1835_v58 = vmul.f32 0.5, %v1832_v56  ;;  %v1839_v59 = vmul.f32 %v4209_v57, %v1834_v55  ;;  %v1833_v7 = vadd.f32 1.0, %v4211_v15  ;;  %v2101_v55 = vld [vmem:[#allocation10 + $0x60] sm:$0xff]  ;;  %v2103_v56 = vld [vmem:[#allocation10 + $0x70] sm:$0xff]  ;;  %v2098_v57 = vld [vmem:[#allocation10 + $0x48] sm:$0xff] }
 0x5f0   :  { %v2094_v15 = vld [vmem:[#allocation10 + $0x28] sm:$0xff] }
 0x5f1   :  { %v1838_v6 = vmul.f32 %v1835_v58, %v5425_v3  ;;  %v1836_v0 = vmul.f32 0.5, %v1833_v7  ;;  %v2142_v3 = vld [vmem:[#allocation10 + $0x1a8] sm:$0xff]  ;;  %v2100_v58 = vld [vmem:[#allocation10 + $0x58] sm:$0xff] }
 0x5f2   :  { %v2096_v7 = vld [vmem:[#allocation10 + $0x38] sm:$0xff] }
 0x5f3   :  { %v5501_v14 = vadd.f32 %v1839_v59, %v1838_v6  ;;  %v2097_v59 = vld [vmem:[#allocation10 + $0x40] sm:$0xff]  ;;  %v2099_v6 = vld [vmem:[#allocation10 + $0x50] sm:$0xff] }
 0x5f5   :  { %4212 = vtanh.f32 %v5501_v14 }
 0x602   :  { %v4213_v63 = vpop.eup %4212 }
 0x603   :  { %v5504_v61 = vmul.f32 %v4213_v63, %v1836_v0  ;;  %v2093_v0 = vld [vmem:[#allocation10 + $0x20] sm:$0xff]  ;;  %v2095_v63 = vld [vmem:[#allocation10 + $0x30] sm:$0xff] }
 0x605   :  { %1981 = vmatmul.mubr.f32.vlgmr.msra.gmra.mxu0 %v5504_v61  ;;  %2052 = vmatmul.mubr.f32.vlgmr.msra.gmra.mxu1 %v5504_v61 }
 0x606   :  { %2217 = vmatprep.mubr.f32.mxu0 %v6881_v31  ;;  %2288 = vmatprep.mubr.f32.mxu1 %v6881_v31 }
 0x607   :  { %2154 = vmatpush1.msra.mxu0 %v2149_v19  ;;  %2225 = vmatpush1.msra.mxu1 %v2151_v53  ;;  %v2089_v19 = vld [vmem:[#allocation10] sm:$0xff]  ;;  %v2091_v53 = vld [vmem:[#allocation10 + $0x10] sm:$0xff] }
 0x608   :  { %2155 = vmatprep.subr.mxu0 %v2146_v2  ;;  %2226 = vmatprep.subr.mxu1 %v2148_v13  ;;  %v2388_v2 = vld [vmem:[#allocation11 + $0x1e8] sm:$0xff]  ;;  %v2390_v13 = vld [vmem:[#allocation11 + $0x1f8] sm:$0xff] }
 0x609   :  { %2156 = vmatpush1.msra.mxu0 %v2145_v5  ;;  %2227 = vmatpush1.msra.mxu1 %v2147_v44 }
 0x60a   :  { %2157 = vmatprep.subr.mxu0 %v2142_v3  ;;  %2228 = vmatprep.subr.mxu1 %v2144_v17  ;;  %v6887_v3 = vld [vmem:[#allocation61_spill] sm:$0xff] }
 0x60b   :  { %2158 = vmatpush1.msra.mxu0 %v2141_v60  ;;  %2229 = vmatpush1.msra.mxu1 %v2143_v26 }
 0x60c   :  { %2159 = vmatprep.subr.mxu0 %v2138_v16  ;;  %2230 = vmatprep.subr.mxu1 %v2140_v9  ;;  %v6888_v9 = vld [vmem:[#allocation63_spill] sm:$0xff] }
 0x60d   :  { %2160 = vmatpush1.msra.mxu0 %v2137_v8  ;;  %2231 = vmatpush1.msra.mxu1 %v2139_v12 }
 0x60e   :  { %2161 = vmatprep.subr.mxu0 %v2134_v18  ;;  %2232 = vmatprep.subr.mxu1 %v2136_v11  ;;  %v6889_v18 = vld [vmem:[#allocation64_spill] sm:$0xff] }
 0x60f   :  { %2162 = vmatpush1.msra.mxu0 %v2133_v35  ;;  %2233 = vmatpush1.msra.mxu1 %v2135_v4  ;;  %v6890_v35 = vld [vmem:[#allocation62_spill] sm:$0xff] }
 0x610   :  { %2163 = vmatprep.subr.mxu0 %v2130_v62  ;;  %2234 = vmatprep.subr.mxu1 %v2132_v20 }
 0x611   :  { %2164 = vmatpush1.msra.mxu0 %v2129_v21  ;;  %2235 = vmatpush1.msra.mxu1 %v2131_v22 }
 0x612   :  { %2165 = vmatprep.subr.mxu0 %v2126_v23  ;;  %2236 = vmatprep.subr.mxu1 %v2128_v24 }
 0x613   :  { %2166 = vmatpush1.msra.mxu0 %v2125_v25  ;;  %2237 = vmatpush1.msra.mxu1 %v2127_v27 }
 0x614   :  { %2167 = vmatprep.subr.mxu0 %v2122_v28  ;;  %2238 = vmatprep.subr.mxu1 %v2124_v29 }
 0x615   :  { %2168 = vmatpush1.msra.mxu0 %v2121_v30  ;;  %2239 = vmatpush1.msra.mxu1 %v2123_v32 }
 0x616   :  { %2169 = vmatprep.subr.mxu0 %v2118_v33  ;;  %2240 = vmatprep.subr.mxu1 %v2120_v34 }
 0x617   :  { %2170 = vmatpush1.msra.mxu0 %v2117_v36  ;;  %2241 = vmatpush1.msra.mxu1 %v2119_v37 }
 0x618   :  { %2171 = vmatprep.subr.mxu0 %v2114_v38  ;;  %2242 = vmatprep.subr.mxu1 %v2116_v39  ;;  %v2387_v38 = vld [vmem:[#allocation11 + $0x1e0] sm:$0xff]  ;;  %v2389_v39 = vld [vmem:[#allocation11 + $0x1f0] sm:$0xff] }
 0x619   :  { %2172 = vmatpush1.msra.mxu0 %v2113_v40  ;;  %2243 = vmatpush1.msra.mxu1 %v2115_v41  ;;  %v2384_v40 = vld [vmem:[#allocation11 + $0x1c8] sm:$0xff]  ;;  %v2386_v41 = vld [vmem:[#allocation11 + $0x1d8] sm:$0xff] }
 0x61a   :  { %2173 = vmatprep.subr.mxu0 %v2110_v43  ;;  %2244 = vmatprep.subr.mxu1 %v2112_v45  ;;  %v2383_v43 = vld [vmem:[#allocation11 + $0x1c0] sm:$0xff]  ;;  %v2380_v45 = vld [vmem:[#allocation11 + $0x1a8] sm:$0xff] }
 0x61b   :  { %2174 = vmatpush1.msra.mxu0 %v2109_v46  ;;  %2245 = vmatpush1.msra.mxu1 %v2111_v47  ;;  %v2382_v46 = vld [vmem:[#allocation11 + $0x1b8] sm:$0xff]  ;;  %v2379_v47 = vld [vmem:[#allocation11 + $0x1a0] sm:$0xff] }
 0x61c   :  { %2175 = vmatprep.subr.mxu0 %v2106_v48  ;;  %2246 = vmatprep.subr.mxu1 %v2108_v49  ;;  %v2381_v48 = vld [vmem:[#allocation11 + $0x1b0] sm:$0xff]  ;;  %v2376_v49 = vld [vmem:[#allocation11 + $0x188] sm:$0xff] }
 0x61d   :  { %2176 = vmatpush1.msra.mxu0 %v2105_v50  ;;  %2247 = vmatpush1.msra.mxu1 %v2107_v51  ;;  %v2378_v50 = vld [vmem:[#allocation11 + $0x198] sm:$0xff]  ;;  %v2375_v51 = vld [vmem:[#allocation11 + $0x180] sm:$0xff] }
 0x61e   :  { %2177 = vmatprep.subr.mxu0 %v2102_v52  ;;  %2248 = vmatprep.subr.mxu1 %v2104_v54  ;;  %v2377_v52 = vld [vmem:[#allocation11 + $0x190] sm:$0xff]  ;;  %v2372_v54 = vld [vmem:[#allocation11 + $0x168] sm:$0xff] }
 0x61f   :  { %2178 = vmatpush1.msra.mxu0 %v2101_v55  ;;  %2249 = vmatpush1.msra.mxu1 %v2103_v56  ;;  %v2374_v55 = vld [vmem:[#allocation11 + $0x178] sm:$0xff]  ;;  %v2371_v56 = vld [vmem:[#allocation11 + $0x160] sm:$0xff] }
 0x620   :  { %2179 = vmatprep.subr.mxu0 %v2098_v57  ;;  %2250 = vmatprep.subr.mxu1 %v2100_v58  ;;  %v2373_v57 = vld [vmem:[#allocation11 + $0x170] sm:$0xff]  ;;  %v2368_v58 = vld [vmem:[#allocation11 + $0x148] sm:$0xff] }
 0x621   :  { %2180 = vmatpush1.msra.mxu0 %v2097_v59  ;;  %2251 = vmatpush1.msra.mxu1 %v2099_v6  ;;  %v2370_v59 = vld [vmem:[#allocation11 + $0x158] sm:$0xff]  ;;  %v2367_v6 = vld [vmem:[#allocation11 + $0x140] sm:$0xff] }
 0x622   :  { %2181 = vmatprep.subr.mxu0 %v2094_v15  ;;  %2252 = vmatprep.subr.mxu1 %v2096_v7  ;;  %v2369_v15 = vld [vmem:[#allocation11 + $0x150] sm:$0xff]  ;;  %v2364_v7 = vld [vmem:[#allocation11 + $0x128] sm:$0xff] }
 0x623   :  { %2182 = vmatpush1.msra.mxu0 %v2093_v0  ;;  %2253 = vmatpush1.msra.mxu1 %v2095_v63  ;;  %v2366_v0 = vld [vmem:[#allocation11 + $0x138] sm:$0xff]  ;;  %v2363_v63 = vld [vmem:[#allocation11 + $0x120] sm:$0xff] }
 0x624   :  { %2183 = vmatprep.subr.mxu0 %v2090_v1  ;;  %2254 = vmatprep.subr.mxu1 %v2092_v42  ;;  %v2365_v1 = vld [vmem:[#allocation11 + $0x130] sm:$0xff]  ;;  %v2360_v42 = vld [vmem:[#allocation11 + $0x108] sm:$0xff] }
 0x625   :  { %2184 = vmatpush1.msra.mxu0 %v2089_v19  ;;  %2255 = vmatpush1.msra.mxu1 %v2091_v53  ;;  %v2362_v19 = vld [vmem:[#allocation11 + $0x118] sm:$0xff]  ;;  %v2359_v53 = vld [vmem:[#allocation11 + $0x100] sm:$0xff] }
 0x626   :  { %2413 = vmatprep.subr.mxu0 %v2388_v2  ;;  %2526 = vmatprep.subr.mxu1 %v2390_v13  ;;  %v2361_v2 = vld [vmem:[#allocation11 + $0x110] sm:$0xff]  ;;  %v2356_v13 = vld [vmem:[#allocation11 + $0xe8] sm:$0xff] }
 0x6c5   :  { %v1982_v5 = vpop.f32.mrf.mxu0  ;;  %v2053_v44 = vpop.f32.mrf.mxu1 }
 0x6c6   :  { %v2058_v17 = vadd.f32 %v1982_v5, %v6887_v3  ;;  %v2060_v4 = vadd.f32 %v2053_v44, %v6890_v35  ;;  %v2358_v5 = vld [vmem:[#allocation11 + $0xf8] sm:$0xff]  ;;  %v2355_v44 = vld [vmem:[#allocation11 + $0xe0] sm:$0xff]  ;;  %v2357_v3 = vld [vmem:[#allocation11 + $0xf0] sm:$0xff] }
 0x6c7   :  { %v1984_v60 = vpop.f32.mrf.mxu0  ;;  %v2055_v26 = vpop.f32.mrf.mxu1  ;;  %v2346_v35 = vld [vmem:[#allocation11 + $0x98] sm:$0xff] }
 0x6c8   :  { %v2062_v16 = vmul.f32 0.5, %v2058_v17  ;;  %v2059_v8 = vadd.f32 %v1984_v60, %v6888_v9  ;;  %v2061_v11 = vadd.f32 %v2055_v26, %v6889_v18  ;;  %v2064_v62 = vmul.f32 0.5, %v2060_v4  ;;  %v2352_v17 = vld [vmem:[#allocation11 + $0xc8] sm:$0xff]  ;;  %v2354_v60 = vld [vmem:[#allocation11 + $0xd8] sm:$0xff]  ;;  %v2351_v26 = vld [vmem:[#allocation11 + $0xc0] sm:$0xff] }
 0x6c9   :  { %v2348_v9 = vld [vmem:[#allocation11 + $0xa8] sm:$0xff]  ;;  %v2349_v18 = vld [vmem:[#allocation11 + $0xb0] sm:$0xff]  ;;  %v2343_v4 = vld [vmem:[#allocation11 + $0x80] sm:$0xff] }
 0x6ca   :  { %4214 = vtanh.f32 %v2062_v16  ;;  %v2063_v12 = vmul.f32 0.5, %v2059_v8  ;;  %v2353_v16 = vld [vmem:[#allocation11 + $0xd0] sm:$0xff]  ;;  %v2350_v8 = vld [vmem:[#allocation11 + $0xb8] sm:$0xff] }
 0x6cc   :  { %4216 = vtanh.f32 %v2063_v12  ;;  %v2347_v12 = vld [vmem:[#allocation11 + $0xa0] sm:$0xff] }
 0x6cd   :  { %4218 = vtanh.f32 %v2061_v11  ;;  %v2344_v11 = vld [vmem:[#allocation11 + $0x88] sm:$0xff] }
 0x6ce   :  { %4220 = vtanh.f32 %v2064_v62  ;;  %v2345_v62 = vld [vmem:[#allocation11 + $0x90] sm:$0xff] }
 0x6d7   :  { %v4215_v20 = vpop.eup %4214 }
 0x6d8   :  { %v2068_v21 = vadd.f32 1.0, %v4215_v20  ;;  %v2340_v20 = vld [vmem:[#allocation11 + $0x68] sm:$0xff] }
 0x6d9   :  { %v4217_v22 = vpop.eup %4216 }
 0x6da   :  { %v2071_v23 = vmul.f32 0.5, %v2068_v21  ;;  %v2069_v24 = vadd.f32 1.0, %v4217_v22  ;;  %v4219_v25 = vpop.eup %4218  ;;  %v2342_v21 = vld [vmem:[#allocation11 + $0x78] sm:$0xff]  ;;  %v2339_v22 = vld [vmem:[#allocation11 + $0x60] sm:$0xff] }
 0x6db   :  { %v4221_v32 = vpop.eup %4220 }
 0x6dc   :  { %v2072_v27 = vmul.f32 0.5, %v2069_v24  ;;  %v2076_v28 = vmul.f32 %v4219_v25, %v2071_v23  ;;  %v2070_v33 = vadd.f32 1.0, %v4221_v32  ;;  %v2341_v23 = vld [vmem:[#allocation11 + $0x70] sm:$0xff]  ;;  %v2336_v24 = vld [vmem:[#allocation11 + $0x48] sm:$0xff]  ;;  %v2338_v25 = vld [vmem:[#allocation11 + $0x58] sm:$0xff] }
 0x6dd   :  { %v2334_v32 = vld [vmem:[#allocation11 + $0x38] sm:$0xff] }
 0x6de   :  { %v2075_v29 = vmul.f32 %v2072_v27, %v5501_v14  ;;  %v2073_v34 = vmul.f32 0.5, %v2070_v33  ;;  %v2385_v14 = vld [vmem:[#allocation11 + $0x1d0] sm:$0xff]  ;;  %v2335_v27 = vld [vmem:[#allocation11 + $0x40] sm:$0xff] }
 0x6df   :  { %v2331_v33 = vld [vmem:[#allocation11 + $0x20] sm:$0xff] }
 0x6e0   :  { %v5515_v30 = vadd.f32 %v2076_v28, %v2075_v29  ;;  %v2337_v28 = vld [vmem:[#allocation11 + $0x50] sm:$0xff]  ;;  %v2332_v29 = vld [vmem:[#allocation11 + $0x28] sm:$0xff] }
 0x6e2   :  { %4222 = vtanh.f32 %v5515_v30 }
 0x6ef   :  { %v4223_v36 = vpop.eup %4222 }
 0x6f0   :  { %v5518_v37 = vmul.f32 %v4223_v36, %v2073_v34  ;;  %v2333_v34 = vld [vmem:[#allocation11 + $0x30] sm:$0xff]  ;;  %v2328_v36 = vld [vmem:[#allocation11 + $0x8] sm:$0xff] }
 0x6f2   :  { %2218 = vmatmul.mubr.f32.vlgmr.msra.gmra.mxu0 %v5518_v37  ;;  %2289 = vmatmul.mubr.f32.vlgmr.msra.gmra.mxu1 %v5518_v37 }
 0x6f3   :  { %2414 = vmatpush1.msra.mxu0 %v2387_v38  ;;  %2527 = vmatpush1.msra.mxu1 %v2389_v39  ;;  %v2330_v38 = vld [vmem:[#allocation11 + $0x18] sm:$0xff]  ;;  %v2327_v39 = vld [vmem:[#allocation11] sm:$0xff] }
 0x6f4   :  { %2415 = vmatprep.subr.mxu0 %v2384_v40  ;;  %2528 = vmatprep.subr.mxu1 %v2386_v41  ;;  %v2329_v40 = vld [vmem:[#allocation11 + $0x10] sm:$0xff]  ;;  %v6891_v41 = vld [vmem:[#allocation69_spill] sm:$0xff] }
 0x6f5   :  { %2416 = vmatpush1.msra.mxu0 %v2383_v43  ;;  %2529 = vmatpush1.msra.mxu1 %v2385_v14  ;;  %v6892_v43 = vld [vmem:[#allocation19_spill] sm:$0xff] }
 0x6f6   :  { %2417 = vmatprep.subr.mxu0 %v2380_v45  ;;  %2530 = vmatprep.subr.mxu1 %v2382_v46  ;;  %v6893_v14 = vld [vmem:[#allocation43_spill] sm:$0xff]  ;;  %v6894_v45 = vld [vmem:[#allocation44_spill] sm:$0xff]  ;;  %v5554_v46 = vld [vmem:[#allocation13 + $0x1f8] sm:$0xff] }
 0x6f7   :  { %2418 = vmatpush1.msra.mxu0 %v2379_v47  ;;  %2531 = vmatpush1.msra.mxu1 %v2381_v48  ;;  %6896 = vst [vmem:[#allocation45_spill] sm:$0xff] %v5554_v46  ;;  %v5560_v47 = vld [vmem:[#allocation13 + $0x1f0] sm:$0xff]  ;;  %v5566_v48 = vld [vmem:[#allocation13 + $0x1d8] sm:$0xff] }
 0x6f8   :  { %2419 = vmatprep.subr.mxu0 %v2376_v49  ;;  %2532 = vmatprep.subr.mxu1 %v2378_v50  ;;  %v5570_v49 = vld [vmem:[#allocation13 + $0x1c0] sm:$0xff]  ;;  %v5572_v50 = vld [vmem:[#allocation13 + $0x1d0] sm:$0xff] }
 0x6f9   :  { %2420 = vmatpush1.msra.mxu0 %v2375_v51  ;;  %2533 = vmatpush1.msra.mxu1 %v2377_v52  ;;  %v5576_v51 = vld [vmem:[#allocation13 + $0x1a8] sm:$0xff]  ;;  %v5578_v52 = vld [vmem:[#allocation13 + $0x1b8] sm:$0xff] }
 0x6fa   :  { %2421 = vmatprep.subr.mxu0 %v2372_v54  ;;  %2534 = vmatprep.subr.mxu1 %v2374_v55  ;;  %v5582_v54 = vld [vmem:[#allocation13 + $0x1a0] sm:$0xff]  ;;  %v5584_v55 = vld [vmem:[#allocation13 + $0x1b0] sm:$0xff] }
 0x6fb   :  { %2422 = vmatpush1.msra.mxu0 %v2371_v56  ;;  %2535 = vmatpush1.msra.mxu1 %v2373_v57  ;;  %v5588_v56 = vld [vmem:[#allocation13 + $0x188] sm:$0xff]  ;;  %v5590_v57 = vld [vmem:[#allocation13 + $0x198] sm:$0xff] }
 0x6fc   :  { %2423 = vmatprep.subr.mxu0 %v2368_v58  ;;  %2536 = vmatprep.subr.mxu1 %v2370_v59  ;;  %v5594_v58 = vld [vmem:[#allocation13 + $0x180] sm:$0xff]  ;;  %v5596_v59 = vld [vmem:[#allocation13 + $0x190] sm:$0xff] }
 0x6fd   :  { %2424 = vmatpush1.msra.mxu0 %v2367_v6  ;;  %2537 = vmatpush1.msra.mxu1 %v2369_v15  ;;  %v5600_v6 = vld [vmem:[#allocation13 + $0x168] sm:$0xff]  ;;  %v5602_v15 = vld [vmem:[#allocation13 + $0x178] sm:$0xff] }
 0x6fe   :  { %2425 = vmatprep.subr.mxu0 %v2364_v7  ;;  %2538 = vmatprep.subr.mxu1 %v2366_v0  ;;  %v5606_v7 = vld [vmem:[#allocation13 + $0x160] sm:$0xff]  ;;  %v5608_v0 = vld [vmem:[#allocation13 + $0x170] sm:$0xff] }
 0x6ff   :  { %2426 = vmatpush1.msra.mxu0 %v2363_v63  ;;  %2539 = vmatpush1.msra.mxu1 %v2365_v1  ;;  %v5612_v63 = vld [vmem:[#allocation13 + $0x148] sm:$0xff]  ;;  %v5614_v1 = vld [vmem:[#allocation13 + $0x158] sm:$0xff] }
 0x700   :  { %2427 = vmatprep.subr.mxu0 %v2360_v42  ;;  %2540 = vmatprep.subr.mxu1 %v2362_v19  ;;  %v5616_v42 = vld [vmem:[#allocation13 + $0x140] sm:$0xff]  ;;  %v5620_v19 = vld [vmem:[#allocation13 + $0x150] sm:$0xff] }
 0x701   :  { %2428 = vmatpush1.msra.mxu0 %v2359_v53  ;;  %2541 = vmatpush1.msra.mxu1 %v2361_v2  ;;  %v5622_v53 = vld [vmem:[#allocation13 + $0x128] sm:$0xff]  ;;  %v5624_v2 = vld [vmem:[#allocation13 + $0x138] sm:$0xff] }
 0x702   :  { %2429 = vmatprep.subr.mxu0 %v2356_v13  ;;  %2542 = vmatprep.subr.mxu1 %v2358_v5  ;;  %v5628_v13 = vld [vmem:[#allocation13 + $0x120] sm:$0xff]  ;;  %v5630_v5 = vld [vmem:[#allocation13 + $0x130] sm:$0xff] }
 0x703   :  { %2430 = vmatpush1.msra.mxu0 %v2355_v44  ;;  %2543 = vmatpush1.msra.mxu1 %v2357_v3  ;;  %v5636_v44 = vld [vmem:[#allocation13 + $0x108] sm:$0xff]  ;;  %v5638_v3 = vld [vmem:[#allocation13 + $0x118] sm:$0xff] }
 0x704   :  { %2431 = vmatprep.subr.mxu0 %v2352_v17  ;;  %2544 = vmatprep.subr.mxu1 %v2354_v60  ;;  %v5642_v17 = vld [vmem:[#allocation13 + $0x100] sm:$0xff]  ;;  %v5644_v60 = vld [vmem:[#allocation13 + $0x110] sm:$0xff] }
 0x705   :  { %2432 = vmatpush1.msra.mxu0 %v2351_v26  ;;  %2545 = vmatpush1.msra.mxu1 %v2353_v16  ;;  %v5648_v26 = vld [vmem:[#allocation13 + $0xe8] sm:$0xff]  ;;  %v5650_v16 = vld [vmem:[#allocation13 + $0xf8] sm:$0xff] }
 0x706   :  { %2433 = vmatprep.subr.mxu0 %v2348_v9  ;;  %2546 = vmatprep.subr.mxu1 %v2350_v8  ;;  %v5654_v9 = vld [vmem:[#allocation13 + $0xe0] sm:$0xff]  ;;  %v5656_v8 = vld [vmem:[#allocation13 + $0xf0] sm:$0xff] }
 0x707   :  { %2434 = vmatpush1.msra.mxu0 %v2347_v12  ;;  %2547 = vmatpush1.msra.mxu1 %v2349_v18  ;;  %v5660_v12 = vld [vmem:[#allocation13 + $0xc8] sm:$0xff]  ;;  %v5662_v18 = vld [vmem:[#allocation13 + $0xd8] sm:$0xff] }
 0x708   :  { %2435 = vmatprep.subr.mxu0 %v2344_v11  ;;  %2548 = vmatprep.subr.mxu1 %v2346_v35  ;;  %v5666_v11 = vld [vmem:[#allocation13 + $0xc0] sm:$0xff]  ;;  %v5668_v35 = vld [vmem:[#allocation13 + $0xd0] sm:$0xff] }
 0x709   :  { %2436 = vmatpush1.msra.mxu0 %v2343_v4  ;;  %2549 = vmatpush1.msra.mxu1 %v2345_v62  ;;  %v5672_v4 = vld [vmem:[#allocation13 + $0xa8] sm:$0xff]  ;;  %v5674_v62 = vld [vmem:[#allocation13 + $0xb8] sm:$0xff] }
 0x70a   :  { %2437 = vmatprep.subr.mxu0 %v2340_v20  ;;  %2550 = vmatprep.subr.mxu1 %v2342_v21  ;;  %v5678_v20 = vld [vmem:[#allocation13 + $0xa0] sm:$0xff]  ;;  %v5680_v21 = vld [vmem:[#allocation13 + $0xb0] sm:$0xff] }
 0x70b   :  { %2438 = vmatpush1.msra.mxu0 %v2339_v22  ;;  %2551 = vmatpush1.msra.mxu1 %v2341_v23  ;;  %6897 = vst [vmem:[#allocation47_spill] sm:$0xff] %v5678_v20  ;;  %6898 = vst [vmem:[#allocation48_spill] sm:$0xff] %v5680_v21  ;;  %v5684_v22 = vld [vmem:[#allocation13 + $0x88] sm:$0xff]  ;;  %v5686_v23 = vld [vmem:[#allocation13 + $0x98] sm:$0xff] }
 0x70c   :  { %2439 = vmatprep.subr.mxu0 %v2336_v24  ;;  %2552 = vmatprep.subr.mxu1 %v2338_v25  ;;  %6899 = vst [vmem:[#allocation46_spill] sm:$0xff] %v5684_v22  ;;  %6900 = vst [vmem:[#allocation49_spill] sm:$0xff] %v5686_v23  ;;  %v5690_v24 = vld [vmem:[#allocation13 + $0x80] sm:$0xff]  ;;  %v5692_v25 = vld [vmem:[#allocation13 + $0x90] sm:$0xff] }
 0x70d   :  { %2440 = vmatpush1.msra.mxu0 %v2335_v27  ;;  %2553 = vmatpush1.msra.mxu1 %v2337_v28  ;;  %6901 = vst [vmem:[#allocation51_spill] sm:$0xff] %v5690_v24  ;;  %6902 = vst [vmem:[#allocation52_spill] sm:$0xff] %v5692_v25  ;;  %v5696_v27 = vld [vmem:[#allocation13 + $0x68] sm:$0xff]  ;;  %v5698_v28 = vld [vmem:[#allocation13 + $0x78] sm:$0xff] }
 0x70e   :  { %2441 = vmatprep.subr.mxu0 %v2332_v29  ;;  %2554 = vmatprep.subr.mxu1 %v2334_v32  ;;  %6903 = vst [vmem:[#allocation50_spill] sm:$0xff] %v5696_v27  ;;  %6904 = vst [vmem:[#allocation20_spill] sm:$0xff] %v5698_v28  ;;  %v5702_v29 = vld [vmem:[#allocation13 + $0x60] sm:$0xff]  ;;  %v5704_v32 = vld [vmem:[#allocation13 + $0x70] sm:$0xff] }
 0x70f   :  { %2442 = vmatpush1.msra.mxu0 %v2331_v33  ;;  %2555 = vmatpush1.msra.mxu1 %v2333_v34  ;;  %6905 = vst [vmem:[#allocation21_spill] sm:$0xff] %v5702_v29  ;;  %6906 = vst [vmem:[#allocation53_spill] sm:$0xff] %v5704_v32  ;;  %v5708_v33 = vld [vmem:[#allocation13 + $0x48] sm:$0xff]  ;;  %v5710_v34 = vld [vmem:[#allocation13 + $0x58] sm:$0xff] }
 0x710   :  { %2443 = vmatprep.subr.mxu0 %v2328_v36  ;;  %2556 = vmatprep.subr.mxu1 %v2330_v38  ;;  %6907 = vst [vmem:[#allocation55_spill] sm:$0xff] %v5708_v33  ;;  %6908 = vst [vmem:[#allocation56_spill] sm:$0xff] %v5710_v34  ;;  %v5714_v36 = vld [vmem:[#allocation13 + $0x40] sm:$0xff]  ;;  %v5716_v38 = vld [vmem:[#allocation13 + $0x50] sm:$0xff] }
 0x711   :  { %2444 = vmatpush1.msra.mxu0 %v2327_v39  ;;  %2477 = vmatprep.mubr.f32.mxu0 %v6881_v31  ;;  %6909 = vst [vmem:[#allocation54_spill] sm:$0xff] %v5714_v36  ;;  %6910 = vst [vmem:[#allocation22_spill] sm:$0xff] %v5716_v38  ;;  %v5720_v39 = vld [vmem:[#allocation13 + $0x28] sm:$0xff] }
 0x712   :  { %2557 = vmatpush1.msra.mxu1 %v2329_v40  ;;  %2590 = vmatprep.mubr.f32.mxu1 %v6881_v31  ;;  %6911 = vst [vmem:[#allocation23_spill] sm:$0xff] %v5720_v39  ;;  %v5722_v40 = vld [vmem:[#allocation13 + $0x38] sm:$0xff] }
 0x713   :  { %2478 = vmatmul.mubr.f32.vlgmr.msra.gmra.mxu0 %v6891_v41  ;;  %2591 = vmatmul.mubr.f32.vlgmr.msra.gmra.mxu1 %v6891_v41  ;;  %6912 = vst [vmem:[#allocation24_spill] sm:$0xff] %v5722_v40  ;;  %v5726_v41 = vld [vmem:[#allocation13 + $0x20] sm:$0xff] }
 0x714   :  { %2483 = vmatprep.mubr.f32.mxu0 %v6881_v31  ;;  %2596 = vmatprep.mubr.f32.mxu1 %v6881_v31  ;;  %6913 = vst [vmem:[#allocation25_spill] sm:$0xff] %v5726_v41 }
 0x715   :  { %2812 = vmatprep.subr.mxu1 %v5554_v46 }
 0x716   :  { %2813 = vmatpush1.msra.mxu1 %v5560_v47 }
 0x717   :  { %2484 = vmatmul.mubr.f32.gmra.mxu0 %v6892_v43  ;;  %2597 = vmatmul.mubr.f32.gmra.mxu1 %v6892_v43  ;;  %v5728_v43 = vld [vmem:[#allocation13 + $0x30] sm:$0xff] }
 0x718   :  { %2489 = vmatprep.mubr.f32.mxu0 %v6881_v31  ;;  %2602 = vmatprep.mubr.f32.mxu1 %v6881_v31  ;;  %6914 = vst [vmem:[#allocation26_spill] sm:$0xff] %v5728_v43 }
 0x719   :  { %2814 = vmatprep.subr.mxu1 %v5566_v48 }
 0x71a   :  { %2815 = vmatpush1.msra.mxu1 %v5572_v50 }
 0x71b   :  { %2490 = vmatmul.mubr.f32.gmra.mxu0 %v6893_v14  ;;  %2603 = vmatmul.mubr.f32.gmra.mxu1 %v6893_v14  ;;  %v5732_v14 = vld [vmem:[#allocation13 + $0x8] sm:$0xff] }
 0x71c   :  { %2495 = vmatprep.mubr.f32.mxu0 %v6881_v31  ;;  %2608 = vmatprep.mubr.f32.mxu1 %v6881_v31  ;;  %6915 = vst [vmem:[#allocation27_spill] sm:$0xff] %v5732_v14 }
 0x71d   :  { %2816 = vmatprep.subr.mxu1 %v5578_v52 }
 0x71e   :  { %2817 = vmatpush1.msra.mxu1 %v5584_v55 }
 0x71f   :  { %2496 = vmatmul.mubr.f32.gmra.mxu0 %v6894_v45  ;;  %2609 = vmatmul.mubr.f32.gmra.mxu1 %v6894_v45  ;;  %v5734_v45 = vld [vmem:[#allocation13 + $0x18] sm:$0xff] }
 0x720   :  { %2501 = vmatprep.mubr.f32.mxu0 %v6881_v31  ;;  %2614 = vmatprep.mubr.f32.mxu1 %v6881_v31  ;;  %6916 = vst [vmem:[#allocation28_spill] sm:$0xff] %v5734_v45 }
 0x721   :  { %2818 = vmatprep.subr.mxu1 %v5590_v57 }
 0x722   :  { %2819 = vmatpush1.msra.mxu1 %v5596_v59 }
 0x723   :  { %2502 = vmatmul.mubr.f32.gmra.mxu0 %v5428_v10  ;;  %2615 = vmatmul.mubr.f32.gmra.mxu1 %v5428_v10  ;;  %v5552_v10 = vld [vmem:[#allocation13 + $0x1e8] sm:$0xff] }
 0x724   :  { %2507 = vmatprep.mubr.f32.mxu0 %v6881_v31  ;;  %2620 = vmatprep.mubr.f32.mxu1 %v6881_v31  ;;  %6895 = vst [vmem:[#allocation42_spill] sm:$0xff] %v5552_v10 }
 0x725   :  { %2741 = vmatprep.subr.mxu0 %v5552_v10  ;;  %2820 = vmatprep.subr.mxu1 %v5602_v15 }
 0x726   :  { %2821 = vmatpush1.msra.mxu1 %v5608_v0 }
 0x727   :  { %2508 = vmatmul.mubr.f32.gmra.mxu0 %v5504_v61  ;;  %2621 = vmatmul.mubr.f32.gmra.mxu1 %v5504_v61  ;;  %v5558_v61 = vld [vmem:[#allocation13 + $0x1e0] sm:$0xff] }
 0x728   :  { %2513 = vmatprep.mubr.f32.mxu0 %v6881_v31  ;;  %2626 = vmatprep.mubr.f32.mxu1 %v6881_v31 }
 0x729   :  { %2742 = vmatpush1.msra.mxu0 %v5558_v61  ;;  %2822 = vmatprep.subr.mxu1 %v5614_v1 }
 0x72a   :  { %2823 = vmatpush1.msra.mxu1 %v5620_v19 }
 0x72b   :  { %2514 = vmatmul.mubr.f32.gmra.mxu0 %v5518_v37  ;;  %2627 = vmatmul.mubr.f32.gmra.mxu1 %v5518_v37  ;;  %v5564_v37 = vld [vmem:[#allocation13 + $0x1c8] sm:$0xff] }
 0x72c   :  { %2519 = vmatprep.mubr.f32.mxu0 %v6881_v31  ;;  %2632 = vmatprep.mubr.f32.mxu1 %v6881_v31 }
 0x72d   :  { %2743 = vmatprep.subr.mxu0 %v5564_v37  ;;  %2824 = vmatprep.subr.mxu1 %v5624_v2 }
 0x72e   :  { %2744 = vmatpush1.msra.mxu0 %v5570_v49  ;;  %2825 = vmatpush1.msra.mxu1 %v5630_v5 }
 0x72f   :  { %2745 = vmatprep.subr.mxu0 %v5576_v51  ;;  %2826 = vmatprep.subr.mxu1 %v5638_v3 }
 0x730   :  { %2746 = vmatpush1.msra.mxu0 %v5582_v54  ;;  %2827 = vmatpush1.msra.mxu1 %v5644_v60 }
 0x731   :  { %2747 = vmatprep.subr.mxu0 %v5588_v56  ;;  %2828 = vmatprep.subr.mxu1 %v5650_v16 }
 0x732   :  { %2748 = vmatpush1.msra.mxu0 %v5594_v58  ;;  %2829 = vmatpush1.msra.mxu1 %v5656_v8 }
 0x733   :  { %2749 = vmatprep.subr.mxu0 %v5600_v6  ;;  %2830 = vmatprep.subr.mxu1 %v5662_v18 }
 0x734   :  { %2750 = vmatpush1.msra.mxu0 %v5606_v7  ;;  %2831 = vmatpush1.msra.mxu1 %v5668_v35 }
 0x735   :  { %2751 = vmatprep.subr.mxu0 %v5612_v63  ;;  %2832 = vmatprep.subr.mxu1 %v5674_v62 }
 0x736   :  { %2752 = vmatpush1.msra.mxu0 %v5616_v42  ;;  %2833 = vmatpush1.msra.mxu1 %v5680_v21 }
 0x737   :  { %2753 = vmatprep.subr.mxu0 %v5622_v53  ;;  %2834 = vmatprep.subr.mxu1 %v5686_v23 }
 0x738   :  { %2754 = vmatpush1.msra.mxu0 %v5628_v13  ;;  %2835 = vmatpush1.msra.mxu1 %v5692_v25 }
 0x739   :  { %2755 = vmatprep.subr.mxu0 %v5636_v44  ;;  %2836 = vmatprep.subr.mxu1 %v5698_v28  ;;  %v6921_v28 = vld [vmem:[#allocation68_spill] sm:$0xff] }
 0x73a   :  { %2756 = vmatpush1.msra.mxu0 %v5642_v17  ;;  %2837 = vmatpush1.msra.mxu1 %v5704_v32 }
 0x73b   :  { %2757 = vmatprep.subr.mxu0 %v5648_v26  ;;  %2838 = vmatprep.subr.mxu1 %v5710_v34 }
 0x73c   :  { %2758 = vmatpush1.msra.mxu0 %v5654_v9  ;;  %2839 = vmatpush1.msra.mxu1 %v5716_v38  ;;  %v5738_v38 = vld [vmem:[#allocation13] sm:$0xff] }
 0x73d   :  { %2759 = vmatprep.subr.mxu0 %v5660_v12  ;;  %2840 = vmatprep.subr.mxu1 %v5722_v40  ;;  %6917 = vst [vmem:[#allocation29_spill] sm:$0xff] %v5738_v38  ;;  %v6919_v40 = vld [vmem:[#allocation65_spill] sm:$0xff] }
 0x73e   :  { %2760 = vmatpush1.msra.mxu0 %v5666_v11  ;;  %2841 = vmatpush1.msra.mxu1 %v5728_v43 }
 0x73f   :  { %2761 = vmatprep.subr.mxu0 %v5672_v4  ;;  %2842 = vmatprep.subr.mxu1 %v5734_v45  ;;  %v6920_v45 = vld [vmem:[#allocation67_spill] sm:$0xff] }
 0x740   :  { %2762 = vmatpush1.msra.mxu0 %v5678_v20 }
 0x741   :  { %2763 = vmatprep.subr.mxu0 %v5684_v22 }
 0x742   :  { %2764 = vmatpush1.msra.mxu0 %v5690_v24 }
 0x743   :  { %2765 = vmatprep.subr.mxu0 %v5696_v27 }
 0x744   :  { %2766 = vmatpush1.msra.mxu0 %v5702_v29 }
 0x745   :  { %2767 = vmatprep.subr.mxu0 %v5708_v33 }
 0x746   :  { %2768 = vmatpush1.msra.mxu0 %v5714_v36 }
 0x747   :  { %2769 = vmatprep.subr.mxu0 %v5720_v39  ;;  %v5740_v39 = vld [vmem:[#allocation13 + $0x10] sm:$0xff] }
 0x748   :  { %2770 = vmatpush1.msra.mxu0 %v5726_v41  ;;  %6918 = vst [vmem:[#allocation30_spill] sm:$0xff] %v5740_v39  ;;  %2843 = vmatpush1.msra.mxu1 %v5740_v39  ;;  %v6922_v39 = vld [vmem:[#allocation66_spill] sm:$0xff] }
 0x749   :  { %2771 = vmatprep.subr.mxu0 %v5732_v14  ;;  %2982 = vmatprep.subr.mxu1 %v5554_v46 }
 0x74a   :  { %2772 = vmatpush1.msra.mxu0 %v5738_v38 }
 0x74b   :  { %2911 = vmatprep.subr.mxu0 %v5552_v10 }
 0x7b2   :  { %v2219_v43 = vpop.f32.mrf.mxu0  ;;  %v2290_v41 = vpop.f32.mrf.mxu1 }
 0x7b3   :  { %v2295_v36 = vadd.f32 %v2219_v43, %v6919_v40  ;;  %v2297_v38 = vadd.f32 %v2290_v41, %v6922_v39  ;;  %v6931_v39 = vld [vmem:[#allocation55_spill] sm:$0xff]  ;;  %v6932_v41 = vld [vmem:[#allocation56_spill] sm:$0xff] }
 0x7b4   :  { %v2221_v34 = vpop.f32.mrf.mxu0  ;;  %v2292_v14 = vpop.f32.mrf.mxu1 }
 0x7b5   :  { %v2299_v33 = vmul.f32 0.5, %v2295_v36  ;;  %v2296_v32 = vadd.f32 %v2221_v34, %v6920_v45  ;;  %v2298_v27 = vadd.f32 %v2292_v14, %v6921_v28  ;;  %v2301_v10 = vmul.f32 0.5, %v2297_v38  ;;  %v6930_v38 = vld [vmem:[#allocation53_spill] sm:$0xff]  ;;  %v6933_v45 = vld [vmem:[#allocation54_spill] sm:$0xff] }
 0x7b7   :  { %4224 = vtanh.f32 %v2299_v33  ;;  %v2300_v29 = vmul.f32 0.5, %v2296_v32 }
 0x7b9   :  { %4226 = vtanh.f32 %v2300_v29 }
 0x7ba   :  { %4228 = vtanh.f32 %v2298_v27 }
 0x7bb   :  { %4230 = vtanh.f32 %v2301_v10  ;;  %v6924_v10 = vld [vmem:[#allocation49_spill] sm:$0xff] }
 0x7c4   :  { %v4225_v25 = vpop.eup %4224 }
 0x7c5   :  { %v2305_v46 = vadd.f32 1.0, %v4225_v25  ;;  %v6929_v25 = vld [vmem:[#allocation21_spill] sm:$0xff] }
 0x7c6   :  { %v4227_v24 = vpop.eup %4226 }
 0x7c7   :  { %v2308_v23 = vmul.f32 0.5, %v2305_v46  ;;  %v2306_v40 = vadd.f32 1.0, %v4227_v24  ;;  %v4229_v43 = vpop.eup %4228  ;;  %v6925_v46 = vld [vmem:[#allocation51_spill] sm:$0xff]  ;;  %v6928_v24 = vld [vmem:[#allocation20_spill] sm:$0xff] }
 0x7c8   :  { %v4231_v32 = vpop.eup %4230 }
 0x7c9   :  { %v2309_v22 = vmul.f32 0.5, %v2306_v40  ;;  %v2313_v36 = vmul.f32 %v4229_v43, %v2308_v23  ;;  %v2307_v28 = vadd.f32 1.0, %v4231_v32  ;;  %v6927_v23 = vld [vmem:[#allocation50_spill] sm:$0xff]  ;;  %v6935_v43 = vld [vmem:[#allocation23_spill] sm:$0xff] }
 0x7ca   :  { %v6934_v40 = vld [vmem:[#allocation22_spill] sm:$0xff]  ;;  %v6939_v32 = vld [vmem:[#allocation27_spill] sm:$0xff] }
 0x7cb   :  { %v2312_v34 = vmul.f32 %v2309_v22, %v5515_v30  ;;  %v2310_v29 = vmul.f32 0.5, %v2307_v28  ;;  %v6923_v30 = vld [vmem:[#allocation46_spill] sm:$0xff]  ;;  %v6926_v22 = vld [vmem:[#allocation52_spill] sm:$0xff] }
 0x7cc   :  { %v6940_v28 = vld [vmem:[#allocation28_spill] sm:$0xff] }
 0x7cd   :  { %v2314_v33 = vadd.f32 %v2313_v36, %v2312_v34  ;;  %v6936_v36 = vld [vmem:[#allocation24_spill] sm:$0xff]  ;;  %v6937_v34 = vld [vmem:[#allocation25_spill] sm:$0xff] }
 0x7cf   :  { %4232 = vtanh.f32 %v2314_v33  ;;  %v6938_v33 = vld [vmem:[#allocation26_spill] sm:$0xff] }
 0x7dc   :  { %v4233_v27 = vpop.eup %4232 }
 0x7dd   :  { %v2316_v14 = vmul.f32 %v4233_v27, %v2310_v29  ;;  %v6941_v29 = vld [vmem:[#allocation29_spill] sm:$0xff]  ;;  %v6942_v27 = vld [vmem:[#allocation30_spill] sm:$0xff] }
 0x7df   :  { %2520 = vmatmul.mubr.f32.gmra.mxu0 %v2316_v14  ;;  %2633 = vmatmul.mubr.f32.gmra.mxu1 %v2316_v14  ;;  %v6943_v14 = vld [vmem:[#allocation42_spill] sm:$0xff] }
 0x7e0   :  { %2805 = vmatprep.mubr.f32.mxu0 %v6881_v31  ;;  %2876 = vmatprep.mubr.f32.mxu1 %v6881_v31 }
 0x7e3   :  { %2806 = vmatmul.mubr.f32.vlgmr.msra.gmra.mxu0 %v6881_v31  ;;  %2877 = vmatmul.mubr.f32.vlgmr.msra.gmra.mxu1 %v6881_v31 }
 0x7e4   :  { %2912 = vmatpush1.msra.mxu0 %v5558_v61  ;;  %2983 = vmatpush1.msra.mxu1 %v5560_v47 }
 0x7e5   :  { %2913 = vmatprep.subr.mxu0 %v5564_v37  ;;  %2984 = vmatprep.subr.mxu1 %v5566_v48 }
 0x7e6   :  { %2914 = vmatpush1.msra.mxu0 %v5570_v49  ;;  %2985 = vmatpush1.msra.mxu1 %v5572_v50 }
 0x7e7   :  { %2915 = vmatprep.subr.mxu0 %v5576_v51  ;;  %2986 = vmatprep.subr.mxu1 %v5578_v52 }
 0x7e8   :  { %2916 = vmatpush1.msra.mxu0 %v5582_v54  ;;  %2987 = vmatpush1.msra.mxu1 %v5584_v55 }
 0x7e9   :  { %2917 = vmatprep.subr.mxu0 %v5588_v56  ;;  %2988 = vmatprep.subr.mxu1 %v5590_v57 }
 0x7ea   :  { %2918 = vmatpush1.msra.mxu0 %v5594_v58  ;;  %2989 = vmatpush1.msra.mxu1 %v5596_v59 }
 0x7eb   :  { %2919 = vmatprep.subr.mxu0 %v5600_v6  ;;  %2990 = vmatprep.subr.mxu1 %v5602_v15 }
 0x7ec   :  { %2920 = vmatpush1.msra.mxu0 %v5606_v7  ;;  %2991 = vmatpush1.msra.mxu1 %v5608_v0 }
 0x7ed   :  { %2921 = vmatprep.subr.mxu0 %v5612_v63  ;;  %2992 = vmatprep.subr.mxu1 %v5614_v1 }
 0x7ee   :  { %2922 = vmatpush1.msra.mxu0 %v5616_v42  ;;  %2993 = vmatpush1.msra.mxu1 %v5620_v19 }
 0x7ef   :  { %2923 = vmatprep.subr.mxu0 %v5622_v53  ;;  %2994 = vmatprep.subr.mxu1 %v5624_v2 }
 0x7f0   :  { %2924 = vmatpush1.msra.mxu0 %v5628_v13  ;;  %2995 = vmatpush1.msra.mxu1 %v5630_v5 }
 0x7f1   :  { %2925 = vmatprep.subr.mxu0 %v5636_v44  ;;  %2996 = vmatprep.subr.mxu1 %v5638_v3 }
 0x7f2   :  { %2926 = vmatpush1.msra.mxu0 %v5642_v17  ;;  %2997 = vmatpush1.msra.mxu1 %v5644_v60 }
 0x7f3   :  { %2927 = vmatprep.subr.mxu0 %v5648_v26  ;;  %2998 = vmatprep.subr.mxu1 %v5650_v16 }
 0x7f4   :  { %2928 = vmatpush1.msra.mxu0 %v5654_v9  ;;  %2999 = vmatpush1.msra.mxu1 %v5656_v8 }
 0x7f5   :  { %2929 = vmatprep.subr.mxu0 %v5660_v12  ;;  %3000 = vmatprep.subr.mxu1 %v5662_v18 }
 0x7f6   :  { %2930 = vmatpush1.msra.mxu0 %v5666_v11  ;;  %3001 = vmatpush1.msra.mxu1 %v5668_v35 }
 0x7f7   :  { %2931 = vmatprep.subr.mxu0 %v5672_v4  ;;  %3002 = vmatprep.subr.mxu1 %v5674_v62 }
 0x7f8   :  { %2932 = vmatpush1.msra.mxu0 %v5678_v20  ;;  %3003 = vmatpush1.msra.mxu1 %v5680_v21 }
 0x7f9   :  { %2933 = vmatprep.subr.mxu0 %v6923_v30  ;;  %3004 = vmatprep.subr.mxu1 %v6924_v10 }
 0x7fa   :  { %2934 = vmatpush1.msra.mxu0 %v6925_v46  ;;  %3005 = vmatpush1.msra.mxu1 %v6926_v22 }
 0x7fb   :  { %2935 = vmatprep.subr.mxu0 %v6927_v23  ;;  %3006 = vmatprep.subr.mxu1 %v6928_v24 }
 0x7fc   :  { %2936 = vmatpush1.msra.mxu0 %v6929_v25  ;;  %3007 = vmatpush1.msra.mxu1 %v6930_v38 }
 0x7fd   :  { %2937 = vmatprep.subr.mxu0 %v6931_v39  ;;  %3008 = vmatprep.subr.mxu1 %v6932_v41 }
 0x7fe   :  { %2938 = vmatpush1.msra.mxu0 %v6933_v45  ;;  %3009 = vmatpush1.msra.mxu1 %v6934_v40 }
 0x7ff   :  { %2939 = vmatprep.subr.mxu0 %v6935_v43  ;;  %3010 = vmatprep.subr.mxu1 %v6936_v36  ;;  %v6944_v43 = vld [vmem:[#allocation45_spill] sm:$0xff]  ;;  %v2479_v36 = vpop.f32.mrf.mxu0 }
 0x800   :  { %2940 = vmatpush1.msra.mxu0 %v6937_v34  ;;  %3011 = vmatpush1.msra.mxu1 %v6938_v33  ;;  %v2592_v34 = vpop.f32.mrf.mxu1 }
 0x801   :  { %2941 = vmatprep.subr.mxu0 %v6939_v32  ;;  %3012 = vmatprep.subr.mxu1 %v6940_v28  ;;  %v2481_v40 = vpop.f32.mrf.mxu0 }
 0x802   :  { %2942 = vmatpush1.msra.mxu0 %v6941_v29  ;;  %2975 = vmatprep.mubr.f32.mxu0 %v6881_v31  ;;  %v2594_v33 = vpop.f32.mrf.mxu1 }
 0x803   :  { %3013 = vmatpush1.msra.mxu1 %v6942_v27  ;;  %3046 = vmatprep.mubr.f32.mxu1 %v6881_v31  ;;  %v5821_v45 = vpop.f32.mrf.mxu0 }
 0x804   :  { %3081 = vmatprep.subr.mxu0 %v6943_v14  ;;  %3152 = vmatprep.subr.mxu1 %v6944_v43  ;;  %6945 = vst [vmem:[#allocation31_spill] sm:$0xff] %v5821_v45  ;;  %v5823_v32 = vpop.f32.mrf.mxu1 }
 0x805   :  { %6946 = vst [vmem:[#allocation32_spill] sm:$0xff] %v5823_v32  ;;  %v5825_v28 = vpop.f32.mrf.mxu0 }
 0x806   :  { %6947 = vst [vmem:[#allocation33_spill] sm:$0xff] %v5825_v28  ;;  %v5827_v29 = vpop.f32.mrf.mxu1 }
 0x807   :  { %6948 = vst [vmem:[#allocation34_spill] sm:$0xff] %v5827_v29  ;;  %v5829_v41 = vpop.f32.mrf.mxu0 }
 0x808   :  { %6949 = vst [vmem:[#allocation35_spill] sm:$0xff] %v5829_v41  ;;  %v5831_v27 = vpop.f32.mrf.mxu1 }
 0x809   :  { %6950 = vst [vmem:[#allocation36_spill] sm:$0xff] %v5831_v27  ;;  %v5833_v31 = vpop.f32.mrf.mxu0 }
 0x80a   :  { %6951 = vst [vmem:[#allocation37_spill] sm:$0xff] %v5833_v31  ;;  %v5835_v14 = vpop.f32.mrf.mxu1 }
 0x80b   :  { %6952 = vst [vmem:[#allocation38_spill] sm:$0xff] %v5835_v14  ;;  %v5837_v43 = vpop.f32.mrf.mxu0 }
 0x80c   :  { %6953 = vst [vmem:[#allocation39_spill] sm:$0xff] %v5837_v43  ;;  %v5839_v39 = vpop.f32.mrf.mxu1 }
 0x80d   :  { %6954 = vst [vmem:[#allocation41_spill] sm:$0xff] %v5839_v39  ;;  %v5841_v38 = vpop.f32.mrf.mxu0 }
 0x80e   :  { %6955 = vst [vmem:[#allocation57_spill] sm:$0xff] %v5841_v38  ;;  %v5843_v45 = vpop.f32.mrf.mxu1 }
 0x80f   :  { %6956 = vst [vmem:[#allocation59_spill] sm:$0xff] %v5843_v45  ;;  %v5845_v32 = vpop.f32.mrf.mxu0 }
 0x810   :  { %6957 = vst [vmem:[#allocation60_spill] sm:$0xff] %v5845_v32  ;;  %v5847_v28 = vpop.f32.mrf.mxu1 }
 0x811   :  { %6958 = vst [vmem:[#allocation58_spill] sm:$0xff] %v5847_v28  ;;  %v5849_v29 = vpop.f32.mrf.mxu0  ;;  %v2391_v28 = vld [vmem:[%s6511_s6] sm:$0xf]  ;;  %s4516_s6 = smov [#allocation14]  }
 0x812   :  { %6959 = vst [vmem:[#allocation61_spill] sm:$0xff] %v5849_v29  ;;  %v5851_v41 = vpop.f32.mrf.mxu1  ;;  %s4102_s28 = sshll.u32 %s4516_s6, 4  ;;  %s4103_s28 = int_to_ptr.vmem [resolvable:$true] %s4102_s28 }
 0x813   :  { %6960 = vst [vmem:[#allocation63_spill] sm:$0xff] %v5851_v41  ;;  %v5853_v27 = vpop.f32.mrf.mxu0  ;;  %v6969_v41 = vld [vmem:[#allocation40_spill] sm:$0xff]  ;;  %s4478_s29 = scalar_lea.vmem %s4103_s28, 128  ;;  %p4483_p12 = scmp.lt.s32.totalorder %s4103_s28, %s4103_s28 }
 0x814   :  { %6961 = vst [vmem:[#allocation64_spill] sm:$0xff] %v5853_v27  ;;  %v5855_v31 = vpop.f32.mrf.mxu1  ;;  %v6970_v27 = vsub.s32 0, %v6969_v41  ;;  %p4479_p11 = scmp.ne.s32.totalorder %s4103_s28, %s4478_s29  ;;  %p4484_p13 = scmp.lt.s32.totalorder %s4478_s29, %s4478_s29 }
 0x815   :  { %6962 = vst [vmem:[#allocation62_spill] sm:$0xff] %v5855_v31  ;;  %v5857_v14 = vpop.f32.mrf.mxu0 }
 0x816   :  { %6963 = vst [vmem:[#allocation69_spill] sm:$0xff] %v5857_v14  ;;  %v5859_v43 = vpop.f32.mrf.mxu1  ;;  %v5874_v45 = vrot.slane %v2391_v28, %v6970_v27  ;;  %v6978_v27 = vsub.s32 3, %v6969_v41  ;;  %p4485_p0 = por %p4484_p13, %p4483_p12 }
 0x817   :  { %6964 = vst [vmem:[#allocation19_spill] sm:$0xff] %v5859_v43  ;;  %v5861_v39 = vpop.f32.mrf.mxu0 }
 0x818   :  { %6965 = vst [vmem:[#allocation43_spill] sm:$0xff] %v5861_v39  ;;  %v5863_v38 = vpop.f32.mrf.mxu1  ;;  %6971 = vst [vmem:[#allocation68_spill] sm:$0xff] %v5874_v45  ;;  %v6974_v39 = vsub.s32 1, %v6969_v41  ;;  %v5892_v22 = vrot.slane %v2391_v28, %v6978_v27  ;;  %p4486_p1 = pnand %p4485_p0, %p4479_p11 }
 0x819   :  { %6966 = vst [vmem:[#allocation44_spill] sm:$0xff] %v5863_v38  ;;  %v5868_v32 = vpop.f32.mrf.mxu0 }
 0x81a   :  { %6967 = vst [vmem:[#allocation65_spill] sm:$0xff] %v5868_v32  ;;  %v5870_v29 = vpop.f32.mrf.mxu1  ;;  %v5882_v43 = vrot.slane %v2391_v28, %v6974_v39  ;;  %v2480_v32 = vadd.f32 %v2479_v36, %v5874_v45  ;;  %6979 = vst [vmem:[#allocation73_spill] sm:$0xff] %v5892_v22  ;;  %v2595_v30 = vadd.f32 %v2594_v33, %v5892_v22 }
 0x81b   :  { %6968 = vst [vmem:[#allocation67_spill] sm:$0xff] %v5870_v29 }
 0x81c   :  { %6975 = vst [vmem:[#allocation70_spill] sm:$0xff] %v5882_v43  ;;  %v2482_v23 = vadd.f32 %v2481_v40, %v5882_v43 }
 0x89f   :  { %v5876_v31 = vpop.f32.mrf.mxu0  ;;  %v5878_v14 = vpop.f32.mrf.mxu1 }
 0x8a0   :  { %6972 = vst [vmem:[#allocation66_spill] sm:$0xff] %v5876_v31  ;;  %6973 = vst [vmem:[#allocation40_spill] sm:$0xff] %v5878_v14 }
 0x8a1   :  { %v5884_v38 = vpop.f32.mrf.mxu0  ;;  %v5886_v25 = vpop.f32.mrf.mxu1 }
 0x8a2   :  { %6976 = vst [vmem:[#allocation71_spill] sm:$0xff] %v5884_v38  ;;  %6977 = vst [vmem:[#allocation72_spill] sm:$0xff] %v5886_v25  ;;  %v6980_v25 = vsub.s32 2, %v6969_v41 }
 0x8a3   :  { %v2807_v24 = vpop.f32.mrf.mxu0  ;;  %v2878_v29 = vpop.f32.mrf.mxu1 }
 0x8a4   :  { %v2883_v31 = vadd.f32 %v2807_v24, %v2480_v32  ;;  %v5897_v36 = vrot.slane %v2391_v28, %v6980_v25  ;;  %v6983_v28 = vld [vmem:[#allocation51_spill] sm:$0xff] }
 0x8a5   :  { %v2809_v14 = vpop.f32.mrf.mxu0  ;;  %v2880_v39 = vpop.f32.mrf.mxu1 }
 0x8a6   :  { %v2887_v46 = vmul.f32 0.5, %v2883_v31  ;;  %v2884_v10 = vadd.f32 %v2809_v14, %v2482_v23  ;;  %v2886_v45 = vadd.f32 %v2880_v39, %v2595_v30  ;;  %v2593_v40 = vadd.f32 %v2592_v34, %v5897_v36  ;;  %v6985_v39 = vld [vmem:[#allocation50_spill] sm:$0xff] }
 0x8a8   :  { %4234 = vtanh.f32 %v2887_v46  ;;  %v2888_v38 = vmul.f32 0.5, %v2884_v10  ;;  %v2885_v27 = vadd.f32 %v2878_v29, %v2593_v40  ;;  %v6984_v29 = vld [vmem:[#allocation52_spill] sm:$0xff] }
 0x8a9   :  { %v6986_v40 = vld [vmem:[#allocation20_spill] sm:$0xff] }
 0x8aa   :  { %4236 = vtanh.f32 %v2888_v38  ;;  %v2889_v43 = vmul.f32 0.5, %v2885_v27  ;;  %v6987_v27 = vld [vmem:[#allocation21_spill] sm:$0xff] }
 0x8ab   :  { %4238 = vtanh.f32 %v2886_v45 }
 0x8ac   :  { %4240 = vtanh.f32 %v2889_v43  ;;  %v6982_v43 = vld [vmem:[#allocation49_spill] sm:$0xff] }
 0x8b5   :  { %v4235_v24 = vpop.eup %4234 }
 0x8b6   :  { %v2893_v32 = vadd.f32 1.0, %v4235_v24  ;;  %v6988_v24 = vld [vmem:[#allocation53_spill] sm:$0xff] }
 0x8b7   :  { %v4237_v31 = vpop.eup %4236 }
 0x8b8   :  { %v2896_v23 = vmul.f32 0.5, %v2893_v32  ;;  %v2894_v14 = vadd.f32 1.0, %v4237_v31  ;;  %v4239_v46 = vpop.eup %4238  ;;  %v6989_v32 = vld [vmem:[#allocation55_spill] sm:$0xff]  ;;  %v6990_v31 = vld [vmem:[#allocation56_spill] sm:$0xff] }
 0x8b9   :  { %v4241_v30 = vpop.eup %4240 }
 0x8ba   :  { %v2897_v33 = vmul.f32 0.5, %v2894_v14  ;;  %v2901_v22 = vmul.f32 %v4239_v46, %v2896_v23  ;;  %v2895_v25 = vadd.f32 1.0, %v4241_v30  ;;  %v6991_v23 = vld [vmem:[#allocation54_spill] sm:$0xff]  ;;  %v6994_v46 = vld [vmem:[#allocation24_spill] sm:$0xff] }
 0x8bb   :  { %v6992_v14 = vld [vmem:[#allocation22_spill] sm:$0xff] }
 0x8bc   :  { %v2900_v10 = vmul.f32 0.0, %v2897_v33  ;;  %v2898_v38 = vmul.f32 0.5, %v2895_v25  ;;  %v6993_v33 = vld [vmem:[#allocation23_spill] sm:$0xff]  ;;  %v6996_v30 = vld [vmem:[#allocation26_spill] sm:$0xff] }
 0x8bd   :  { %v6997_v25 = vld [vmem:[#allocation27_spill] sm:$0xff] }
 0x8be   :  { %v5900_v41 = vadd.f32 %v2901_v22, %v2900_v10  ;;  %v6981_v22 = vld [vmem:[#allocation46_spill] sm:$0xff]  ;;  %v6995_v10 = vld [vmem:[#allocation25_spill] sm:$0xff] }
 0x8c0   :  { %4242 = vtanh.f32 %v5900_v41 }
 0x8cd   :  { %v4243_v45 = vpop.eup %4242 }
 0x8ce   :  { %v2904_v34 = vmul.f32 %v4243_v45, %v2898_v38  ;;  %v6998_v38 = vld [vmem:[#allocation28_spill] sm:$0xff]  ;;  %v6999_v45 = vld [vmem:[#allocation29_spill] sm:$0xff] }
 0x8d0   :  { %2976 = vmatmul.mubr.f32.vlgmr.msra.gmra.mxu0 %v2904_v34  ;;  %3047 = vmatmul.mubr.f32.vlgmr.msra.gmra.mxu1 %v2904_v34  ;;  %v7000_v34 = vmov 0.0  }
 0x8d1   :  { %3082 = vmatpush1.msra.mxu0 %v5558_v61  ;;  %3153 = vmatpush1.msra.mxu1 %v5560_v47 }
 0x8d2   :  { %3083 = vmatprep.subr.mxu0 %v5564_v37  ;;  %3154 = vmatprep.subr.mxu1 %v5566_v48 }
 0x8d3   :  { %3084 = vmatpush1.msra.mxu0 %v5570_v49  ;;  %3155 = vmatpush1.msra.mxu1 %v5572_v50 }
 0x8d4   :  { %3085 = vmatprep.subr.mxu0 %v5576_v51  ;;  %3156 = vmatprep.subr.mxu1 %v5578_v52 }
 0x8d5   :  { %3086 = vmatpush1.msra.mxu0 %v5582_v54  ;;  %3157 = vmatpush1.msra.mxu1 %v5584_v55 }
 0x8d6   :  { %3087 = vmatprep.subr.mxu0 %v5588_v56  ;;  %3158 = vmatprep.subr.mxu1 %v5590_v57 }
 0x8d7   :  { %3088 = vmatpush1.msra.mxu0 %v5594_v58  ;;  %3159 = vmatpush1.msra.mxu1 %v5596_v59 }
 0x8d8   :  { %3089 = vmatprep.subr.mxu0 %v5600_v6  ;;  %3160 = vmatprep.subr.mxu1 %v5602_v15 }
 0x8d9   :  { %3090 = vmatpush1.msra.mxu0 %v5606_v7  ;;  %3161 = vmatpush1.msra.mxu1 %v5608_v0 }
 0x8da   :  { %3091 = vmatprep.subr.mxu0 %v5612_v63  ;;  %3162 = vmatprep.subr.mxu1 %v5614_v1 }
 0x8db   :  { %3092 = vmatpush1.msra.mxu0 %v5616_v42  ;;  %3163 = vmatpush1.msra.mxu1 %v5620_v19 }
 0x8dc   :  { %3093 = vmatprep.subr.mxu0 %v5622_v53  ;;  %3164 = vmatprep.subr.mxu1 %v5624_v2 }
 0x8dd   :  { %3094 = vmatpush1.msra.mxu0 %v5628_v13  ;;  %3165 = vmatpush1.msra.mxu1 %v5630_v5 }
 0x8de   :  { %3095 = vmatprep.subr.mxu0 %v5636_v44  ;;  %3166 = vmatprep.subr.mxu1 %v5638_v3 }
 0x8df   :  { %3096 = vmatpush1.msra.mxu0 %v5642_v17  ;;  %3167 = vmatpush1.msra.mxu1 %v5644_v60 }
 0x8e0   :  { %3097 = vmatprep.subr.mxu0 %v5648_v26  ;;  %3168 = vmatprep.subr.mxu1 %v5650_v16 }
 0x8e1   :  { %3098 = vmatpush1.msra.mxu0 %v5654_v9  ;;  %3169 = vmatpush1.msra.mxu1 %v5656_v8 }
 0x8e2   :  { %3099 = vmatprep.subr.mxu0 %v5660_v12  ;;  %3170 = vmatprep.subr.mxu1 %v5662_v18 }
 0x8e3   :  { %3100 = vmatpush1.msra.mxu0 %v5666_v11  ;;  %3171 = vmatpush1.msra.mxu1 %v5668_v35 }
 0x8e4   :  { %3101 = vmatprep.subr.mxu0 %v5672_v4  ;;  %3172 = vmatprep.subr.mxu1 %v5674_v62 }
 0x8e5   :  { %3102 = vmatpush1.msra.mxu0 %v5678_v20  ;;  %3173 = vmatpush1.msra.mxu1 %v5680_v21 }
 0x8e6   :  { %3103 = vmatprep.subr.mxu0 %v6981_v22  ;;  %3174 = vmatprep.subr.mxu1 %v6982_v43 }
 0x8e7   :  { %3104 = vmatpush1.msra.mxu0 %v6983_v28  ;;  %3175 = vmatpush1.msra.mxu1 %v6984_v29  ;;  %v7009_v29 = vld [vmem:[#allocation34_spill] sm:$0xff] }
 0x8e8   :  { %3105 = vmatprep.subr.mxu0 %v6985_v39  ;;  %3176 = vmatprep.subr.mxu1 %v6986_v40  ;;  %v7008_v39 = vld [vmem:[#allocation73_spill] sm:$0xff] }
 0x8e9   :  { %3106 = vmatpush1.msra.mxu0 %v6987_v27  ;;  %3177 = vmatpush1.msra.mxu1 %v6988_v24  ;;  %v7007_v24 = vld [vmem:[#allocation33_spill] sm:$0xff] }
 0x8ea   :  { %3107 = vmatprep.subr.mxu0 %v6989_v32  ;;  %3178 = vmatprep.subr.mxu1 %v6990_v31  ;;  %v7001_v31 = vld [vmem:[#allocation30_spill] sm:$0xff] }
 0x8eb   :  { %3108 = vmatpush1.msra.mxu0 %v6991_v23  ;;  %3179 = vmatpush1.msra.mxu1 %v6992_v14  ;;  %v7002_v14 = vld [vmem:[#allocation42_spill] sm:$0xff] }
 0x8ec   :  { %3109 = vmatprep.subr.mxu0 %v6993_v33  ;;  %3180 = vmatprep.subr.mxu1 %v6994_v46  ;;  %v7003_v33 = vld [vmem:[#allocation45_spill] sm:$0xff]  ;;  %v7004_v46 = vld [vmem:[#allocation68_spill] sm:$0xff] }
 0x8ed   :  { %3110 = vmatpush1.msra.mxu0 %v6995_v10  ;;  %3181 = vmatpush1.msra.mxu1 %v6996_v30  ;;  %v7005_v10 = vld [vmem:[#allocation31_spill] sm:$0xff] }
 0x8ee   :  { %3111 = vmatprep.subr.mxu0 %v6997_v25  ;;  %3182 = vmatprep.subr.mxu1 %v6998_v38  ;;  %v2486_v23 = vadd.f32 %v7005_v10, %v7004_v46  ;;  %v7006_v25 = vld [vmem:[#allocation70_spill] sm:$0xff]  ;;  %v7010_v10 = vld [vmem:[#allocation32_spill] sm:$0xff] }
 0x8ef   :  { %3112 = vmatpush1.msra.mxu0 %v6999_v45  ;;  %3145 = vmatprep.mubr.f32.mxu0 %v7000_v34  ;;  %v2488_v38 = vadd.f32 %v7007_v24, %v7006_v25  ;;  %v2599_v46 = vadd.f32 %v7010_v10, %v5897_v36  ;;  %v7020_v10 = vld [vmem:[#allocation53_spill] sm:$0xff] }
 0x8f0   :  { %3183 = vmatpush1.msra.mxu1 %v7001_v31  ;;  %3216 = vmatprep.mubr.f32.mxu1 %v7000_v34  ;;  %v2601_v31 = vadd.f32 %v7009_v29, %v7008_v39 }
 0x8f1   :  { %3251 = vmatprep.subr.mxu0 %v7002_v14  ;;  %3322 = vmatprep.subr.mxu1 %v7003_v33 }
 0x990   :  { %v2977_v30 = vpop.f32.mrf.mxu0  ;;  %v3048_v32 = vpop.f32.mrf.mxu1 }
 0x991   :  { %v3053_v27 = vadd.f32 %v2977_v30, %v2486_v23  ;;  %v3055_v33 = vadd.f32 %v3048_v32, %v2599_v46  ;;  %v7016_v46 = vld [vmem:[#allocation52_spill] sm:$0xff] }
 0x992   :  { %v2979_v45 = vpop.f32.mrf.mxu0  ;;  %v3050_v40 = vpop.f32.mrf.mxu1 }
 0x993   :  { %v3057_v28 = vmul.f32 0.5, %v3053_v27  ;;  %v3054_v34 = vadd.f32 %v2979_v45, %v2488_v38  ;;  %v3056_v43 = vadd.f32 %v3050_v40, %v2601_v31  ;;  %v3059_v22 = vmul.f32 0.5, %v3055_v33  ;;  %v7015_v33 = vld [vmem:[#allocation51_spill] sm:$0xff]  ;;  %v7018_v45 = vld [vmem:[#allocation20_spill] sm:$0xff] }
 0x995   :  { %4244 = vtanh.f32 %v3057_v28  ;;  %v3058_v14 = vmul.f32 0.5, %v3054_v34  ;;  %v7019_v34 = vld [vmem:[#allocation21_spill] sm:$0xff] }
 0x997   :  { %4246 = vtanh.f32 %v3058_v14 }
 0x998   :  { %4248 = vtanh.f32 %v3056_v43 }
 0x999   :  { %4250 = vtanh.f32 %v3059_v22  ;;  %v7014_v22 = vld [vmem:[#allocation49_spill] sm:$0xff] }
 0x9a2   :  { %v4245_v21 = vpop.eup %4244 }
 0x9a3   :  { %v3063_v24 = vadd.f32 1.0, %v4245_v21  ;;  %v7012_v21 = vld [vmem:[#allocation48_spill] sm:$0xff] }
 0x9a4   :  { %v4247_v23 = vpop.eup %4246 }
 0x9a5   :  { %v3066_v30 = vmul.f32 0.5, %v3063_v24  ;;  %v3064_v25 = vadd.f32 1.0, %v4247_v23  ;;  %v4249_v20 = vpop.eup %4248  ;;  %v7021_v24 = vld [vmem:[#allocation55_spill] sm:$0xff]  ;;  %v7022_v23 = vld [vmem:[#allocation56_spill] sm:$0xff] }
 0x9a6   :  { %v4251_v43 = vpop.eup %4250 }
 0x9a7   :  { %v3067_v29 = vmul.f32 0.5, %v3064_v25  ;;  %v3071_v27 = vmul.f32 %v4249_v20, %v3066_v30  ;;  %v3065_v40 = vadd.f32 1.0, %v4251_v43  ;;  %v7011_v20 = vld [vmem:[#allocation47_spill] sm:$0xff]  ;;  %v7017_v25 = vld [vmem:[#allocation50_spill] sm:$0xff]  ;;  %v7027_v43 = vld [vmem:[#allocation25_spill] sm:$0xff] }
 0x9a8   :  { %v7023_v30 = vld [vmem:[#allocation54_spill] sm:$0xff] }
 0x9a9   :  { %v3070_v28 = vmul.f32 %v3067_v29, %v5900_v41  ;;  %v3068_v31 = vmul.f32 0.5, %v3065_v40  ;;  %v7013_v41 = vld [vmem:[#allocation46_spill] sm:$0xff] }
 0x9aa   :  { %v7024_v29 = vld [vmem:[#allocation22_spill] sm:$0xff] }
 0x9ab   :  { %v5978_v38 = vadd.f32 %v3071_v27, %v3070_v28  ;;  %v7025_v27 = vld [vmem:[#allocation23_spill] sm:$0xff]  ;;  %v7026_v28 = vld [vmem:[#allocation24_spill] sm:$0xff]  ;;  %v7028_v40 = vld [vmem:[#allocation26_spill] sm:$0xff] }
 0x9ad   :  { %4252 = vtanh.f32 %v5978_v38 }
 0x9ba   :  { %v4253_v32 = vpop.eup %4252 }
 0x9bb   :  { %v3074_v14 = vmul.f32 %v4253_v32, %v3068_v31  ;;  %v7029_v31 = vld [vmem:[#allocation27_spill] sm:$0xff]  ;;  %v7030_v32 = vld [vmem:[#allocation28_spill] sm:$0xff] }
 0x9bd   :  { %3146 = vmatmul.mubr.f32.vlgmr.msra.gmra.mxu0 %v3074_v14  ;;  %3217 = vmatmul.mubr.f32.vlgmr.msra.gmra.mxu1 %v3074_v14  ;;  %v7031_v14 = vld [vmem:[#allocation29_spill] sm:$0xff] }
 0x9be   :  { %3252 = vmatpush1.msra.mxu0 %v5558_v61  ;;  %3323 = vmatpush1.msra.mxu1 %v5560_v47 }
 0x9bf   :  { %3253 = vmatprep.subr.mxu0 %v5564_v37  ;;  %3324 = vmatprep.subr.mxu1 %v5566_v48 }
 0x9c0   :  { %3254 = vmatpush1.msra.mxu0 %v5570_v49  ;;  %3325 = vmatpush1.msra.mxu1 %v5572_v50 }
 0x9c1   :  { %3255 = vmatprep.subr.mxu0 %v5576_v51  ;;  %3326 = vmatprep.subr.mxu1 %v5578_v52 }
 0x9c2   :  { %3256 = vmatpush1.msra.mxu0 %v5582_v54  ;;  %3327 = vmatpush1.msra.mxu1 %v5584_v55 }
 0x9c3   :  { %3257 = vmatprep.subr.mxu0 %v5588_v56  ;;  %3328 = vmatprep.subr.mxu1 %v5590_v57 }
 0x9c4   :  { %3258 = vmatpush1.msra.mxu0 %v5594_v58  ;;  %3329 = vmatpush1.msra.mxu1 %v5596_v59 }
 0x9c5   :  { %3259 = vmatprep.subr.mxu0 %v5600_v6  ;;  %3330 = vmatprep.subr.mxu1 %v5602_v15 }
 0x9c6   :  { %3260 = vmatpush1.msra.mxu0 %v5606_v7  ;;  %3331 = vmatpush1.msra.mxu1 %v5608_v0 }
 0x9c7   :  { %3261 = vmatprep.subr.mxu0 %v5612_v63  ;;  %3332 = vmatprep.subr.mxu1 %v5614_v1 }
 0x9c8   :  { %3262 = vmatpush1.msra.mxu0 %v5616_v42  ;;  %3333 = vmatpush1.msra.mxu1 %v5620_v19 }
 0x9c9   :  { %3263 = vmatprep.subr.mxu0 %v5622_v53  ;;  %3334 = vmatprep.subr.mxu1 %v5624_v2 }
 0x9ca   :  { %3264 = vmatpush1.msra.mxu0 %v5628_v13  ;;  %3335 = vmatpush1.msra.mxu1 %v5630_v5 }
 0x9cb   :  { %3265 = vmatprep.subr.mxu0 %v5636_v44  ;;  %3336 = vmatprep.subr.mxu1 %v5638_v3 }
 0x9cc   :  { %3266 = vmatpush1.msra.mxu0 %v5642_v17  ;;  %3337 = vmatpush1.msra.mxu1 %v5644_v60 }
 0x9cd   :  { %3267 = vmatprep.subr.mxu0 %v5648_v26  ;;  %3338 = vmatprep.subr.mxu1 %v5650_v16 }
 0x9ce   :  { %3268 = vmatpush1.msra.mxu0 %v5654_v9  ;;  %3339 = vmatpush1.msra.mxu1 %v5656_v8 }
 0x9cf   :  { %3269 = vmatprep.subr.mxu0 %v5660_v12  ;;  %3340 = vmatprep.subr.mxu1 %v5662_v18 }
 0x9d0   :  { %3270 = vmatpush1.msra.mxu0 %v5666_v11  ;;  %3341 = vmatpush1.msra.mxu1 %v5668_v35 }
 0x9d1   :  { %3271 = vmatprep.subr.mxu0 %v5672_v4  ;;  %3342 = vmatprep.subr.mxu1 %v5674_v62 }
 0x9d2   :  { %3272 = vmatpush1.msra.mxu0 %v7011_v20  ;;  %3343 = vmatpush1.msra.mxu1 %v7012_v21 }
 0x9d3   :  { %3273 = vmatprep.subr.mxu0 %v7013_v41  ;;  %3344 = vmatprep.subr.mxu1 %v7014_v22 }
 0x9d4   :  { %3274 = vmatpush1.msra.mxu0 %v7015_v33  ;;  %3345 = vmatpush1.msra.mxu1 %v7016_v46  ;;  %v7040_v46 = vld [vmem:[#allocation38_spill] sm:$0xff] }
 0x9d5   :  { %3275 = vmatprep.subr.mxu0 %v7017_v25  ;;  %3346 = vmatprep.subr.mxu1 %v7018_v45 }
 0x9d6   :  { %3276 = vmatpush1.msra.mxu0 %v7019_v34  ;;  %3347 = vmatpush1.msra.mxu1 %v7020_v10  ;;  %v7039_v34 = vld [vmem:[#allocation37_spill] sm:$0xff] }
 0x9d7   :  { %3277 = vmatprep.subr.mxu0 %v7021_v24  ;;  %3348 = vmatprep.subr.mxu1 %v7022_v23  ;;  %v7032_v24 = vmov 0.0   ;;  %v7033_v23 = vld [vmem:[#allocation30_spill] sm:$0xff] }
 0x9d8   :  { %3278 = vmatpush1.msra.mxu0 %v7023_v30  ;;  %3349 = vmatpush1.msra.mxu1 %v7024_v29  ;;  %v7034_v29 = vld [vmem:[#allocation42_spill] sm:$0xff] }
 0x9d9   :  { %3279 = vmatprep.subr.mxu0 %v7025_v27  ;;  %3350 = vmatprep.subr.mxu1 %v7026_v28  ;;  %v7035_v27 = vld [vmem:[#allocation45_spill] sm:$0xff]  ;;  %v7036_v28 = vld [vmem:[#allocation68_spill] sm:$0xff] }
 0x9da   :  { %3280 = vmatpush1.msra.mxu0 %v7027_v43  ;;  %3351 = vmatpush1.msra.mxu1 %v7028_v40  ;;  %v7037_v43 = vld [vmem:[#allocation35_spill] sm:$0xff] }
 0x9db   :  { %3281 = vmatprep.subr.mxu0 %v7029_v31  ;;  %3352 = vmatprep.subr.mxu1 %v7030_v32  ;;  %v2492_v30 = vadd.f32 %v7037_v43, %v7036_v28  ;;  %v7038_v31 = vld [vmem:[#allocation70_spill] sm:$0xff] }
 0x9dc   :  { %3282 = vmatpush1.msra.mxu0 %v7031_v14  ;;  %3315 = vmatprep.mubr.f32.mxu0 %v7032_v24  ;;  %v2494_v32 = vadd.f32 %v7039_v34, %v7038_v31 }
 0x9dd   :  { %3353 = vmatpush1.msra.mxu1 %v7033_v23  ;;  %3386 = vmatprep.mubr.f32.mxu1 %v7032_v24  ;;  %v2607_v23 = vadd.f32 %v7040_v46, %v7008_v39 }
 0x9de   :  { %3421 = vmatprep.subr.mxu0 %v7034_v29  ;;  %3492 = vmatprep.subr.mxu1 %v7035_v27  ;;  %v7041_v27 = vld [vmem:[#allocation36_spill] sm:$0xff] }
 0x9df   :  { %v2605_v43 = vadd.f32 %v7041_v27, %v5897_v36 }
 0xa7d   :  { %v3147_v40 = vpop.f32.mrf.mxu0  ;;  %v3218_v10 = vpop.f32.mrf.mxu1 }
 0xa7e   :  { %v3223_v45 = vadd.f32 %v3147_v40, %v2492_v30  ;;  %v3225_v28 = vadd.f32 %v3218_v10, %v2605_v43 }
 0xa7f   :  { %v3149_v14 = vpop.f32.mrf.mxu0  ;;  %v3220_v25 = vpop.f32.mrf.mxu1 }
 0xa80   :  { %v3227_v33 = vmul.f32 0.5, %v3223_v45  ;;  %v3224_v24 = vadd.f32 %v3149_v14, %v2494_v32  ;;  %v3226_v22 = vadd.f32 %v3220_v25, %v2607_v23  ;;  %v3229_v41 = vmul.f32 0.5, %v3225_v28 }
 0xa82   :  { %4254 = vtanh.f32 %v3227_v33  ;;  %v3228_v29 = vmul.f32 0.5, %v3224_v24 }
 0xa84   :  { %4256 = vtanh.f32 %v3228_v29 }
 0xa85   :  { %4258 = vtanh.f32 %v3226_v22 }
 0xa86   :  { %4260 = vtanh.f32 %v3229_v41 }
 0xa8f   :  { %v4255_v21 = vpop.eup %4254 }
 0xa90   :  { %v3233_v34 = vadd.f32 1.0, %v4255_v21  ;;  %v7072_v21 = vld [vmem:[#allocation41_spill] sm:$0xff] }
 0xa91   :  { %v4257_v30 = vpop.eup %4256  ;;  %v2611_v41 = vadd.f32 %v7072_v21, %v5897_v36  ;;  %v6255_v21 = vld [vmem:[#allocation13 + $0xa8] sm:$0xff] }
 0xa92   :  { %v3236_v40 = vmul.f32 0.5, %v3233_v34  ;;  %v3234_v31 = vadd.f32 1.0, %v4257_v30  ;;  %v4259_v20 = vpop.eup %4258 }
 0xa93   :  { %v4261_v22 = vpop.eup %4260 }
 0xa94   :  { %v3237_v46 = vmul.f32 0.5, %v3234_v31  ;;  %v3241_v45 = vmul.f32 %v4259_v20, %v3236_v40  ;;  %v3235_v25 = vadd.f32 1.0, %v4261_v22 }
 0xa96   :  { %v3240_v33 = vmul.f32 %v3237_v46, %v5978_v38  ;;  %v3238_v23 = vmul.f32 0.5, %v3235_v25 }
 0xa98   :  { %v6056_v24 = vadd.f32 %v3241_v45, %v3240_v33 }
 0xa9a   :  { %4262 = vtanh.f32 %v6056_v24 }
 0xaa7   :  { %v4263_v10 = vpop.eup %4262 }
 0xaa8   :  { %v3244_v28 = vmul.f32 %v4263_v10, %v3238_v23 }
 0xaaa   :  { %3316 = vmatmul.mubr.f32.vlgmr.msra.gmra.mxu0 %v3244_v28  ;;  %3387 = vmatmul.mubr.f32.vlgmr.msra.gmra.mxu1 %v3244_v28 }
 0xaab   :  { %3422 = vmatpush1.msra.mxu0 %v5558_v61  ;;  %3493 = vmatpush1.msra.mxu1 %v5560_v47  ;;  %v7042_v61 = vld [vmem:[#allocation47_spill] sm:$0xff]  ;;  %v7043_v47 = vld [vmem:[#allocation48_spill] sm:$0xff] }
 0xaac   :  { %3423 = vmatprep.subr.mxu0 %v5564_v37  ;;  %3494 = vmatprep.subr.mxu1 %v5566_v48  ;;  %v7044_v37 = vld [vmem:[#allocation46_spill] sm:$0xff]  ;;  %v7045_v48 = vld [vmem:[#allocation49_spill] sm:$0xff] }
 0xaad   :  { %3424 = vmatpush1.msra.mxu0 %v5570_v49  ;;  %3495 = vmatpush1.msra.mxu1 %v5572_v50  ;;  %v7046_v49 = vld [vmem:[#allocation51_spill] sm:$0xff]  ;;  %v7047_v50 = vld [vmem:[#allocation52_spill] sm:$0xff] }
 0xaae   :  { %3425 = vmatprep.subr.mxu0 %v5576_v51  ;;  %3496 = vmatprep.subr.mxu1 %v5578_v52  ;;  %v7048_v51 = vld [vmem:[#allocation50_spill] sm:$0xff]  ;;  %v7049_v52 = vld [vmem:[#allocation20_spill] sm:$0xff] }
 0xaaf   :  { %3426 = vmatpush1.msra.mxu0 %v5582_v54  ;;  %3497 = vmatpush1.msra.mxu1 %v5584_v55  ;;  %v7050_v54 = vld [vmem:[#allocation21_spill] sm:$0xff] }
 0xab0   :  { %3427 = vmatprep.subr.mxu0 %v5588_v56  ;;  %3498 = vmatprep.subr.mxu1 %v5590_v57  ;;  %v7051_v55 = vld [vmem:[#allocation53_spill] sm:$0xff]  ;;  %v7052_v56 = vld [vmem:[#allocation55_spill] sm:$0xff]  ;;  %v7053_v57 = vld [vmem:[#allocation56_spill] sm:$0xff] }
 0xab1   :  { %3428 = vmatpush1.msra.mxu0 %v5594_v58  ;;  %3499 = vmatpush1.msra.mxu1 %v5596_v59  ;;  %v7054_v58 = vld [vmem:[#allocation54_spill] sm:$0xff] }
 0xab2   :  { %3429 = vmatprep.subr.mxu0 %v5600_v6  ;;  %3500 = vmatprep.subr.mxu1 %v5602_v15  ;;  %v7055_v59 = vld [vmem:[#allocation22_spill] sm:$0xff]  ;;  %v7056_v6 = vld [vmem:[#allocation23_spill] sm:$0xff]  ;;  %v7057_v15 = vld [vmem:[#allocation24_spill] sm:$0xff] }
 0xab3   :  { %3430 = vmatpush1.msra.mxu0 %v5606_v7  ;;  %3501 = vmatpush1.msra.mxu1 %v5608_v0  ;;  %v7058_v7 = vld [vmem:[#allocation25_spill] sm:$0xff]  ;;  %v7059_v0 = vld [vmem:[#allocation26_spill] sm:$0xff] }
 0xab4   :  { %3431 = vmatprep.subr.mxu0 %v5612_v63  ;;  %3502 = vmatprep.subr.mxu1 %v5614_v1  ;;  %v7060_v63 = vld [vmem:[#allocation27_spill] sm:$0xff]  ;;  %v7061_v1 = vld [vmem:[#allocation28_spill] sm:$0xff] }
 0xab5   :  { %3432 = vmatpush1.msra.mxu0 %v5616_v42  ;;  %3503 = vmatpush1.msra.mxu1 %v5620_v19  ;;  %v7062_v42 = vld [vmem:[#allocation29_spill] sm:$0xff]  ;;  %v7063_v19 = vmov 0.0  }
 0xab6   :  { %3433 = vmatprep.subr.mxu0 %v5622_v53  ;;  %3504 = vmatprep.subr.mxu1 %v5624_v2  ;;  %v7064_v53 = vld [vmem:[#allocation30_spill] sm:$0xff]  ;;  %v6123_v2 = vld [vmem:[#allocation13 + $0x1e8] sm:$0xff] }
 0xab7   :  { %3434 = vmatpush1.msra.mxu0 %v5628_v13  ;;  %3505 = vmatpush1.msra.mxu1 %v5630_v5  ;;  %7065 = vst [vmem:[#allocation31_spill] sm:$0xff] %v6123_v2  ;;  %v6126_v13 = vld [vmem:[#allocation13 + $0x1f8] sm:$0xff]  ;;  %v7067_v5 = vld [vmem:[#allocation68_spill] sm:$0xff] }
 0xab8   :  { %3435 = vmatprep.subr.mxu0 %v5636_v44  ;;  %3506 = vmatprep.subr.mxu1 %v5638_v3  ;;  %7066 = vst [vmem:[#allocation33_spill] sm:$0xff] %v6126_v13  ;;  %v7068_v44 = vld [vmem:[#allocation39_spill] sm:$0xff] }
 0xab9   :  { %3436 = vmatpush1.msra.mxu0 %v5642_v17  ;;  %3507 = vmatpush1.msra.mxu1 %v5644_v60  ;;  %v2498_v3 = vadd.f32 %v7068_v44, %v7067_v5  ;;  %v6210_v44 = vld [vmem:[#allocation13 + $0x138] sm:$0xff] }
 0xaba   :  { %3437 = vmatprep.subr.mxu0 %v5648_v26  ;;  %3508 = vmatprep.subr.mxu1 %v5650_v16  ;;  %v7069_v26 = vld [vmem:[#allocation70_spill] sm:$0xff]  ;;  %v7070_v16 = vld [vmem:[#allocation57_spill] sm:$0xff] }
 0xabb   :  { %3438 = vmatpush1.msra.mxu0 %v5654_v9  ;;  %3509 = vmatpush1.msra.mxu1 %v5656_v8  ;;  %v2500_v9 = vadd.f32 %v7070_v16, %v7069_v26  ;;  %v6222_v16 = vld [vmem:[#allocation13 + $0x118] sm:$0xff] }
 0xabc   :  { %3439 = vmatprep.subr.mxu0 %v5660_v12  ;;  %3510 = vmatprep.subr.mxu1 %v5662_v18 }
 0xabd   :  { %3440 = vmatpush1.msra.mxu0 %v5666_v11  ;;  %3511 = vmatpush1.msra.mxu1 %v5668_v35  ;;  %v7071_v11 = vld [vmem:[#allocation59_spill] sm:$0xff] }
 0xabe   :  { %3441 = vmatprep.subr.mxu0 %v5672_v4  ;;  %3512 = vmatprep.subr.mxu1 %v5674_v62  ;;  %v2613_v35 = vadd.f32 %v7071_v11, %v7008_v39  ;;  %v6237_v11 = vld [vmem:[#allocation13 + $0xe0] sm:$0xff] }
 0xabf   :  { %3442 = vmatpush1.msra.mxu0 %v7042_v61  ;;  %3513 = vmatpush1.msra.mxu1 %v7043_v47  ;;  %v6141_v61 = vld [vmem:[#allocation13 + $0x1e0] sm:$0xff]  ;;  %v6144_v47 = vld [vmem:[#allocation13 + $0x1f0] sm:$0xff] }
 0xac0   :  { %3443 = vmatprep.subr.mxu0 %v7044_v37  ;;  %3514 = vmatprep.subr.mxu1 %v7045_v48  ;;  %v6150_v37 = vld [vmem:[#allocation13 + $0x1d8] sm:$0xff]  ;;  %v6153_v48 = vld [vmem:[#allocation13 + $0x1c0] sm:$0xff] }
 0xac1   :  { %3444 = vmatpush1.msra.mxu0 %v7046_v49  ;;  %3515 = vmatpush1.msra.mxu1 %v7047_v50  ;;  %v6156_v49 = vld [vmem:[#allocation13 + $0x1d0] sm:$0xff]  ;;  %v6159_v50 = vld [vmem:[#allocation13 + $0x1a8] sm:$0xff] }
 0xac2   :  { %3445 = vmatprep.subr.mxu0 %v7048_v51  ;;  %3516 = vmatprep.subr.mxu1 %v7049_v52  ;;  %v6162_v51 = vld [vmem:[#allocation13 + $0x1b8] sm:$0xff]  ;;  %v6165_v52 = vld [vmem:[#allocation13 + $0x1a0] sm:$0xff] }
 0xac3   :  { %3446 = vmatpush1.msra.mxu0 %v7050_v54  ;;  %3517 = vmatpush1.msra.mxu1 %v7051_v55  ;;  %v6168_v54 = vld [vmem:[#allocation13 + $0x1b0] sm:$0xff]  ;;  %v6171_v55 = vld [vmem:[#allocation13 + $0x188] sm:$0xff] }
 0xac4   :  { %3447 = vmatprep.subr.mxu0 %v7052_v56  ;;  %3518 = vmatprep.subr.mxu1 %v7053_v57  ;;  %v6174_v56 = vld [vmem:[#allocation13 + $0x198] sm:$0xff]  ;;  %v6177_v57 = vld [vmem:[#allocation13 + $0x180] sm:$0xff] }
 0xac5   :  { %3448 = vmatpush1.msra.mxu0 %v7054_v58  ;;  %3519 = vmatpush1.msra.mxu1 %v7055_v59  ;;  %v6180_v58 = vld [vmem:[#allocation13 + $0x190] sm:$0xff]  ;;  %v6183_v59 = vld [vmem:[#allocation13 + $0x168] sm:$0xff] }
 0xac6   :  { %3449 = vmatprep.subr.mxu0 %v7056_v6  ;;  %3520 = vmatprep.subr.mxu1 %v7057_v15  ;;  %v6186_v6 = vld [vmem:[#allocation13 + $0x178] sm:$0xff]  ;;  %v6189_v15 = vld [vmem:[#allocation13 + $0x160] sm:$0xff] }
 0xac7   :  { %3450 = vmatpush1.msra.mxu0 %v7058_v7  ;;  %3521 = vmatpush1.msra.mxu1 %v7059_v0  ;;  %v6192_v7 = vld [vmem:[#allocation13 + $0x170] sm:$0xff]  ;;  %v6195_v0 = vld [vmem:[#allocation13 + $0x148] sm:$0xff] }
 0xac8   :  { %3451 = vmatprep.subr.mxu0 %v7060_v63  ;;  %3522 = vmatprep.subr.mxu1 %v7061_v1  ;;  %v6198_v63 = vld [vmem:[#allocation13 + $0x158] sm:$0xff]  ;;  %v6201_v1 = vld [vmem:[#allocation13 + $0x140] sm:$0xff] }
 0xac9   :  { %3452 = vmatpush1.msra.mxu0 %v7062_v42  ;;  %3485 = vmatprep.mubr.f32.mxu0 %v7063_v19  ;;  %v6204_v42 = vld [vmem:[#allocation13 + $0x150] sm:$0xff] }
 0xaca   :  { %3523 = vmatpush1.msra.mxu1 %v7064_v53  ;;  %3556 = vmatprep.mubr.f32.mxu1 %v7063_v19  ;;  %v6207_v53 = vld [vmem:[#allocation13 + $0x128] sm:$0xff] }
 0xacb   :  { %3591 = vmatprep.subr.mxu0 %v6123_v2  ;;  %3662 = vmatprep.subr.mxu1 %v6126_v13 }
 0xb6a   :  { %v3317_v17 = vpop.f32.mrf.mxu0  ;;  %v3388_v60 = vpop.f32.mrf.mxu1 }
 0xb6b   :  { %v3393_v8 = vadd.f32 %v3317_v17, %v2498_v3  ;;  %v3395_v31 = vadd.f32 %v3388_v60, %v2611_v41  ;;  %v6213_v3 = vld [vmem:[#allocation13 + $0x120] sm:$0xff]  ;;  %v6216_v17 = vld [vmem:[#allocation13 + $0x130] sm:$0xff]  ;;  %v6219_v60 = vld [vmem:[#allocation13 + $0x108] sm:$0xff] }
 0xb6c   :  { %v3319_v12 = vpop.f32.mrf.mxu0  ;;  %v3390_v18 = vpop.f32.mrf.mxu1  ;;  %v6258_v41 = vld [vmem:[#allocation13 + $0xb8] sm:$0xff] }
 0xb6d   :  { %v3397_v4 = vmul.f32 0.5, %v3393_v8  ;;  %v3394_v62 = vadd.f32 %v3319_v12, %v2500_v9  ;;  %v3396_v20 = vadd.f32 %v3390_v18, %v2613_v35  ;;  %v3399_v32 = vmul.f32 0.5, %v3395_v31  ;;  %v6225_v9 = vld [vmem:[#allocation13 + $0x100] sm:$0xff]  ;;  %v6228_v8 = vld [vmem:[#allocation13 + $0x110] sm:$0xff]  ;;  %v6231_v12 = vld [vmem:[#allocation13 + $0xe8] sm:$0xff] }
 0xb6e   :  { %v6234_v18 = vld [vmem:[#allocation13 + $0xf8] sm:$0xff]  ;;  %v6240_v35 = vld [vmem:[#allocation13 + $0xf0] sm:$0xff]  ;;  %v6261_v31 = vld [vmem:[#allocation13 + $0xa0] sm:$0xff] }
 0xb6f   :  { %4264 = vtanh.f32 %v3397_v4  ;;  %v3398_v38 = vmul.f32 0.5, %v3394_v62  ;;  %v6243_v4 = vld [vmem:[#allocation13 + $0xc8] sm:$0xff]  ;;  %v6246_v62 = vld [vmem:[#allocation13 + $0xd8] sm:$0xff]  ;;  %7073 = vst [vmem:[#allocation73_spill] sm:$0xff] %v6261_v31 }
 0xb71   :  { %4266 = vtanh.f32 %v3398_v38  ;;  %v6249_v38 = vld [vmem:[#allocation13 + $0xc0] sm:$0xff] }
 0xb72   :  { %4268 = vtanh.f32 %v3396_v20  ;;  %v6252_v20 = vld [vmem:[#allocation13 + $0xd0] sm:$0xff] }
 0xb73   :  { %4270 = vtanh.f32 %v3399_v32  ;;  %v6264_v32 = vld [vmem:[#allocation13 + $0xb0] sm:$0xff] }
 0xb74   :  { %7074 = vst [vmem:[#allocation34_spill] sm:$0xff] %v6264_v32 }
 0xb7c   :  { %v4265_v14 = vpop.eup %4264 }
 0xb7d   :  { %v3403_v29 = vadd.f32 1.0, %v4265_v14  ;;  %v6267_v14 = vld [vmem:[#allocation13 + $0x88] sm:$0xff] }
 0xb7e   :  { %v4267_v27 = vpop.eup %4266  ;;  %7075 = vst [vmem:[#allocation32_spill] sm:$0xff] %v6267_v14 }
 0xb7f   :  { %v3406_v43 = vmul.f32 0.5, %v3403_v29  ;;  %v3404_v34 = vadd.f32 1.0, %v4267_v27  ;;  %v4269_v30 = vpop.eup %4268  ;;  %v6270_v29 = vld [vmem:[#allocation13 + $0x98] sm:$0xff]  ;;  %v6273_v27 = vld [vmem:[#allocation13 + $0x80] sm:$0xff] }
 0xb80   :  { %v4271_v22 = vpop.eup %4270  ;;  %7076 = vst [vmem:[#allocation42_spill] sm:$0xff] %v6270_v29  ;;  %7077 = vst [vmem:[#allocation45_spill] sm:$0xff] %v6273_v27 }
 0xb81   :  { %v3407_v40 = vmul.f32 0.5, %v3404_v34  ;;  %v3411_v46 = vmul.f32 %v4269_v30, %v3406_v43  ;;  %v3405_v25 = vadd.f32 1.0, %v4271_v22  ;;  %v6276_v43 = vld [vmem:[#allocation13 + $0x90] sm:$0xff]  ;;  %v6279_v34 = vld [vmem:[#allocation13 + $0x68] sm:$0xff]  ;;  %v6282_v30 = vld [vmem:[#allocation13 + $0x78] sm:$0xff] }
 0xb82   :  { %7078 = vst [vmem:[#allocation35_spill] sm:$0xff] %v6276_v43  ;;  %7079 = vst [vmem:[#allocation37_spill] sm:$0xff] %v6279_v34  ;;  %v6294_v22 = vld [vmem:[#allocation13 + $0x58] sm:$0xff] }
 0xb83   :  { %v3410_v45 = vmul.f32 %v3407_v40, %v6056_v24  ;;  %v3408_v23 = vmul.f32 0.5, %v3405_v25  ;;  %v6147_v24 = vld [vmem:[#allocation13 + $0x1c8] sm:$0xff]  ;;  %7080 = vst [vmem:[#allocation38_spill] sm:$0xff] %v6282_v30  ;;  %v6285_v40 = vld [vmem:[#allocation13 + $0x60] sm:$0xff]  ;;  %7084 = vst [vmem:[#allocation46_spill] sm:$0xff] %v6294_v22 }
 0xb84   :  { %7081 = vst [vmem:[#allocation36_spill] sm:$0xff] %v6285_v40  ;;  %v6297_v25 = vld [vmem:[#allocation13 + $0x40] sm:$0xff] }
 0xb85   :  { %v6138_v33 = vadd.f32 %v3411_v46, %v3410_v45  ;;  %v6288_v46 = vld [vmem:[#allocation13 + $0x70] sm:$0xff]  ;;  %v6291_v45 = vld [vmem:[#allocation13 + $0x48] sm:$0xff]  ;;  %7085 = vst [vmem:[#allocation49_spill] sm:$0xff] %v6297_v25 }
 0xb86   :  { %7082 = vst [vmem:[#allocation47_spill] sm:$0xff] %v6288_v46  ;;  %7083 = vst [vmem:[#allocation48_spill] sm:$0xff] %v6291_v45 }
 0xb87   :  { %4272 = vtanh.f32 %v6138_v33 }
 0xb94   :  { %v4273_v10 = vpop.eup %4272 }
 0xb95   :  { %v3414_v28 = vmul.f32 %v4273_v10, %v3408_v23  ;;  %v6300_v23 = vld [vmem:[#allocation13 + $0x50] sm:$0xff]  ;;  %v6303_v10 = vld [vmem:[#allocation13 + $0x28] sm:$0xff] }
 0xb96   :  { %7086 = vst [vmem:[#allocation51_spill] sm:$0xff] %v6300_v23  ;;  %7087 = vst [vmem:[#allocation52_spill] sm:$0xff] %v6303_v10 }
 0xb97   :  { %3486 = vmatmul.mubr.f32.vlgmr.msra.gmra.mxu0 %v3414_v28  ;;  %3557 = vmatmul.mubr.f32.vlgmr.msra.gmra.mxu1 %v3414_v28  ;;  %v6306_v28 = vld [vmem:[#allocation13 + $0x38] sm:$0xff] }
 0xb98   :  { %3592 = vmatpush1.msra.mxu0 %v6141_v61  ;;  %3663 = vmatpush1.msra.mxu1 %v6144_v47  ;;  %7088 = vst [vmem:[#allocation50_spill] sm:$0xff] %v6306_v28 }
 0xb99   :  { %3593 = vmatprep.subr.mxu0 %v6147_v24  ;;  %3664 = vmatprep.subr.mxu1 %v6150_v37 }
 0xb9a   :  { %3594 = vmatpush1.msra.mxu0 %v6153_v48  ;;  %3665 = vmatpush1.msra.mxu1 %v6156_v49 }
 0xb9b   :  { %3595 = vmatprep.subr.mxu0 %v6159_v50  ;;  %3666 = vmatprep.subr.mxu1 %v6162_v51 }
 0xb9c   :  { %3596 = vmatpush1.msra.mxu0 %v6165_v52  ;;  %3667 = vmatpush1.msra.mxu1 %v6168_v54 }
 0xb9d   :  { %3597 = vmatprep.subr.mxu0 %v6171_v55  ;;  %3668 = vmatprep.subr.mxu1 %v6174_v56 }
 0xb9e   :  { %3598 = vmatpush1.msra.mxu0 %v6177_v57  ;;  %3669 = vmatpush1.msra.mxu1 %v6180_v58 }
 0xb9f   :  { %3599 = vmatprep.subr.mxu0 %v6183_v59  ;;  %3670 = vmatprep.subr.mxu1 %v6186_v6 }
 0xba0   :  { %3600 = vmatpush1.msra.mxu0 %v6189_v15  ;;  %3671 = vmatpush1.msra.mxu1 %v6192_v7 }
 0xba1   :  { %3601 = vmatprep.subr.mxu0 %v6195_v0  ;;  %3672 = vmatprep.subr.mxu1 %v6198_v63 }
 0xba2   :  { %3602 = vmatpush1.msra.mxu0 %v6201_v1  ;;  %3673 = vmatpush1.msra.mxu1 %v6204_v42 }
 0xba3   :  { %3603 = vmatprep.subr.mxu0 %v6207_v53  ;;  %3674 = vmatprep.subr.mxu1 %v6210_v44 }
 0xba4   :  { %3604 = vmatpush1.msra.mxu0 %v6213_v3  ;;  %3675 = vmatpush1.msra.mxu1 %v6216_v17 }
 0xba5   :  { %3605 = vmatprep.subr.mxu0 %v6219_v60  ;;  %3676 = vmatprep.subr.mxu1 %v6222_v16 }
 0xba6   :  { %3606 = vmatpush1.msra.mxu0 %v6225_v9  ;;  %3677 = vmatpush1.msra.mxu1 %v6228_v8 }
 0xba7   :  { %3607 = vmatprep.subr.mxu0 %v6231_v12  ;;  %3678 = vmatprep.subr.mxu1 %v6234_v18 }
 0xba8   :  { %3608 = vmatpush1.msra.mxu0 %v6237_v11  ;;  %3679 = vmatpush1.msra.mxu1 %v6240_v35 }
 0xba9   :  { %3609 = vmatprep.subr.mxu0 %v6243_v4  ;;  %3680 = vmatprep.subr.mxu1 %v6246_v62 }
 0xbaa   :  { %3610 = vmatpush1.msra.mxu0 %v6249_v38  ;;  %3681 = vmatpush1.msra.mxu1 %v6252_v20 }
 0xbab   :  { %3611 = vmatprep.subr.mxu0 %v6255_v21  ;;  %3682 = vmatprep.subr.mxu1 %v6258_v41 }
 0xbac   :  { %3612 = vmatpush1.msra.mxu0 %v6261_v31  ;;  %3683 = vmatpush1.msra.mxu1 %v6264_v32 }
 0xbad   :  { %3613 = vmatprep.subr.mxu0 %v6267_v14  ;;  %3684 = vmatprep.subr.mxu1 %v6270_v29 }
 0xbae   :  { %3614 = vmatpush1.msra.mxu0 %v6273_v27  ;;  %3685 = vmatpush1.msra.mxu1 %v6276_v43  ;;  %v7097_v43 = vld [vmem:[#allocation63_spill] sm:$0xff] }
 0xbaf   :  { %3615 = vmatprep.subr.mxu0 %v6279_v34  ;;  %3686 = vmatprep.subr.mxu1 %v6282_v30 }
 0xbb0   :  { %3616 = vmatpush1.msra.mxu0 %v6285_v40  ;;  %3687 = vmatpush1.msra.mxu1 %v6288_v46  ;;  %v7096_v46 = vld [vmem:[#allocation61_spill] sm:$0xff] }
 0xbb1   :  { %3617 = vmatprep.subr.mxu0 %v6291_v45  ;;  %3688 = vmatprep.subr.mxu1 %v6294_v22  ;;  %v6309_v45 = vld [vmem:[#allocation13 + $0x20] sm:$0xff]  ;;  %v6312_v22 = vld [vmem:[#allocation13 + $0x30] sm:$0xff] }
 0xbb2   :  { %3618 = vmatpush1.msra.mxu0 %v6297_v25  ;;  %3689 = vmatpush1.msra.mxu1 %v6300_v23  ;;  %7089 = vst [vmem:[#allocation20_spill] sm:$0xff] %v6309_v45  ;;  %7090 = vst [vmem:[#allocation21_spill] sm:$0xff] %v6312_v22  ;;  %v6315_v25 = vld [vmem:[#allocation13 + $0x8] sm:$0xff]  ;;  %v6318_v23 = vld [vmem:[#allocation13 + $0x18] sm:$0xff] }
 0xbb3   :  { %3619 = vmatprep.subr.mxu0 %v6303_v10  ;;  %3690 = vmatprep.subr.mxu1 %v6306_v28  ;;  %7091 = vst [vmem:[#allocation53_spill] sm:$0xff] %v6315_v25  ;;  %7092 = vst [vmem:[#allocation55_spill] sm:$0xff] %v6318_v23  ;;  %v6321_v10 = vld [vmem:[#allocation13] sm:$0xff]  ;;  %v6325_v28 = vld [vmem:[#allocation13 + $0x10] sm:$0xff] }
 0xbb4   :  { %3620 = vmatpush1.msra.mxu0 %v6309_v45  ;;  %3691 = vmatpush1.msra.mxu1 %v6312_v22  ;;  %7093 = vst [vmem:[#allocation56_spill] sm:$0xff] %v6321_v10  ;;  %7094 = vst [vmem:[#allocation54_spill] sm:$0xff] %v6325_v28 }
 0xbb5   :  { %3621 = vmatprep.subr.mxu0 %v6315_v25  ;;  %3692 = vmatprep.subr.mxu1 %v6318_v23  ;;  %v7095_v25 = vld [vmem:[#allocation60_spill] sm:$0xff] }
 0xbb6   :  { %3622 = vmatpush1.msra.mxu0 %v6321_v10  ;;  %3655 = vmatprep.mubr.f32.mxu0 %v7063_v19  ;;  %v2504_v22 = vadd.f32 %v7095_v25, %v7067_v5  ;;  %v2506_v10 = vadd.f32 %v7096_v46, %v7069_v26  ;;  %v7098_v25 = vld [vmem:[#allocation58_spill] sm:$0xff] }
 0xbb7   :  { %3693 = vmatpush1.msra.mxu1 %v6325_v28  ;;  %3726 = vmatprep.mubr.f32.mxu1 %v7063_v19  ;;  %v2619_v28 = vadd.f32 %v7097_v43, %v7008_v39  ;;  %v2617_v5 = vadd.f32 %v7098_v25, %v5897_v36  ;;  %v7108_v25 = vld [vmem:[#allocation47_spill] sm:$0xff] }
 0xbb8   :  { %3761 = vmatprep.subr.mxu0 %v6123_v2  ;;  %3832 = vmatprep.subr.mxu1 %v6126_v13 }
 0xc57   :  { %v3487_v23 = vpop.f32.mrf.mxu0  ;;  %v3558_v45 = vpop.f32.mrf.mxu1 }
 0xc58   :  { %v3563_v40 = vadd.f32 %v3487_v23, %v2504_v22  ;;  %v3565_v13 = vadd.f32 %v3558_v45, %v2617_v5  ;;  %v7105_v45 = vld [vmem:[#allocation37_spill] sm:$0xff] }
 0xc59   :  { %v3489_v30 = vpop.f32.mrf.mxu0  ;;  %v3560_v34 = vpop.f32.mrf.mxu1 }
 0xc5a   :  { %v3567_v27 = vmul.f32 0.5, %v3563_v40  ;;  %v3564_v19 = vadd.f32 %v3489_v30, %v2506_v10  ;;  %v3566_v29 = vadd.f32 %v3560_v34, %v2619_v28  ;;  %v3569_v14 = vmul.f32 0.5, %v3565_v13  ;;  %v7104_v30 = vld [vmem:[#allocation35_spill] sm:$0xff]  ;;  %v7106_v10 = vld [vmem:[#allocation38_spill] sm:$0xff]  ;;  %v7107_v28 = vld [vmem:[#allocation36_spill] sm:$0xff] }
 0xc5c   :  { %4274 = vtanh.f32 %v3567_v27  ;;  %v3568_v2 = vmul.f32 0.5, %v3564_v19 }
 0xc5e   :  { %4276 = vtanh.f32 %v3568_v2 }
 0xc5f   :  { %4278 = vtanh.f32 %v3566_v29 }
 0xc60   :  { %4280 = vtanh.f32 %v3569_v14  ;;  %v7103_v14 = vld [vmem:[#allocation45_spill] sm:$0xff] }
 0xc69   :  { %v4275_v32 = vpop.eup %4274 }
 0xc6a   :  { %v3573_v46 = vadd.f32 1.0, %v4275_v32  ;;  %v7102_v32 = vld [vmem:[#allocation42_spill] sm:$0xff] }
 0xc6b   :  { %v4277_v22 = vpop.eup %4276 }
 0xc6c   :  { %v3576_v23 = vmul.f32 0.5, %v3573_v46  ;;  %v3574_v26 = vadd.f32 1.0, %v4277_v22  ;;  %v4279_v31 = vpop.eup %4278  ;;  %v7109_v46 = vld [vmem:[#allocation48_spill] sm:$0xff]  ;;  %v7110_v22 = vld [vmem:[#allocation46_spill] sm:$0xff] }
 0xc6d   :  { %v4281_v2 = vpop.eup %4280 }
 0xc6e   :  { %v3577_v43 = vmul.f32 0.5, %v3574_v26  ;;  %v3581_v40 = vmul.f32 %v4279_v31, %v3576_v23  ;;  %v3575_v29 = vadd.f32 1.0, %v4281_v2  ;;  %v7099_v26 = vld [vmem:[#allocation73_spill] sm:$0xff]  ;;  %v7101_v31 = vld [vmem:[#allocation32_spill] sm:$0xff] }
 0xc6f   :  { %v7111_v23 = vld [vmem:[#allocation49_spill] sm:$0xff]  ;;  %v7115_v2 = vld [vmem:[#allocation20_spill] sm:$0xff] }
 0xc70   :  { %v3580_v27 = vmul.f32 %v3577_v43, %v6138_v33  ;;  %v3578_v34 = vmul.f32 0.5, %v3575_v29  ;;  %v7100_v33 = vld [vmem:[#allocation34_spill] sm:$0xff]  ;;  %v7112_v43 = vld [vmem:[#allocation51_spill] sm:$0xff]  ;;  %v7116_v29 = vld [vmem:[#allocation21_spill] sm:$0xff] }
 0xc72   :  { %v6340_v19 = vadd.f32 %v3581_v40, %v3580_v27  ;;  %v7113_v40 = vld [vmem:[#allocation52_spill] sm:$0xff]  ;;  %v7114_v27 = vld [vmem:[#allocation50_spill] sm:$0xff] }
 0xc74   :  { %4282 = vtanh.f32 %v6340_v19 }
 0xc81   :  { %v4283_v5 = vpop.eup %4282 }
 0xc82   :  { %v3584_v13 = vmul.f32 %v4283_v5, %v3578_v34  ;;  %v7117_v34 = vld [vmem:[#allocation53_spill] sm:$0xff]  ;;  %v7118_v5 = vld [vmem:[#allocation55_spill] sm:$0xff] }
 0xc84   :  { %3656 = vmatmul.mubr.f32.vlgmr.msra.gmra.mxu0 %v3584_v13  ;;  %3727 = vmatmul.mubr.f32.vlgmr.msra.gmra.mxu1 %v3584_v13  ;;  %v7119_v13 = vld [vmem:[#allocation56_spill] sm:$0xff] }
 0xc85   :  { %3762 = vmatpush1.msra.mxu0 %v6141_v61  ;;  %3833 = vmatpush1.msra.mxu1 %v6144_v47 }
 0xc86   :  { %3763 = vmatprep.subr.mxu0 %v6147_v24  ;;  %3834 = vmatprep.subr.mxu1 %v6150_v37 }
 0xc87   :  { %3764 = vmatpush1.msra.mxu0 %v6153_v48  ;;  %3835 = vmatpush1.msra.mxu1 %v6156_v49 }
 0xc88   :  { %3765 = vmatprep.subr.mxu0 %v6159_v50  ;;  %3836 = vmatprep.subr.mxu1 %v6162_v51 }
 0xc89   :  { %3766 = vmatpush1.msra.mxu0 %v6165_v52  ;;  %3837 = vmatpush1.msra.mxu1 %v6168_v54 }
 0xc8a   :  { %3767 = vmatprep.subr.mxu0 %v6171_v55  ;;  %3838 = vmatprep.subr.mxu1 %v6174_v56 }
 0xc8b   :  { %3768 = vmatpush1.msra.mxu0 %v6177_v57  ;;  %3839 = vmatpush1.msra.mxu1 %v6180_v58 }
 0xc8c   :  { %3769 = vmatprep.subr.mxu0 %v6183_v59  ;;  %3840 = vmatprep.subr.mxu1 %v6186_v6 }
 0xc8d   :  { %3770 = vmatpush1.msra.mxu0 %v6189_v15  ;;  %3841 = vmatpush1.msra.mxu1 %v6192_v7 }
 0xc8e   :  { %3771 = vmatprep.subr.mxu0 %v6195_v0  ;;  %3842 = vmatprep.subr.mxu1 %v6198_v63 }
 0xc8f   :  { %3772 = vmatpush1.msra.mxu0 %v6201_v1  ;;  %3843 = vmatpush1.msra.mxu1 %v6204_v42 }
 0xc90   :  { %3773 = vmatprep.subr.mxu0 %v6207_v53  ;;  %3844 = vmatprep.subr.mxu1 %v6210_v44 }
 0xc91   :  { %3774 = vmatpush1.msra.mxu0 %v6213_v3  ;;  %3845 = vmatpush1.msra.mxu1 %v6216_v17 }
 0xc92   :  { %3775 = vmatprep.subr.mxu0 %v6219_v60  ;;  %3846 = vmatprep.subr.mxu1 %v6222_v16 }
 0xc93   :  { %3776 = vmatpush1.msra.mxu0 %v6225_v9  ;;  %3847 = vmatpush1.msra.mxu1 %v6228_v8 }
 0xc94   :  { %3777 = vmatprep.subr.mxu0 %v6231_v12  ;;  %3848 = vmatprep.subr.mxu1 %v6234_v18 }
 0xc95   :  { %3778 = vmatpush1.msra.mxu0 %v6237_v11  ;;  %3849 = vmatpush1.msra.mxu1 %v6240_v35 }
 0xc96   :  { %3779 = vmatprep.subr.mxu0 %v6243_v4  ;;  %3850 = vmatprep.subr.mxu1 %v6246_v62 }
 0xc97   :  { %3780 = vmatpush1.msra.mxu0 %v6249_v38  ;;  %3851 = vmatpush1.msra.mxu1 %v6252_v20 }
 0xc98   :  { %3781 = vmatprep.subr.mxu0 %v6255_v21  ;;  %3852 = vmatprep.subr.mxu1 %v6258_v41 }
 0xc99   :  { %3782 = vmatpush1.msra.mxu0 %v7099_v26  ;;  %3853 = vmatpush1.msra.mxu1 %v7100_v33 }
 0xc9a   :  { %3783 = vmatprep.subr.mxu0 %v7101_v31  ;;  %3854 = vmatprep.subr.mxu1 %v7102_v32 }
 0xc9b   :  { %3784 = vmatpush1.msra.mxu0 %v7103_v14  ;;  %3855 = vmatpush1.msra.mxu1 %v7104_v30  ;;  %v7128_v30 = vld [vmem:[#allocation19_spill] sm:$0xff] }
 0xc9c   :  { %3785 = vmatprep.subr.mxu0 %v7105_v45  ;;  %3856 = vmatprep.subr.mxu1 %v7106_v10 }
 0xc9d   :  { %3786 = vmatpush1.msra.mxu0 %v7107_v28  ;;  %3857 = vmatpush1.msra.mxu1 %v7108_v25  ;;  %v7127_v28 = vld [vmem:[#allocation69_spill] sm:$0xff] }
 0xc9e   :  { %3787 = vmatprep.subr.mxu0 %v7109_v46  ;;  %3858 = vmatprep.subr.mxu1 %v7110_v22  ;;  %v7120_v46 = vmov 0.0   ;;  %v7121_v22 = vld [vmem:[#allocation54_spill] sm:$0xff] }
 0xc9f   :  { %3788 = vmatpush1.msra.mxu0 %v7111_v23  ;;  %3859 = vmatpush1.msra.mxu1 %v7112_v43  ;;  %v7122_v43 = vld [vmem:[#allocation31_spill] sm:$0xff] }
 0xca0   :  { %3789 = vmatprep.subr.mxu0 %v7113_v40  ;;  %3860 = vmatprep.subr.mxu1 %v7114_v27  ;;  %v7123_v40 = vld [vmem:[#allocation33_spill] sm:$0xff]  ;;  %v7124_v27 = vld [vmem:[#allocation68_spill] sm:$0xff] }
 0xca1   :  { %3790 = vmatpush1.msra.mxu0 %v7115_v2  ;;  %3861 = vmatpush1.msra.mxu1 %v7116_v29  ;;  %v7125_v2 = vld [vmem:[#allocation64_spill] sm:$0xff] }
 0xca2   :  { %3791 = vmatprep.subr.mxu0 %v7117_v34  ;;  %3862 = vmatprep.subr.mxu1 %v7118_v5  ;;  %v2510_v23 = vadd.f32 %v7125_v2, %v7124_v27  ;;  %v7126_v34 = vld [vmem:[#allocation70_spill] sm:$0xff] }
 0xca3   :  { %3792 = vmatpush1.msra.mxu0 %v7119_v13  ;;  %3825 = vmatprep.mubr.f32.mxu0 %v7120_v46  ;;  %v2512_v5 = vadd.f32 %v7127_v28, %v7126_v34 }
 0xca4   :  { %3863 = vmatpush1.msra.mxu1 %v7121_v22  ;;  %3896 = vmatprep.mubr.f32.mxu1 %v7120_v46  ;;  %v2625_v22 = vadd.f32 %v7128_v30, %v7008_v39 }
 0xca5   :  { %3931 = vmatprep.subr.mxu0 %v7122_v43  ;;  %4002 = vmatprep.subr.mxu1 %v7123_v40  ;;  %v7129_v40 = vld [vmem:[#allocation62_spill] sm:$0xff] }
 0xca6   :  { %v2623_v2 = vadd.f32 %v7129_v40, %v5897_v36 }
 0xd44   :  { %v3657_v29 = vpop.f32.mrf.mxu0  ;;  %v3728_v25 = vpop.f32.mrf.mxu1 }
 0xd45   :  { %v3733_v10 = vadd.f32 %v3657_v29, %v2510_v23  ;;  %v3735_v27 = vadd.f32 %v3728_v25, %v2623_v2 }
 0xd46   :  { %v3659_v13 = vpop.f32.mrf.mxu0  ;;  %v3730_v45 = vpop.f32.mrf.mxu1 }
 0xd47   :  { %v3737_v14 = vmul.f32 0.5, %v3733_v10  ;;  %v3734_v46 = vadd.f32 %v3659_v13, %v2512_v5  ;;  %v3736_v32 = vadd.f32 %v3730_v45, %v2625_v22  ;;  %v3739_v31 = vmul.f32 0.5, %v3735_v27 }
 0xd49   :  { %4284 = vtanh.f32 %v3737_v14  ;;  %v3738_v43 = vmul.f32 0.5, %v3734_v46 }
 0xd4b   :  { %4286 = vtanh.f32 %v3738_v43 }
 0xd4c   :  { %4288 = vtanh.f32 %v3736_v32 }
 0xd4d   :  { %4290 = vtanh.f32 %v3739_v31 }
 0xd56   :  { %v4285_v33 = vpop.eup %4284 }
 0xd57   :  { %v3743_v28 = vadd.f32 1.0, %v4285_v33 }
 0xd58   :  { %v4287_v23 = vpop.eup %4286 }
 0xd59   :  { %v3746_v29 = vmul.f32 0.5, %v3743_v28  ;;  %v3744_v34 = vadd.f32 1.0, %v4287_v23  ;;  %v4289_v26 = vpop.eup %4288 }
 0xd5a   :  { %v4291_v32 = vpop.eup %4290 }
 0xd5b   :  { %v3747_v30 = vmul.f32 0.5, %v3744_v34  ;;  %v3751_v10 = vmul.f32 %v4289_v26, %v3746_v29  ;;  %v3745_v45 = vadd.f32 1.0, %v4291_v32 }
 0xd5d   :  { %v3750_v14 = vmul.f32 %v3747_v30, %v6340_v19  ;;  %v3748_v22 = vmul.f32 0.5, %v3745_v45  ;;  %v7158_v19 = vld [vmem:[#allocation44_spill] sm:$0xff] }
 0xd5e   :  { %v2629_v26 = vadd.f32 %v7158_v19, %v5897_v36 }
 0xd5f   :  { %v6418_v46 = vadd.f32 %v3751_v10, %v3750_v14 }
 0xd61   :  { %4292 = vtanh.f32 %v6418_v46 }
 0xd6e   :  { %v4293_v25 = vpop.eup %4292 }
 0xd6f   :  { %v3754_v27 = vmul.f32 %v4293_v25, %v3748_v22  ;;  %v7159_v25 = vld [vmem:[#allocation66_spill] sm:$0xff] }
 0xd71   :  { %3826 = vmatmul.mubr.f32.vlgmr.msra.gmra.mxu0 %v3754_v27  ;;  %3897 = vmatmul.mubr.f32.vlgmr.msra.gmra.mxu1 %v3754_v27 }
 0xd72   :  { %3932 = vmatpush1.msra.mxu0 %v6141_v61  ;;  %4003 = vmatpush1.msra.mxu1 %v6144_v47  ;;  %v7130_v61 = vld [vmem:[#allocation73_spill] sm:$0xff]  ;;  %v7131_v47 = vld [vmem:[#allocation34_spill] sm:$0xff] }
 0xd73   :  { %3933 = vmatprep.subr.mxu0 %v6147_v24  ;;  %4004 = vmatprep.subr.mxu1 %v6150_v37  ;;  %v7132_v24 = vld [vmem:[#allocation32_spill] sm:$0xff]  ;;  %v7133_v37 = vld [vmem:[#allocation42_spill] sm:$0xff] }
 0xd74   :  { %3934 = vmatpush1.msra.mxu0 %v6153_v48  ;;  %4005 = vmatpush1.msra.mxu1 %v6156_v49  ;;  %v7134_v48 = vld [vmem:[#allocation45_spill] sm:$0xff]  ;;  %v7135_v49 = vld [vmem:[#allocation35_spill] sm:$0xff] }
 0xd75   :  { %3935 = vmatprep.subr.mxu0 %v6159_v50  ;;  %4006 = vmatprep.subr.mxu1 %v6162_v51  ;;  %v7136_v50 = vld [vmem:[#allocation37_spill] sm:$0xff]  ;;  %v7137_v51 = vld [vmem:[#allocation38_spill] sm:$0xff] }
 0xd76   :  { %3936 = vmatpush1.msra.mxu0 %v6165_v52  ;;  %4007 = vmatpush1.msra.mxu1 %v6168_v54  ;;  %v7138_v52 = vld [vmem:[#allocation36_spill] sm:$0xff]  ;;  %v7139_v54 = vld [vmem:[#allocation47_spill] sm:$0xff] }
 0xd77   :  { %3937 = vmatprep.subr.mxu0 %v6171_v55  ;;  %4008 = vmatprep.subr.mxu1 %v6174_v56  ;;  %v7140_v55 = vld [vmem:[#allocation48_spill] sm:$0xff]  ;;  %v7141_v56 = vld [vmem:[#allocation46_spill] sm:$0xff] }
 0xd78   :  { %3938 = vmatpush1.msra.mxu0 %v6177_v57  ;;  %4009 = vmatpush1.msra.mxu1 %v6180_v58  ;;  %v7142_v57 = vld [vmem:[#allocation49_spill] sm:$0xff]  ;;  %v7143_v58 = vld [vmem:[#allocation51_spill] sm:$0xff] }
 0xd79   :  { %3939 = vmatprep.subr.mxu0 %v6183_v59  ;;  %4010 = vmatprep.subr.mxu1 %v6186_v6  ;;  %v7144_v59 = vld [vmem:[#allocation52_spill] sm:$0xff]  ;;  %v7145_v6 = vld [vmem:[#allocation50_spill] sm:$0xff] }
 0xd7a   :  { %3940 = vmatpush1.msra.mxu0 %v6189_v15  ;;  %4011 = vmatpush1.msra.mxu1 %v6192_v7  ;;  %v7146_v15 = vld [vmem:[#allocation20_spill] sm:$0xff]  ;;  %v7147_v7 = vld [vmem:[#allocation21_spill] sm:$0xff] }
 0xd7b   :  { %3941 = vmatprep.subr.mxu0 %v6195_v0  ;;  %4012 = vmatprep.subr.mxu1 %v6198_v63  ;;  %v7148_v0 = vld [vmem:[#allocation53_spill] sm:$0xff]  ;;  %v7149_v63 = vld [vmem:[#allocation55_spill] sm:$0xff] }
 0xd7c   :  { %3942 = vmatpush1.msra.mxu0 %v6201_v1  ;;  %4013 = vmatpush1.msra.mxu1 %v6204_v42  ;;  %v7150_v1 = vld [vmem:[#allocation56_spill] sm:$0xff]  ;;  %v7151_v42 = vmov 0.0  }
 0xd7d   :  { %3943 = vmatprep.subr.mxu0 %v6207_v53  ;;  %4014 = vmatprep.subr.mxu1 %v6210_v44  ;;  %v7152_v53 = vld [vmem:[#allocation54_spill] sm:$0xff]  ;;  %v7153_v44 = vld [vmem:[#allocation68_spill] sm:$0xff] }
 0xd7e   :  { %3944 = vmatpush1.msra.mxu0 %v6213_v3  ;;  %4015 = vmatpush1.msra.mxu1 %v6216_v17  ;;  %v7154_v3 = vld [vmem:[#allocation43_spill] sm:$0xff]  ;;  %v2522_v27 = vadd.f32 %v7159_v25, %v7153_v44 }
 0xd7f   :  { %3945 = vmatprep.subr.mxu0 %v6219_v60  ;;  %4016 = vmatprep.subr.mxu1 %v6222_v16  ;;  %v2516_v17 = vadd.f32 %v7154_v3, %v7153_v44 }
 0xd80   :  { %3946 = vmatpush1.msra.mxu0 %v6225_v9  ;;  %4017 = vmatpush1.msra.mxu1 %v6228_v8  ;;  %v7155_v9 = vld [vmem:[#allocation70_spill] sm:$0xff]  ;;  %v7156_v8 = vld [vmem:[#allocation65_spill] sm:$0xff] }
 0xd81   :  { %3947 = vmatprep.subr.mxu0 %v6231_v12  ;;  %4018 = vmatprep.subr.mxu1 %v6234_v18  ;;  %v2518_v12 = vadd.f32 %v7156_v8, %v7155_v9 }
 0xd82   :  { %3948 = vmatpush1.msra.mxu0 %v6237_v11  ;;  %4019 = vmatpush1.msra.mxu1 %v6240_v35 }
 0xd83   :  { %3949 = vmatprep.subr.mxu0 %v6243_v4  ;;  %4020 = vmatprep.subr.mxu1 %v6246_v62 }
 0xd84   :  { %3950 = vmatpush1.msra.mxu0 %v6249_v38  ;;  %4021 = vmatpush1.msra.mxu1 %v6252_v20  ;;  %v7157_v38 = vld [vmem:[#allocation67_spill] sm:$0xff] }
 0xd85   :  { %3951 = vmatprep.subr.mxu0 %v6255_v21  ;;  %4022 = vmatprep.subr.mxu1 %v6258_v41  ;;  %v2631_v20 = vadd.f32 %v7157_v38, %v7008_v39 }
 0xd86   :  { %3952 = vmatpush1.msra.mxu0 %v7130_v61  ;;  %4023 = vmatpush1.msra.mxu1 %v7131_v47 }
 0xd87   :  { %3953 = vmatprep.subr.mxu0 %v7132_v24  ;;  %4024 = vmatprep.subr.mxu1 %v7133_v37  ;;  %v7160_v24 = vld [vmem:[#allocation71_spill] sm:$0xff] }
 0xd88   :  { %3954 = vmatpush1.msra.mxu0 %v7134_v48  ;;  %4025 = vmatpush1.msra.mxu1 %v7135_v49  ;;  %v2524_v37 = vadd.f32 %v7160_v24, %v7155_v9 }
 0xd89   :  { %3955 = vmatprep.subr.mxu0 %v7136_v50  ;;  %4026 = vmatprep.subr.mxu1 %v7137_v51  ;;  %v7161_v50 = vld [vmem:[#allocation72_spill] sm:$0xff] }
 0xd8a   :  { %3956 = vmatpush1.msra.mxu0 %v7138_v52  ;;  %4027 = vmatpush1.msra.mxu1 %v7139_v54  ;;  %v2637_v51 = vadd.f32 %v7161_v50, %v7008_v39 }
 0xd8b   :  { %3957 = vmatprep.subr.mxu0 %v7140_v55  ;;  %4028 = vmatprep.subr.mxu1 %v7141_v56 }
 0xd8c   :  { %3958 = vmatpush1.msra.mxu0 %v7142_v57  ;;  %4029 = vmatpush1.msra.mxu1 %v7143_v58  ;;  %v7162_v57 = vld [vmem:[#allocation40_spill] sm:$0xff] }
 0xd8d   :  { %3959 = vmatprep.subr.mxu0 %v7144_v59  ;;  %4030 = vmatprep.subr.mxu1 %v7145_v6  ;;  %v2635_v58 = vadd.f32 %v7162_v57, %v5897_v36 }
 0xd8e   :  { %3960 = vmatpush1.msra.mxu0 %v7146_v15  ;;  %4031 = vmatpush1.msra.mxu1 %v7147_v7 }
 0xd8f   :  { %3961 = vmatprep.subr.mxu0 %v7148_v0  ;;  %4032 = vmatprep.subr.mxu1 %v7149_v63 }
 0xd90   :  { %3962 = vmatpush1.msra.mxu0 %v7150_v1  ;;  %3995 = vmatprep.mubr.f32.mxu0 %v7151_v42 }
 0xd91   :  { %4033 = vmatpush1.msra.mxu1 %v7152_v53  ;;  %4066 = vmatprep.mubr.f32.mxu1 %v7151_v42 }
 0xe31   :  { %v3827_v60 = vpop.f32.mrf.mxu0  ;;  %v3898_v16 = vpop.f32.mrf.mxu1 }
 0xe32   :  { %v3903_v18 = vadd.f32 %v3827_v60, %v2516_v17  ;;  %v3905_v33 = vadd.f32 %v3898_v16, %v2629_v26 }
 0xe33   :  { %v3829_v11 = vpop.f32.mrf.mxu0  ;;  %v3900_v62 = vpop.f32.mrf.mxu1 }
 0xe34   :  { %v3907_v35 = vmul.f32 0.5, %v3903_v18  ;;  %v3904_v4 = vadd.f32 %v3829_v11, %v2518_v12  ;;  %v3906_v41 = vadd.f32 %v3900_v62, %v2631_v20  ;;  %v3909_v31 = vmul.f32 0.5, %v3905_v33 }
 0xe36   :  { %4294 = vtanh.f32 %v3907_v35  ;;  %v3908_v21 = vmul.f32 0.5, %v3904_v4 }
 0xe38   :  { %4296 = vtanh.f32 %v3908_v21 }
 0xe39   :  { %4298 = vtanh.f32 %v3906_v41 }
 0xe3a   :  { %4300 = vtanh.f32 %v3909_v31 }
 0xe43   :  { %v4295_v34 = vpop.eup %4294 }
 0xe44   :  { %v3913_v5 = vadd.f32 1.0, %v4295_v34 }
 0xe45   :  { %v4297_v13 = vpop.eup %4296 }
 0xe46   :  { %v3916_v43 = vmul.f32 0.5, %v3913_v5  ;;  %v3914_v40 = vadd.f32 1.0, %v4297_v13  ;;  %v4299_v28 = vpop.eup %4298 }
 0xe47   :  { %v4301_v10 = vpop.eup %4300 }
 0xe48   :  { %v3917_v2 = vmul.f32 0.5, %v3914_v40  ;;  %v3921_v29 = vmul.f32 %v4299_v28, %v3916_v43  ;;  %v3915_v14 = vadd.f32 1.0, %v4301_v10 }
 0xe4a   :  { %v3920_v23 = vmul.f32 %v3917_v2, %v6418_v46  ;;  %v3918_v32 = vmul.f32 0.5, %v3915_v14 }
 0xe4c   :  { %v3922_v30 = vadd.f32 %v3921_v29, %v3920_v23 }
 0xe4e   :  { %4302 = vtanh.f32 %v3922_v30 }
 0xe5b   :  { %v4303_v45 = vpop.eup %4302 }
 0xe5c   :  { %v3924_v22 = vmul.f32 %v4303_v45, %v3918_v32 }
 0xe5e   :  { %3996 = vmatmul.mubr.f32.vlgmr.msra.gmra.mxu0 %v3924_v22  ;;  %4067 = vmatmul.mubr.f32.vlgmr.msra.gmra.mxu1 %v3924_v22 }
 0xf1e   :  { %v3997_v61 = vpop.f32.mrf.mxu0  ;;  %v4068_v47 = vpop.f32.mrf.mxu1 }
 0xf1f   :  { %v4073_v48 = vadd.f32 %v3997_v61, %v2522_v27  ;;  %v4075_v59 = vadd.f32 %v4068_v47, %v2635_v58 }
 0xf20   :  { %v3999_v46 = vpop.f32.mrf.mxu0  ;;  %v4070_v49 = vpop.f32.mrf.mxu1 }
 0xf21   :  { %v4077_v52 = vmul.f32 0.5, %v4073_v48  ;;  %v4074_v54 = vadd.f32 %v3999_v46, %v2524_v37  ;;  %v4076_v56 = vadd.f32 %v4070_v49, %v2637_v51  ;;  %v4079_v6 = vmul.f32 0.5, %v4075_v59 }
 0xf23   :  { %4304 = vtanh.f32 %v4077_v52  ;;  %v4078_v55 = vmul.f32 0.5, %v4074_v54 }
 0xf25   :  { %4306 = vtanh.f32 %v4078_v55 }
 0xf26   :  { %4308 = vtanh.f32 %v4076_v56 }
 0xf27   :  { %4310 = vtanh.f32 %v4079_v6 }
 0xf30   :  { %v4305_v15 = vpop.eup %4304 }
 0xf31   :  { %v4083_v7 = vadd.f32 1.0, %v4305_v15 }
 0xf32   :  { %v4307_v0 = vpop.eup %4306 }
 0xf33   :  { %v4086_v63 = vmul.f32 0.5, %v4083_v7  ;;  %v4084_v1 = vadd.f32 1.0, %v4307_v0  ;;  %v4309_v42 = vpop.eup %4308 }
 0xf34   :  { %v4311_v17 = vpop.eup %4310 }
 0xf35   :  { %v4087_v39 = vmul.f32 0.5, %v4084_v1  ;;  %v4091_v53 = vmul.f32 %v4309_v42, %v4086_v63  ;;  %v4085_v60 = vadd.f32 1.0, %v4311_v17 }
 0xf37   :  { %v4090_v44 = vmul.f32 %v4087_v39, %v3922_v30  ;;  %v4088_v16 = vmul.f32 0.5, %v4085_v60 }
 0xf39   :  { %v4092_v3 = vadd.f32 %v4091_v53, %v4090_v44 }
 0xf3b   :  { %4312 = vtanh.f32 %v4092_v3 }
 0xf48   :  { %v4313_v36 = vpop.eup %4312 }
 0xf49   :  { %v4094_v9 = vmul.f32 %v4313_v36, %v4088_v16 }
 0xf4b   :  { %4095 = vst [vmem:[#allocation14] sm:$0xff] %v4094_v9 }
 0xf4c   :  { %4489 = shalt.err (!%p4486_p1)
}
 0xf4d   :  { %4105 = dma.vmem_to_hbm [thread:$0]  %s4103_s28, 128, %s6512_s7, [#allocation7]  }
 0xf4e   :  { %4504 = dma.done.wait [#allocation7], 128  }
 0xf4f   :  { %4505 = vsyncadd [#allocation7], 4294967168 }
 0xf50   :  { %4109 = vsyncpa [#allocation6], 1 }
 0xf51   :  { %4110 = vsyncpa [#allocation9], 1 }
 0xf52   :  { %4111 = vsyncpa [#allocation12], 1 }
 0xf53   :  { %4112 = vsyncpa [#allocation7], 1 }

</bundles_post_ra>
